<compile_context>
chip_gen: v7x
topology: tpu7x:2x2x1
jax: 0.10.0
libtpu: 0.0.40
codegen_flags: <defaults>
</compile_context>

<pallas_src>
import functools

import jax
import jax.numpy as jnp
from jax.experimental import pallas as pl
from jax.experimental.pallas import tpu as pltpu

LANES = 128            # TPU lane width
_MIB = 1024 * 1024


# ---------------------------------------------------------------------------
# Pass 1: encode + streaming top-k threshold
# ---------------------------------------------------------------------------
def _encode_kernel(x_ref, pre_b_ref, w_enc_t_ref, lat_b_ref,
                   latents_ref, thr_ref, topk_buf, *, k: int):
    j = pl.program_id(1)
    nl = pl.num_programs(1)

    # ---- encode this latent tile (bf16 operands, f32 accumulation) ----
    xc = x_ref[...] - pre_b_ref[...]                          # f32 [TB, n_in]
    lat = jnp.dot(xc.astype(jnp.bfloat16), w_enc_t_ref[...],
                  preferred_element_type=jnp.float32) + lat_b_ref[...]
    latents_ref[...] = lat

    # ---- streaming running top-k across latent tiles ----
    @pl.when(j == 0)
    def _():
        topk_buf[...] = jnp.full(topk_buf.shape, -jnp.inf, jnp.float32)

    neg_inf = jnp.float32(-jnp.inf)
    tile = jnp.maximum(lat, 0.0)                              # relu
    buf = topk_buf[...]
    lane = jax.lax.broadcasted_iota(jnp.int32, buf.shape, 1)
    new_buf = jnp.full(buf.shape, -jnp.inf, jnp.float32)
    thr = jnp.full((tile.shape[0], 1), -jnp.inf, jnp.float32)
    # k is small & static -> unrolled peel of the (running buffer ∪ tile).
    for t in range(k):
        m = jnp.maximum(jnp.max(tile, axis=-1, keepdims=True),
                        jnp.max(buf, axis=-1, keepdims=True))
        new_buf = jnp.where(lane == t, m, new_buf)
        tile = jnp.where(tile >= m, neg_inf, tile)
        buf = jnp.where(buf >= m, neg_inf, buf)
        thr = m                                               # k-th max so far
    topk_buf[...] = new_buf

    @pl.when(j == nl - 1)
    def _():
        thr_ref[...] = jnp.broadcast_to(thr, thr_ref.shape)


# ---------------------------------------------------------------------------
# Pass 2: masked decode, accumulating over latent tiles
# ---------------------------------------------------------------------------
def _decode_kernel(lat_ref, thr_ref, w_dec_t_ref, pre_b_ref, recons_ref):
    j = pl.program_id(1)

    @pl.when(j == 0)
    def _():
        recons_ref[...] = jnp.broadcast_to(pre_b_ref[...], recons_ref.shape)

    vals = jnp.maximum(lat_ref[...], 0.0)                     # relu
    kept = jnp.where(vals >= thr_ref[:, 0:1], vals, 0.0)      # top-k mask
    recons_ref[...] += jnp.dot(kept.astype(jnp.bfloat16), w_dec_t_ref[...],
                               preferred_element_type=jnp.float32)


# ---------------------------------------------------------------------------
# Host-side wrappers
# ---------------------------------------------------------------------------
def prepare_params(pre_bias, w_enc, latent_bias, w_dec):
    """One-time parameter prep (hoisted out of the per-call path): transpose
    weights so both in-kernel dots are [B,in]@[in,out], cast weights to bf16
    for the MXU, reshape biases to lane-dense [1, dim] f32 rows."""
    n_latents, n_inputs = w_enc.shape
    return {
        "pre_b": jnp.asarray(pre_bias).reshape(1, n_inputs).astype(jnp.float32),
        "lat_b": jnp.asarray(latent_bias).reshape(1, n_latents).astype(jnp.float32),
        "w_enc_t": jnp.asarray(w_enc).T.astype(jnp.bfloat16),   # [n_in,  n_lat]
        "w_dec_t": jnp.asarray(w_dec).T.astype(jnp.bfloat16),   # [n_lat, n_in ]
    }


def _vmem_limit(block_bytes_sum, scratch_bytes=0):
    # Blocks are double-buffered by the pipeline; give 2x headroom, clamp to
    # the smallest physical VMEM across generations (64 MiB on v7x).
    est = 2 * block_bytes_sum + scratch_bytes
    return int(min(64 * _MIB, max(2 * est, 16 * _MIB)))


@functools.partial(jax.jit, static_argnames=("k", "tb", "tl"))
def sparse_autoencoder_forward(x, params, *, k: int, tb: int = 128, tl: int = 256):
    """x: [B, n_inputs] f32 -> (recons [B, n_inputs], latents [B, n_latents])."""
    pre_b, lat_b = params["pre_b"], params["lat_b"]
    w_enc_t, w_dec_t = params["w_enc_t"], params["w_dec_t"]

    B, n_inputs = x.shape
    n_latents = w_enc_t.shape[1]
    tl = min(tl, n_latents)
    assert n_inputs % LANES == 0 and tl % LANES == 0 and n_latents % tl == 0
    assert 1 <= k <= min(LANES, n_latents)

    # Pad batch up to full MXU-height tiles (M >= 128).
    B_pad = -(-B // tb) * tb
    x = x.astype(jnp.float32)
    if B_pad != B:
        x = jnp.pad(x, ((0, B_pad - B), (0, 0)))
    nb, nl = B_pad // tb, n_latents // tl

    # ------------------ pass 1: encode + top-k threshold ------------------
    enc_block_bytes = (tb * n_inputs * 4 + n_inputs * 4 + n_inputs * tl * 2
                       + tl * 4 + tb * tl * 4 + tb * LANES * 4)
    latents, thr = pl.pallas_call(
        functools.partial(_encode_kernel, k=k),
        grid=(nb, nl),
        in_specs=[
            pl.BlockSpec((tb, n_inputs), lambda i, j: (i, 0)),      # x
            pl.BlockSpec((1, n_inputs), lambda i, j: (0, 0)),       # pre_bias
            pl.BlockSpec((n_inputs, tl), lambda i, j: (0, j)),      # W_enc.T tile
            pl.BlockSpec((1, tl), lambda i, j: (0, j)),             # latent_bias
        ],
        out_specs=[
            pl.BlockSpec((tb, tl), lambda i, j: (i, j)),            # latents
            pl.BlockSpec((tb, LANES), lambda i, j: (i, 0)),         # threshold
        ],
        out_shape=[
            jax.ShapeDtypeStruct((B_pad, n_latents), jnp.float32),
            jax.ShapeDtypeStruct((B_pad, LANES), jnp.float32),
        ],
        scratch_shapes=[pltpu.VMEM((tb, LANES), jnp.float32)],
        compiler_params=pltpu.CompilerParams(
            dimension_semantics=("parallel", "arbitrary"),
            vmem_limit_bytes=_vmem_limit(enc_block_bytes, tb * LANES * 4)),
        cost_estimate=pl.CostEstimate(
            flops=2 * B_pad * n_inputs * n_latents,
            transcendentals=0,
            bytes_accessed=(B_pad * n_inputs * 4 + n_inputs * n_latents * 2
                            + n_latents * 4 + n_inputs * 4
                            + B_pad * n_latents * 4 + B_pad * LANES * 4)),
    )(x, pre_b, w_enc_t, lat_b)

    # ------------------ pass 2: masked decode (accumulating) --------------
    dec_block_bytes = (tb * tl * 4 + tb * LANES * 4 + tl * n_inputs * 2
                       + n_inputs * 4 + tb * n_inputs * 4)
    recons = pl.pallas_call(
        _decode_kernel,
        grid=(nb, nl),
        in_specs=[
            pl.BlockSpec((tb, tl), lambda i, j: (i, j)),            # latents
            pl.BlockSpec((tb, LANES), lambda i, j: (i, 0)),         # threshold
            pl.BlockSpec((tl, n_inputs), lambda i, j: (j, 0)),      # W_dec.T tile
            pl.BlockSpec((1, n_inputs), lambda i, j: (0, 0)),       # pre_bias
        ],
        out_specs=pl.BlockSpec((tb, n_inputs), lambda i, j: (i, 0)),
        out_shape=jax.ShapeDtypeStruct((B_pad, n_inputs), jnp.float32),
        compiler_params=pltpu.CompilerParams(
            dimension_semantics=("parallel", "arbitrary"),
            vmem_limit_bytes=_vmem_limit(dec_block_bytes)),
        cost_estimate=pl.CostEstimate(
            flops=2 * B_pad * n_latents * n_inputs,
            transcendentals=0,
            bytes_accessed=(B_pad * n_latents * 4 + B_pad * LANES * 4
                            + n_latents * n_inputs * 2 + n_inputs * 4
                            + B_pad * n_inputs * 4)),
    )(latents, thr, w_dec_t, pre_b)

    return recons[:B], latents[:B]


# ---------------------------------------------------------------------------
# Plain-JAX reference of the PyTorch semantics (bf16-rounded matmul operands
# to match the kernel's MXU dtype, f32 accumulation).
# ---------------------------------------------------------------------------
def _ref_forward(x, pre_bias, w_enc, latent_bias, w_dec, *, k,
                 latents_for_topk=None):
    bf = lambda a: a.astype(jnp.bfloat16).astype(jnp.float32)
    xc = x - pre_bias
    lat = bf(xc) @ bf(w_enc.T) + latent_bias
    sel = lat if latents_for_topk is None else latents_for_topk
    vals = jax.nn.relu(sel)
    topv, topi = jax.lax.top_k(vals, k)
    res = jnp.zeros_like(vals)
    res = res.at[jnp.arange(vals.shape[0])[:, None], topi].set(topv)
    recons = bf(res) @ bf(w_dec.T) + pre_bias
    return recons, lat


if __name__ == "__main__":
    B, N_INPUTS, N_LATENTS, K = 200, 256, 1024, 8

    key = jax.random.PRNGKey(0)
    k_x, k_w = jax.random.split(key)
    x = jax.random.normal(k_x, (B, N_INPUTS), dtype=jnp.float32)

    # Parameters per SparseAutoencoder.__init__ (deterministic, synthetic init).
    pre_bias = jnp.zeros((N_INPUTS,), jnp.float32)
    latent_bias = jnp.zeros((N_LATENTS,), jnp.float32)
    bound = 1.0 / (N_INPUTS ** 0.5)
    w_enc = jax.random.uniform(k_w, (N_LATENTS, N_INPUTS),
                               minval=-bound, maxval=bound, dtype=jnp.float32)
    w_dec = w_enc.T                      # decoder.weight = encoder.weight.t()

    params = prepare_params(pre_bias, w_enc, latent_bias, w_dec)

    recons, latents = sparse_autoencoder_forward(x, params, k=K)
    jax.block_until_ready((recons, latents))

    # Encode checked against an independent reference; decode reference reuses
    # the kernel's latents for top-k selection so the check is not sensitive
    # to near-tie index flips caused by different f32 summation orders.
    r_ref, l_ref = _ref_forward(x, pre_bias, w_enc, latent_bias, w_dec,
                                k=K, latents_for_topk=latents)
    assert recons.shape == (B, N_INPUTS) and latents.shape == (B, N_LATENTS)
    assert jnp.allclose(latents, l_ref, atol=1e-3, rtol=1e-3), \
        float(jnp.max(jnp.abs(latents - l_ref)))
    assert jnp.allclose(recons, r_ref, atol=1e-3, rtol=1e-3), \
        float(jnp.max(jnp.abs(recons - r_ref)))

    print("KERNEL_OK")
</pallas_src>

<mosaic_0001>
module attributes {stable_mosaic.version = 11 : i64} {
  func.func @_encode_kernel(%arg0: i32, %arg1: i32, %arg2: memref<128x256xf32, #tpu.memory_space<vmem>>, %arg3: memref<1x256xf32, #tpu.memory_space<vmem>>, %arg4: memref<256x256xbf16, #tpu.memory_space<vmem>>, %arg5: memref<1x256xf32, #tpu.memory_space<vmem>>, %arg6: memref<128x256xf32, #tpu.memory_space<vmem>>, %arg7: memref<128x128xf32, #tpu.memory_space<vmem>>, %arg8: memref<128x128xf32, #tpu.memory_space<vmem>>) attributes {dimension_semantics = [#tpu.dimension_semantics<parallel>, #tpu.dimension_semantics<arbitrary>], iteration_bounds = array<i64: 2, 4>, scalar_prefetch = 0 : i64, scratch_operands = 1 : i64, tpu.core_type = #tpu.core_type<tc>, window_params = [{transform_indices = @transform_0, window_bounds = array<i64: 128, 256>}, {pipeline_mode = #tpu.pipeline_mode<synchronous>, transform_indices = @transform_1, window_bounds = array<i64: 1, 256>}, {transform_indices = @transform_2, window_bounds = array<i64: 256, 256>}, {transform_indices = @transform_3, window_bounds = array<i64: 1, 256>}, {transform_indices = @transform_4, window_bounds = array<i64: 128, 256>}, {transform_indices = @transform_5, window_bounds = array<i64: 128, 128>}]} {
    %c0 = arith.constant 0 : index
    %c0_0 = arith.constant 0 : index
    %0 = vector.load %arg2[%c0, %c0_0] : memref<128x256xf32, #tpu.memory_space<vmem>>, vector<128x256xf32>
    %c0_1 = arith.constant 0 : index
    %c0_2 = arith.constant 0 : index
    %1 = vector.load %arg3[%c0_1, %c0_2] : memref<1x256xf32, #tpu.memory_space<vmem>>, vector<1x256xf32>
    %2 = vector.broadcast %1 : vector<1x256xf32> to vector<128x256xf32>
    %3 = arith.subf %0, %2 : vector<128x256xf32>
    %4 = arith.truncf %3 : vector<128x256xf32> to vector<128x256xbf16>
    %c0_3 = arith.constant 0 : index
    %c0_4 = arith.constant 0 : index
    %5 = vector.load %arg4[%c0_3, %c0_4] : memref<256x256xbf16, #tpu.memory_space<vmem>>, vector<256x256xbf16>
    %cst = arith.constant dense<0.000000e+00> : vector<128x256xf32>
    %6 = tpu.matmul %4, %5, %cst {dimension_numbers = #tpu.dot_dimension_numbers<[1], [0], [0], [1], [0, 0, 1, 1], [], []>} : vector<128x256xbf16>, vector<256x256xbf16>, vector<128x256xf32> -> vector<128x256xf32>
    %c0_5 = arith.constant 0 : index
    %c0_6 = arith.constant 0 : index
    %7 = vector.load %arg5[%c0_5, %c0_6] : memref<1x256xf32, #tpu.memory_space<vmem>>, vector<1x256xf32>
    %8 = vector.broadcast %7 : vector<1x256xf32> to vector<128x256xf32>
    %9 = arith.addf %6, %8 : vector<128x256xf32>
    %c0_7 = arith.constant 0 : index
    %c0_8 = arith.constant 0 : index
    %10 = vector.load %arg6[%c0_7, %c0_8] : memref<128x256xf32, #tpu.memory_space<vmem>>, vector<128x256xf32>
    tpu.vector_store %arg6[%c0_7, %c0_8], %9 {strides = array<i32>} : memref<128x256xf32, #tpu.memory_space<vmem>>, vector<128x256xf32>,
    %c0_i32 = arith.constant 0 : i32
    %11 = arith.cmpi eq, %arg1, %c0_i32 : i32
    %12 = arith.extui %11 : i1 to i32
    %c0_i32_9 = arith.constant 0 : i32
    %13 = arith.cmpi ne, %12, %c0_i32_9 : i32
    scf.if %13 {
      %cst_49 = arith.constant 0xFF800000 : f32
      %159 = vector.broadcast %cst_49 : f32 to vector<128x128xf32>
      %c0_50 = arith.constant 0 : index
      %c0_51 = arith.constant 0 : index
      %160 = vector.load %arg8[%c0_50, %c0_51] : memref<128x128xf32, #tpu.memory_space<vmem>>, vector<128x128xf32>
      tpu.vector_store %arg8[%c0_50, %c0_51], %159 {strides = array<i32>} : memref<128x128xf32, #tpu.memory_space<vmem>>, vector<128x128xf32>,
    } else {
    }
    %cst_10 = arith.constant 0.000000e+00 : f32
    %14 = vector.broadcast %cst_10 : f32 to vector<128x256xf32>
    %15 = arith.maximumf %9, %14 : vector<128x256xf32>
    %c0_11 = arith.constant 0 : index
    %c0_12 = arith.constant 0 : index
    %16 = vector.load %arg8[%c0_11, %c0_12] : memref<128x128xf32, #tpu.memory_space<vmem>>, vector<128x128xf32>
    %17 = tpu.iota {dimensions = array<i32: 1>} : vector<128x128xi32>
    %cst_13 = arith.constant 0xFF800000 : f32
    %18 = vector.broadcast %cst_13 : f32 to vector<128x128xf32>
    %cst_14 = arith.constant dense<0xFF800000> : vector<128xf32>
    %19 = vector.multi_reduction <maximumf>, %15, %cst_14 [1] : vector<128x256xf32> to vector<128xf32>
    %20 = vector.shape_cast %19 : vector<128xf32> to vector<128x1xf32>
    %cst_15 = arith.constant dense<0xFF800000> : vector<128xf32>
    %21 = vector.multi_reduction <maximumf>, %16, %cst_15 [1] : vector<128x128xf32> to vector<128xf32>
    %22 = vector.shape_cast %21 : vector<128xf32> to vector<128x1xf32>
    %23 = arith.maximumf %20, %22 : vector<128x1xf32>
    %c0_i32_16 = arith.constant 0 : i32
    %24 = vector.broadcast %c0_i32_16 : i32 to vector<128x128xi32>
    %25 = arith.cmpi eq, %17, %24 : vector<128x128xi32>
    %26 = vector.shape_cast %23 : vector<128x1xf32> to vector<128x1xf32>
    %27 = vector.broadcast %26 : vector<128x1xf32> to vector<128x128xf32>
    %28 = arith.select %25, %27, %18 : vector<128x128xi1>, vector<128x128xf32>
    %29 = vector.broadcast %23 : vector<128x1xf32> to vector<128x256xf32>
    %30 = arith.cmpf oge, %15, %29 : vector<128x256xf32>
    %cst_17 = arith.constant 0xFF800000 : f32
    %31 = vector.broadcast %cst_17 : f32 to vector<128x256xf32>
    %32 = arith.select %30, %31, %15 : vector<128x256xi1>, vector<128x256xf32>
    %33 = vector.broadcast %23 : vector<128x1xf32> to vector<128x128xf32>
    %34 = arith.cmpf oge, %16, %33 : vector<128x128xf32>
    %cst_18 = arith.constant 0xFF800000 : f32
    %35 = vector.broadcast %cst_18 : f32 to vector<128x128xf32>
    %36 = arith.select %34, %35, %16 : vector<128x128xi1>, vector<128x128xf32>
    %cst_19 = arith.constant dense<0xFF800000> : vector<128xf32>
    %37 = vector.multi_reduction <maximumf>, %32, %cst_19 [1] : vector<128x256xf32> to vector<128xf32>
    %38 = vector.shape_cast %37 : vector<128xf32> to vector<128x1xf32>
    %cst_20 = arith.constant dense<0xFF800000> : vector<128xf32>
    %39 = vector.multi_reduction <maximumf>, %36, %cst_20 [1] : vector<128x128xf32> to vector<128xf32>
    %40 = vector.shape_cast %39 : vector<128xf32> to vector<128x1xf32>
    %41 = arith.maximumf %38, %40 : vector<128x1xf32>
    %c1_i32 = arith.constant 1 : i32
    %42 = vector.broadcast %c1_i32 : i32 to vector<128x128xi32>
    %43 = arith.cmpi eq, %17, %42 : vector<128x128xi32>
    %44 = vector.shape_cast %41 : vector<128x1xf32> to vector<128x1xf32>
    %45 = vector.broadcast %44 : vector<128x1xf32> to vector<128x128xf32>
    %46 = arith.select %43, %45, %28 : vector<128x128xi1>, vector<128x128xf32>
    %47 = vector.broadcast %41 : vector<128x1xf32> to vector<128x256xf32>
    %48 = arith.cmpf oge, %32, %47 : vector<128x256xf32>
    %cst_21 = arith.constant 0xFF800000 : f32
    %49 = vector.broadcast %cst_21 : f32 to vector<128x256xf32>
    %50 = arith.select %48, %49, %32 : vector<128x256xi1>, vector<128x256xf32>
    %51 = vector.broadcast %41 : vector<128x1xf32> to vector<128x128xf32>
    %52 = arith.cmpf oge, %36, %51 : vector<128x128xf32>
    %cst_22 = arith.constant 0xFF800000 : f32
    %53 = vector.broadcast %cst_22 : f32 to vector<128x128xf32>
    %54 = arith.select %52, %53, %36 : vector<128x128xi1>, vector<128x128xf32>
    %cst_23 = arith.constant dense<0xFF800000> : vector<128xf32>
    %55 = vector.multi_reduction <maximumf>, %50, %cst_23 [1] : vector<128x256xf32> to vector<128xf32>
    %56 = vector.shape_cast %55 : vector<128xf32> to vector<128x1xf32>
    %cst_24 = arith.constant dense<0xFF800000> : vector<128xf32>
    %57 = vector.multi_reduction <maximumf>, %54, %cst_24 [1] : vector<128x128xf32> to vector<128xf32>
    %58 = vector.shape_cast %57 : vector<128xf32> to vector<128x1xf32>
    %59 = arith.maximumf %56, %58 : vector<128x1xf32>
    %c2_i32 = arith.constant 2 : i32
    %60 = vector.broadcast %c2_i32 : i32 to vector<128x128xi32>
    %61 = arith.cmpi eq, %17, %60 : vector<128x128xi32>
    %62 = vector.shape_cast %59 : vector<128x1xf32> to vector<128x1xf32>
    %63 = vector.broadcast %62 : vector<128x1xf32> to vector<128x128xf32>
    %64 = arith.select %61, %63, %46 : vector<128x128xi1>, vector<128x128xf32>
    %65 = vector.broadcast %59 : vector<128x1xf32> to vector<128x256xf32>
    %66 = arith.cmpf oge, %50, %65 : vector<128x256xf32>
    %cst_25 = arith.constant 0xFF800000 : f32
    %67 = vector.broadcast %cst_25 : f32 to vector<128x256xf32>
    %68 = arith.select %66, %67, %50 : vector<128x256xi1>, vector<128x256xf32>
    %69 = vector.broadcast %59 : vector<128x1xf32> to vector<128x128xf32>
    %70 = arith.cmpf oge, %54, %69 : vector<128x128xf32>
    %cst_26 = arith.constant 0xFF800000 : f32
    %71 = vector.broadcast %cst_26 : f32 to vector<128x128xf32>
    %72 = arith.select %70, %71, %54 : vector<128x128xi1>, vector<128x128xf32>
    %cst_27 = arith.constant dense<0xFF800000> : vector<128xf32>
    %73 = vector.multi_reduction <maximumf>, %68, %cst_27 [1] : vector<128x256xf32> to vector<128xf32>
    %74 = vector.shape_cast %73 : vector<128xf32> to vector<128x1xf32>
    %cst_28 = arith.constant dense<0xFF800000> : vector<128xf32>
    %75 = vector.multi_reduction <maximumf>, %72, %cst_28 [1] : vector<128x128xf32> to vector<128xf32>
    %76 = vector.shape_cast %75 : vector<128xf32> to vector<128x1xf32>
    %77 = arith.maximumf %74, %76 : vector<128x1xf32>
    %c3_i32 = arith.constant 3 : i32
    %78 = vector.broadcast %c3_i32 : i32 to vector<128x128xi32>
    %79 = arith.cmpi eq, %17, %78 : vector<128x128xi32>
    %80 = vector.shape_cast %77 : vector<128x1xf32> to vector<128x1xf32>
    %81 = vector.broadcast %80 : vector<128x1xf32> to vector<128x128xf32>
    %82 = arith.select %79, %81, %64 : vector<128x128xi1>, vector<128x128xf32>
    %83 = vector.broadcast %77 : vector<128x1xf32> to vector<128x256xf32>
    %84 = arith.cmpf oge, %68, %83 : vector<128x256xf32>
    %cst_29 = arith.constant 0xFF800000 : f32
    %85 = vector.broadcast %cst_29 : f32 to vector<128x256xf32>
    %86 = arith.select %84, %85, %68 : vector<128x256xi1>, vector<128x256xf32>
    %87 = vector.broadcast %77 : vector<128x1xf32> to vector<128x128xf32>
    %88 = arith.cmpf oge, %72, %87 : vector<128x128xf32>
    %cst_30 = arith.constant 0xFF800000 : f32
    %89 = vector.broadcast %cst_30 : f32 to vector<128x128xf32>
    %90 = arith.select %88, %89, %72 : vector<128x128xi1>, vector<128x128xf32>
    %cst_31 = arith.constant dense<0xFF800000> : vector<128xf32>
    %91 = vector.multi_reduction <maximumf>, %86, %cst_31 [1] : vector<128x256xf32> to vector<128xf32>
    %92 = vector.shape_cast %91 : vector<128xf32> to vector<128x1xf32>
    %cst_32 = arith.constant dense<0xFF800000> : vector<128xf32>
    %93 = vector.multi_reduction <maximumf>, %90, %cst_32 [1] : vector<128x128xf32> to vector<128xf32>
    %94 = vector.shape_cast %93 : vector<128xf32> to vector<128x1xf32>
    %95 = arith.maximumf %92, %94 : vector<128x1xf32>
    %c4_i32 = arith.constant 4 : i32
    %96 = vector.broadcast %c4_i32 : i32 to vector<128x128xi32>
    %97 = arith.cmpi eq, %17, %96 : vector<128x128xi32>
    %98 = vector.shape_cast %95 : vector<128x1xf32> to vector<128x1xf32>
    %99 = vector.broadcast %98 : vector<128x1xf32> to vector<128x128xf32>
    %100 = arith.select %97, %99, %82 : vector<128x128xi1>, vector<128x128xf32>
    %101 = vector.broadcast %95 : vector<128x1xf32> to vector<128x256xf32>
    %102 = arith.cmpf oge, %86, %101 : vector<128x256xf32>
    %cst_33 = arith.constant 0xFF800000 : f32
    %103 = vector.broadcast %cst_33 : f32 to vector<128x256xf32>
    %104 = arith.select %102, %103, %86 : vector<128x256xi1>, vector<128x256xf32>
    %105 = vector.broadcast %95 : vector<128x1xf32> to vector<128x128xf32>
    %106 = arith.cmpf oge, %90, %105 : vector<128x128xf32>
    %cst_34 = arith.constant 0xFF800000 : f32
    %107 = vector.broadcast %cst_34 : f32 to vector<128x128xf32>
    %108 = arith.select %106, %107, %90 : vector<128x128xi1>, vector<128x128xf32>
    %cst_35 = arith.constant dense<0xFF800000> : vector<128xf32>
    %109 = vector.multi_reduction <maximumf>, %104, %cst_35 [1] : vector<128x256xf32> to vector<128xf32>
    %110 = vector.shape_cast %109 : vector<128xf32> to vector<128x1xf32>
    %cst_36 = arith.constant dense<0xFF800000> : vector<128xf32>
    %111 = vector.multi_reduction <maximumf>, %108, %cst_36 [1] : vector<128x128xf32> to vector<128xf32>
    %112 = vector.shape_cast %111 : vector<128xf32> to vector<128x1xf32>
    %113 = arith.maximumf %110, %112 : vector<128x1xf32>
    %c5_i32 = arith.constant 5 : i32
    %114 = vector.broadcast %c5_i32 : i32 to vector<128x128xi32>
    %115 = arith.cmpi eq, %17, %114 : vector<128x128xi32>
    %116 = vector.shape_cast %113 : vector<128x1xf32> to vector<128x1xf32>
    %117 = vector.broadcast %116 : vector<128x1xf32> to vector<128x128xf32>
    %118 = arith.select %115, %117, %100 : vector<128x128xi1>, vector<128x128xf32>
    %119 = vector.broadcast %113 : vector<128x1xf32> to vector<128x256xf32>
    %120 = arith.cmpf oge, %104, %119 : vector<128x256xf32>
    %cst_37 = arith.constant 0xFF800000 : f32
    %121 = vector.broadcast %cst_37 : f32 to vector<128x256xf32>
    %122 = arith.select %120, %121, %104 : vector<128x256xi1>, vector<128x256xf32>
    %123 = vector.broadcast %113 : vector<128x1xf32> to vector<128x128xf32>
    %124 = arith.cmpf oge, %108, %123 : vector<128x128xf32>
    %cst_38 = arith.constant 0xFF800000 : f32
    %125 = vector.broadcast %cst_38 : f32 to vector<128x128xf32>
    %126 = arith.select %124, %125, %108 : vector<128x128xi1>, vector<128x128xf32>
    %cst_39 = arith.constant dense<0xFF800000> : vector<128xf32>
    %127 = vector.multi_reduction <maximumf>, %122, %cst_39 [1] : vector<128x256xf32> to vector<128xf32>
    %128 = vector.shape_cast %127 : vector<128xf32> to vector<128x1xf32>
    %cst_40 = arith.constant dense<0xFF800000> : vector<128xf32>
    %129 = vector.multi_reduction <maximumf>, %126, %cst_40 [1] : vector<128x128xf32> to vector<128xf32>
    %130 = vector.shape_cast %129 : vector<128xf32> to vector<128x1xf32>
    %131 = arith.maximumf %128, %130 : vector<128x1xf32>
    %c6_i32 = arith.constant 6 : i32
    %132 = vector.broadcast %c6_i32 : i32 to vector<128x128xi32>
    %133 = arith.cmpi eq, %17, %132 : vector<128x128xi32>
    %134 = vector.shape_cast %131 : vector<128x1xf32> to vector<128x1xf32>
    %135 = vector.broadcast %134 : vector<128x1xf32> to vector<128x128xf32>
    %136 = arith.select %133, %135, %118 : vector<128x128xi1>, vector<128x128xf32>
    %137 = vector.broadcast %131 : vector<128x1xf32> to vector<128x256xf32>
    %138 = arith.cmpf oge, %122, %137 : vector<128x256xf32>
    %cst_41 = arith.constant 0xFF800000 : f32
    %139 = vector.broadcast %cst_41 : f32 to vector<128x256xf32>
    %140 = arith.select %138, %139, %122 : vector<128x256xi1>, vector<128x256xf32>
    %141 = vector.broadcast %131 : vector<128x1xf32> to vector<128x128xf32>
    %142 = arith.cmpf oge, %126, %141 : vector<128x128xf32>
    %cst_42 = arith.constant 0xFF800000 : f32
    %143 = vector.broadcast %cst_42 : f32 to vector<128x128xf32>
    %144 = arith.select %142, %143, %126 : vector<128x128xi1>, vector<128x128xf32>
    %cst_43 = arith.constant dense<0xFF800000> : vector<128xf32>
    %145 = vector.multi_reduction <maximumf>, %140, %cst_43 [1] : vector<128x256xf32> to vector<128xf32>
    %146 = vector.shape_cast %145 : vector<128xf32> to vector<128x1xf32>
    %cst_44 = arith.constant dense<0xFF800000> : vector<128xf32>
    %147 = vector.multi_reduction <maximumf>, %144, %cst_44 [1] : vector<128x128xf32> to vector<128xf32>
    %148 = vector.shape_cast %147 : vector<128xf32> to vector<128x1xf32>
    %149 = arith.maximumf %146, %148 : vector<128x1xf32>
    %c7_i32 = arith.constant 7 : i32
    %150 = vector.broadcast %c7_i32 : i32 to vector<128x128xi32>
    %151 = arith.cmpi eq, %17, %150 : vector<128x128xi32>
    %152 = vector.shape_cast %149 : vector<128x1xf32> to vector<128x1xf32>
    %153 = vector.broadcast %152 : vector<128x1xf32> to vector<128x128xf32>
    %154 = arith.select %151, %153, %136 : vector<128x128xi1>, vector<128x128xf32>
    %c0_45 = arith.constant 0 : index
    %c0_46 = arith.constant 0 : index
    %155 = vector.load %arg8[%c0_45, %c0_46] : memref<128x128xf32, #tpu.memory_space<vmem>>, vector<128x128xf32>
    tpu.vector_store %arg8[%c0_45, %c0_46], %154 {strides = array<i32>} : memref<128x128xf32, #tpu.memory_space<vmem>>, vector<128x128xf32>,
    %c3_i32_47 = arith.constant 3 : i32
    %156 = arith.cmpi eq, %arg1, %c3_i32_47 : i32
    %157 = arith.extui %156 : i1 to i32
    %c0_i32_48 = arith.constant 0 : i32
    %158 = arith.cmpi ne, %157, %c0_i32_48 : i32
    scf.if %158 {
      %159 = vector.shape_cast %149 : vector<128x1xf32> to vector<128x1xf32>
      %160 = vector.broadcast %159 : vector<128x1xf32> to vector<128x128xf32>
      %c0_49 = arith.constant 0 : index
      %c0_50 = arith.constant 0 : index
      %161 = vector.load %arg7[%c0_49, %c0_50] : memref<128x128xf32, #tpu.memory_space<vmem>>, vector<128x128xf32>
      tpu.vector_store %arg7[%c0_49, %c0_50], %160 {strides = array<i32>} : memref<128x128xf32, #tpu.memory_space<vmem>>, vector<128x128xf32>,
    } else {
    }
    return
  }
  func.func @transform_0(%arg0: i32, %arg1: i32) -> (i32, i32) {
    %c0_i32 = arith.constant 0 : i32
    %c0_i32_0 = arith.constant 0 : i32
    return %arg0, %c0_i32 : i32, i32
  }
  func.func @transform_1(%arg0: i32, %arg1: i32) -> (i32, i32) {
    %c0_i32 = arith.constant 0 : i32
    %c0_i32_0 = arith.constant 0 : i32
    %c0_i32_1 = arith.constant 0 : i32
    return %c0_i32, %c0_i32_0 : i32, i32
  }
  func.func @transform_2(%arg0: i32, %arg1: i32) -> (i32, i32) {
    %c0_i32 = arith.constant 0 : i32
    %c0_i32_0 = arith.constant 0 : i32
    return %c0_i32, %arg1 : i32, i32
  }
  func.func @transform_3(%arg0: i32, %arg1: i32) -> (i32, i32) {
    %c0_i32 = arith.constant 0 : i32
    %c0_i32_0 = arith.constant 0 : i32
    return %c0_i32, %arg1 : i32, i32
  }
  func.func @transform_4(%arg0: i32, %arg1: i32) -> (i32, i32) {
    %c0_i32 = arith.constant 0 : i32
    return %arg0, %arg1 : i32, i32
  }
  func.func @transform_5(%arg0: i32, %arg1: i32) -> (i32, i32) {
    %c0_i32 = arith.constant 0 : i32
    %c0_i32_0 = arith.constant 0 : i32
    return %arg0, %c0_i32 : i32, i32
  }
}

module attributes {stable_mosaic.version = 11 : i64} {
  func.func @_decode_kernel(%arg0: i32, %arg1: i32, %arg2: memref<128x256xf32, #tpu.memory_space<vmem>>, %arg3: memref<128x128xf32, #tpu.memory_space<vmem>>, %arg4: memref<256x256xbf16, #tpu.memory_space<vmem>>, %arg5: memref<1x256xf32, #tpu.memory_space<vmem>>, %arg6: memref<128x256xf32, #tpu.memory_space<vmem>>) attributes {dimension_semantics = [#tpu.dimension_semantics<parallel>, #tpu.dimension_semantics<arbitrary>], iteration_bounds = array<i64: 2, 4>, scalar_prefetch = 0 : i64, scratch_operands = 0 : i64, tpu.core_type = #tpu.core_type<tc>, window_params = [{transform_indices = @transform_0, window_bounds = array<i64: 128, 256>}, {transform_indices = @transform_1, window_bounds = array<i64: 128, 128>}, {transform_indices = @transform_2, window_bounds = array<i64: 256, 256>}, {pipeline_mode = #tpu.pipeline_mode<synchronous>, transform_indices = @transform_3, window_bounds = array<i64: 1, 256>}, {transform_indices = @transform_4, window_bounds = array<i64: 128, 256>}]} {
    %c0_i32 = arith.constant 0 : i32
    %0 = arith.cmpi eq, %arg1, %c0_i32 : i32
    %1 = arith.extui %0 : i1 to i32
    %c0_i32_0 = arith.constant 0 : i32
    %2 = arith.cmpi ne, %1, %c0_i32_0 : i32
    scf.if %2 {
      %c0_12 = arith.constant 0 : index
      %c0_13 = arith.constant 0 : index
      %17 = vector.load %arg5[%c0_12, %c0_13] : memref<1x256xf32, #tpu.memory_space<vmem>>, vector<1x256xf32>
      %18 = vector.shape_cast %17 : vector<1x256xf32> to vector<1x256xf32>
      %19 = vector.broadcast %18 : vector<1x256xf32> to vector<128x256xf32>
      %c0_14 = arith.constant 0 : index
      %c0_15 = arith.constant 0 : index
      %20 = vector.load %arg6[%c0_14, %c0_15] : memref<128x256xf32, #tpu.memory_space<vmem>>, vector<128x256xf32>
      tpu.vector_store %arg6[%c0_14, %c0_15], %19 {strides = array<i32>} : memref<128x256xf32, #tpu.memory_space<vmem>>, vector<128x256xf32>,
    } else {
    }
    %c0 = arith.constant 0 : index
    %c0_1 = arith.constant 0 : index
    %3 = vector.load %arg2[%c0, %c0_1] : memref<128x256xf32, #tpu.memory_space<vmem>>, vector<128x256xf32>
    %cst = arith.constant 0.000000e+00 : f32
    %4 = vector.broadcast %cst : f32 to vector<128x256xf32>
    %5 = arith.maximumf %3, %4 : vector<128x256xf32>
    %c0_2 = arith.constant 0 : index
    %c0_3 = arith.constant 0 : index
    %6 = vector.load %arg3[%c0_2, %c0_3] : memref<128x128xf32, #tpu.memory_space<vmem>>, vector<128x1xf32>
    %7 = vector.broadcast %6 : vector<128x1xf32> to vector<128x256xf32>
    %8 = arith.cmpf oge, %5, %7 : vector<128x256xf32>
    %cst_4 = arith.constant 0.000000e+00 : f32
    %9 = vector.broadcast %cst_4 : f32 to vector<128x256xf32>
    %10 = arith.select %8, %5, %9 : vector<128x256xi1>, vector<128x256xf32>
    %c0_5 = arith.constant 0 : index
    %c0_6 = arith.constant 0 : index
    %11 = vector.load %arg6[%c0_5, %c0_6] : memref<128x256xf32, #tpu.memory_space<vmem>>, vector<128x256xf32>
    %12 = arith.truncf %10 : vector<128x256xf32> to vector<128x256xbf16>
    %c0_7 = arith.constant 0 : index
    %c0_8 = arith.constant 0 : index
    %13 = vector.load %arg4[%c0_7, %c0_8] : memref<256x256xbf16, #tpu.memory_space<vmem>>, vector<256x256xbf16>
    %cst_9 = arith.constant dense<0.000000e+00> : vector<128x256xf32>
    %14 = tpu.matmul %12, %13, %cst_9 {dimension_numbers = #tpu.dot_dimension_numbers<[1], [0], [0], [1], [0, 0, 1, 1], [], []>} : vector<128x256xbf16>, vector<256x256xbf16>, vector<128x256xf32> -> vector<128x256xf32>
    %15 = arith.addf %11, %14 : vector<128x256xf32>
    %c0_10 = arith.constant 0 : index
    %c0_11 = arith.constant 0 : index
    %16 = vector.load %arg6[%c0_10, %c0_11] : memref<128x256xf32, #tpu.memory_space<vmem>>, vector<128x256xf32>
    tpu.vector_store %arg6[%c0_10, %c0_11], %15 {strides = array<i32>} : memref<128x256xf32, #tpu.memory_space<vmem>>, vector<128x256xf32>,
    return
  }
  func.func @transform_0(%arg0: i32, %arg1: i32) -> (i32, i32) {
    %c0_i32 = arith.constant 0 : i32
    return %arg0, %arg1 : i32, i32
  }
  func.func @transform_1(%arg0: i32, %arg1: i32) -> (i32, i32) {
    %c0_i32 = arith.constant 0 : i32
    %c0_i32_0 = arith.constant 0 : i32
    return %arg0, %c0_i32 : i32, i32
  }
  func.func @transform_2(%arg0: i32, %arg1: i32) -> (i32, i32) {
    %c0_i32 = arith.constant 0 : i32
    %c0_i32_0 = arith.constant 0 : i32
    return %arg1, %c0_i32 : i32, i32
  }
  func.func @transform_3(%arg0: i32, %arg1: i32) -> (i32, i32) {
    %c0_i32 = arith.constant 0 : i32
    %c0_i32_0 = arith.constant 0 : i32
    %c0_i32_1 = arith.constant 0 : i32
    return %c0_i32, %c0_i32_0 : i32, i32
  }
  func.func @transform_4(%arg0: i32, %arg1: i32) -> (i32, i32) {
    %c0_i32 = arith.constant 0 : i32
    %c0_i32_0 = arith.constant 0 : i32
    return %arg0, %c0_i32 : i32, i32
  }
}

</mosaic_0001>

<bundles_post_ra>
// kernel: sparse_autoencoder_forward.3
= control target key start
LH: loop header
LB: loop body
LE: loop exit
PB: predicated region body
PF: predicated region fallthrough
CT: control target
= control target key end

     0   :  { %s1467_s15 = smov 0   ;;  %s1469_s16 = smov 0   ;;  %s1912_s0 = inlined_call_operand.vmem [shape: f32[256,1024], index: 0, kind: input, shape index: {}]   ;;  %s1913_s1 = inlined_call_operand.vmem [shape: f32[256,128], index: 1, kind: input, shape index: {}]   ;;  %s1914_s2 = inlined_call_operand.vmem [shape: bf16[1024,256], index: 2, kind: input, shape index: {}]   ;;  %s1915_s3 = inlined_call_operand.vmem [shape: f32[1,256], index: 3, kind: input, shape index: {}]   ;;  %s1916_s4 = inlined_call_operand.vmem [shape: f32[256,256], index: 4, kind: output, shape index: {}]  }
   0x1   :  { %s1471_s17 = smov 0   ;;  %s1473_s18 = smov 0  }
   0x2   :  { %s1475_s19 = smov 0   ;;  %s1477_s20 = smov 0  }
   0x3   :  { %s1479_s21 = smov 0  }
   0x4 LB: > { %s23_s22 = sadd.s32 1, %s1431_s19  ;;  %s26_s23 = sadd.s32 1, %s1435_s20  ;;  %s1439_s21 = sphi %s1479_s21, %s14_s21   ;;  %s1435_s20 = sphi %s1477_s20, %s1950_s20   ;;  %s1431_s19 = sphi %s1475_s19, %s1949_s19   ;;  %s1427_s18 = sphi %s1473_s18, %s1948_s18   ;;  %s1423_s17 = sphi %s1471_s17, %s1947_s17   ;;  %s1419_s16 = sphi %s1469_s16, %s1946_s16   ;;  %s1415_s15 = sphi %s1467_s15, %s1945_s15  }
   0x5   : > { %p24_p0 = scmp.ge.s32.totalorder %s23_s22, 4  ;;  %p42_p1 = scmp.ne.s32.totalorder %s1419_s16, %s1415_s15 }
   0x6   : > { %p43_p2 = scmp.eq.s32.totalorder %s1439_s21, 0  ;;  %s35_s27 = sadd.s32 1, %s1419_s16 }
   0x7   : > { %s1952_s22 = smov (%p24_p0, %s23_s22), 0  ;;  %s1954_s23 = smov (!%p24_p0, %s26_s23), %s1435_s20 }
   0x8   : > { %p44_p3 = por %p43_p2, %p42_p1  ;;  %p28_p4 = scmp.ge.s32.totalorder %s1954_s23, 2 }
   0x9   : > { %s31_s24 = ssub.s32 %s1431_s19, %s1952_s22  ;;  %p1144_p6 = scmp.ge.s32.totalorder %s1439_s21, 8 }
   0xa   : > { %s1956_s23 = smov (%p28_p4, %s1954_s23), 0 }
   0xb   : > { %s30_s25 = ssub.s32 %s1435_s20, %s1956_s23  ;;  %170 = sbr.rel (%p1144_p6) target bundleno = 41 (0x29), region = 20 }
   0xc   : > { %s32_s26 = sor.u32 %s31_s24, %s30_s25 }
   0xd   : > { %p33_p5 = scmp.eq.s32.totalorder %s32_s26, 0 }
   0xf   : > { %s1518_s28 = scalar_select %p33_p5, %s1419_s16, %s35_s27  }
  0x12   : > { %173 = sbr.rel (!%p44_p3) target bundleno = 41 (0x29), region = 24  ;;  %s175_s29 = sand.u32 (%p44_p3), 1, %s1419_s16  }
  0x13   : > { %s1147_s30 = sshll.u32 (%p44_p3), %s1431_s19, 1  ;;  %s1145_s5 = sshll.u32 (%p44_p3), %s175_s29, 8 }
  0x14   : > { %s1243_s6 = sshll.u32 (%p44_p3), %s1435_s20, 7  ;;  %s1532_s12 = scalar_lea.vmem (%p44_p3), [#allocation2], %s1145_s5 }
  0x15   : > { %s181_s7 = sadd.s32 (%p44_p3), %s1243_s6, %s1147_s30 }
  0x16   : > { %s1149_s8 = sshll.u32 (%p44_p3), %s181_s7, 3 }
  0x17   : > { %s1527_s11 = scalar_lea.vmem (%p44_p3), %s1912_s0, %s1149_s8 }
  0x18   : > { %v196_v0 = vld [vmem:[%s1527_s11] sm:$0xff] (%p44_p3)  ;;  %v198_v1 = vld [vmem:[%s1527_s11 + $0x8] sm:$0xff] (%p44_p3) }
  0x19   : > { %v200_v2 = vld [vmem:[%s1527_s11 + $0x40] sm:$0xff]  ;;  %197 = vst [vmem:[%s1532_s12] sm:$0xff] %v196_v0  ;;  %199 = vst [vmem:[%s1532_s12 + $0x8] sm:$0xff] %v198_v1  ;;  %v202_v3 = vld [vmem:[%s1527_s11 + $0x48] sm:$0xff] }
  0x1a   : > { %201 = vst [vmem:[%s1532_s12 + $0x10] sm:$0xff] %v200_v2  ;;  %v204_v4 = vld [vmem:[%s1527_s11 + $0x80] sm:$0xff]  ;;  %v206_v5 = vld [vmem:[%s1527_s11 + $0x88] sm:$0xff]  ;;  %203 = vst [vmem:[%s1532_s12 + $0x18] sm:$0xff] %v202_v3 }
  0x1b   : > { %205 = vst [vmem:[%s1532_s12 + $0x20] sm:$0xff] %v204_v4  ;;  %207 = vst [vmem:[%s1532_s12 + $0x28] sm:$0xff] %v206_v5  ;;  %v208_v6 = vld [vmem:[%s1527_s11 + $0xc0] sm:$0xff]  ;;  %v210_v7 = vld [vmem:[%s1527_s11 + $0xc8] sm:$0xff] }
  0x1c   : > { %v212_v8 = vld [vmem:[%s1527_s11 + $0x100] sm:$0xff]  ;;  %209 = vst [vmem:[%s1532_s12 + $0x30] sm:$0xff] %v208_v6  ;;  %211 = vst [vmem:[%s1532_s12 + $0x38] sm:$0xff] %v210_v7  ;;  %v214_v9 = vld [vmem:[%s1527_s11 + $0x108] sm:$0xff] }
  0x1d   : > { %213 = vst [vmem:[%s1532_s12 + $0x40] sm:$0xff] %v212_v8  ;;  %v216_v10 = vld [vmem:[%s1527_s11 + $0x140] sm:$0xff]  ;;  %v218_v11 = vld [vmem:[%s1527_s11 + $0x148] sm:$0xff]  ;;  %215 = vst [vmem:[%s1532_s12 + $0x48] sm:$0xff] %v214_v9 }
  0x1e   : > { %217 = vst [vmem:[%s1532_s12 + $0x50] sm:$0xff] %v216_v10  ;;  %219 = vst [vmem:[%s1532_s12 + $0x58] sm:$0xff] %v218_v11  ;;  %v220_v12 = vld [vmem:[%s1527_s11 + $0x180] sm:$0xff]  ;;  %v222_v13 = vld [vmem:[%s1527_s11 + $0x188] sm:$0xff] }
  0x1f   : > { %v224_v14 = vld [vmem:[%s1527_s11 + $0x1c0] sm:$0xff]  ;;  %221 = vst [vmem:[%s1532_s12 + $0x60] sm:$0xff] %v220_v12  ;;  %223 = vst [vmem:[%s1532_s12 + $0x68] sm:$0xff] %v222_v13  ;;  %v226_v15 = vld [vmem:[%s1527_s11 + $0x1c8] sm:$0xff] }
  0x20   : > { %225 = vst [vmem:[%s1532_s12 + $0x70] sm:$0xff] %v224_v14  ;;  %v228_v16 = vld [vmem:[%s1527_s11 + $0x200] sm:$0xff]  ;;  %v230_v17 = vld [vmem:[%s1527_s11 + $0x208] sm:$0xff]  ;;  %227 = vst [vmem:[%s1532_s12 + $0x78] sm:$0xff] %v226_v15 }
  0x21   : > { %229 = vst [vmem:[%s1532_s12 + $0x80] sm:$0xff] %v228_v16  ;;  %231 = vst [vmem:[%s1532_s12 + $0x88] sm:$0xff] %v230_v17  ;;  %v232_v18 = vld [vmem:[%s1527_s11 + $0x240] sm:$0xff]  ;;  %v234_v19 = vld [vmem:[%s1527_s11 + $0x248] sm:$0xff] }
  0x22   : > { %v236_v20 = vld [vmem:[%s1527_s11 + $0x280] sm:$0xff]  ;;  %233 = vst [vmem:[%s1532_s12 + $0x90] sm:$0xff] %v232_v18  ;;  %235 = vst [vmem:[%s1532_s12 + $0x98] sm:$0xff] %v234_v19  ;;  %v238_v21 = vld [vmem:[%s1527_s11 + $0x288] sm:$0xff] }
  0x23   : > { %237 = vst [vmem:[%s1532_s12 + $0xa0] sm:$0xff] %v236_v20  ;;  %v240_v22 = vld [vmem:[%s1527_s11 + $0x2c0] sm:$0xff]  ;;  %v242_v23 = vld [vmem:[%s1527_s11 + $0x2c8] sm:$0xff]  ;;  %239 = vst [vmem:[%s1532_s12 + $0xa8] sm:$0xff] %v238_v21 }
  0x24   : > { %241 = vst [vmem:[%s1532_s12 + $0xb0] sm:$0xff] %v240_v22  ;;  %243 = vst [vmem:[%s1532_s12 + $0xb8] sm:$0xff] %v242_v23  ;;  %v244_v24 = vld [vmem:[%s1527_s11 + $0x300] sm:$0xff]  ;;  %v246_v25 = vld [vmem:[%s1527_s11 + $0x308] sm:$0xff] }
  0x25   : > { %v248_v26 = vld [vmem:[%s1527_s11 + $0x340] sm:$0xff]  ;;  %245 = vst [vmem:[%s1532_s12 + $0xc0] sm:$0xff] %v244_v24  ;;  %247 = vst [vmem:[%s1532_s12 + $0xc8] sm:$0xff] %v246_v25  ;;  %v250_v27 = vld [vmem:[%s1527_s11 + $0x348] sm:$0xff] }
  0x26   : > { %249 = vst [vmem:[%s1532_s12 + $0xd0] sm:$0xff] %v248_v26  ;;  %v252_v28 = vld [vmem:[%s1527_s11 + $0x380] sm:$0xff]  ;;  %v254_v29 = vld [vmem:[%s1527_s11 + $0x388] sm:$0xff]  ;;  %251 = vst [vmem:[%s1532_s12 + $0xd8] sm:$0xff] %v250_v27 }
  0x27   : > { %253 = vst [vmem:[%s1532_s12 + $0xe0] sm:$0xff] %v252_v28  ;;  %255 = vst [vmem:[%s1532_s12 + $0xe8] sm:$0xff] %v254_v29  ;;  %v256_v30 = vld [vmem:[%s1527_s11 + $0x3c0] sm:$0xff]  ;;  %v258_v31 = vld [vmem:[%s1527_s11 + $0x3c8] sm:$0xff] }
  0x28   : > { %257 = vst [vmem:[%s1532_s12 + $0xf0] sm:$0xff] %v256_v30  ;;  %259 = vst [vmem:[%s1532_s12 + $0xf8] sm:$0xff] %v258_v31 }
  0x29 PF: > { %p1150_p7 = scmp.ge.s32.totalorder %s1439_s21, 1  ;;  %p283_p8 = scmp.lt.s32.totalorder %s1439_s21, 9 }
  0x2b   : > { %p284_p9 = pnand %p1150_p7, %p283_p8 }
  0x2c   : > { %s290_s13 = sand.u32 (!%p284_p9), 1, %s1415_s15   ;;  %s1152_s14 = sshll.u32 (!%p284_p9), %s1427_s18, 4 }
  0x2d   : > { %287 = sbr.rel (%p284_p9) target bundleno = 459 (0x1cb), region = 55  ;;  %s1151_s24 = sshll.u32 (!%p284_p9), %s290_s13, 8 }
  0x2e   : > { %p330_p10 = scmp.lt.s32.totalorder (!%p284_p9), %s1152_s14, 31  ;;  %s1154_s25 = sshll.u32 (!%p284_p9), %s1423_s17, 5 }
  0x2f   : > { %p336_p11 = scmp.lt.s32.totalorder (!%p284_p9), %s1154_s25, 127  ;;  %s1615_s11 = scalar_lea.vmem (!%p284_p9), [#allocation2], %s1151_s24 }
  0x30   : > { %p1160_p12 = scmp.ne.s32.totalorder (!%p284_p9), %s1423_s17, 0 }
  0x34   : > { %s1958_s14 = smov (!%p330_p10, %s1152_s14), 31  ;;  %s1960_s25 = smov (!%p336_p11, %s1154_s25), 127 }
  0x35   : > { %s1153_s26 = sshll.u32 %s1958_s14, 3  ;;  %s1245_s27 = sshll.u32 %s1958_s14, 4  ;;  %v355_v32 = vlaneseq (!%p1160_p12)  ;;  %v353_v34 = vld [vmem:[%s1915_s3] sm:$0x3] (!%p1160_p12) }
  0x36   : > { %s1603_s5 = scalar_lea.vmem %s1913_s1, %s1153_s26  ;;  %s1608_s8 = scalar_lea.vmem %s1916_s4, %s1245_s27 }
  0x37   : > { %s1244_s15 = sshll.u32 %s1960_s25, 3  ;;  %352 = sbr.rel (%p1160_p12) target bundleno = 77 (0x4d), region = 63  ;;  %v356_v33 = vshrl.u32 (!%p1160_p12), %v355_v32, 7 }
  0x38   : > { %s1613_s10 = scalar_lea.vmem %s1914_s2, %s1244_s15 }
  0x39   : > { %v357_v35 = vsub.s32 (!%p1160_p12), 0, %v356_v33  ;;  %v361_v36 = vsub.s32 (!%p1160_p12), 1, %v356_v33 }
  0x3b   : > { %v358_v37 = vrot.slane (!%p1160_p12), %v353_v34, %v357_v35  ;;  %v362_v38 = vrot.slane (!%p1160_p12), %v353_v34, %v361_v36 }
  0x3d   : > { %365 = vst [vmem:[%s1608_s8] sm:$0xff] (!%p1160_p12), %v358_v37  ;;  %367 = vst [vmem:[%s1608_s8 + $0x10] sm:$0xff] (!%p1160_p12), %v358_v37 }
  0x3e   : > { %369 = vst [vmem:[%s1608_s8 + $0x20] sm:$0xff] %v358_v37  ;;  %371 = vst [vmem:[%s1608_s8 + $0x30] sm:$0xff] %v358_v37 }
  0x3f   : > { %373 = vst [vmem:[%s1608_s8 + $0x40] sm:$0xff] %v358_v37  ;;  %375 = vst [vmem:[%s1608_s8 + $0x50] sm:$0xff] %v358_v37 }
  0x40   : > { %377 = vst [vmem:[%s1608_s8 + $0x60] sm:$0xff] %v358_v37  ;;  %379 = vst [vmem:[%s1608_s8 + $0x70] sm:$0xff] %v358_v37 }
  0x41   : > { %381 = vst [vmem:[%s1608_s8 + $0x80] sm:$0xff] %v358_v37  ;;  %383 = vst [vmem:[%s1608_s8 + $0x90] sm:$0xff] %v358_v37 }
  0x42   : > { %385 = vst [vmem:[%s1608_s8 + $0xa0] sm:$0xff] %v358_v37  ;;  %387 = vst [vmem:[%s1608_s8 + $0xb0] sm:$0xff] %v358_v37 }
  0x43   : > { %389 = vst [vmem:[%s1608_s8 + $0xc0] sm:$0xff] %v358_v37  ;;  %391 = vst [vmem:[%s1608_s8 + $0xd0] sm:$0xff] %v358_v37 }
  0x44   : > { %393 = vst [vmem:[%s1608_s8 + $0xe0] sm:$0xff] %v358_v37  ;;  %395 = vst [vmem:[%s1608_s8 + $0xf0] sm:$0xff] %v358_v37 }
  0x45   : > { %366 = vst [vmem:[%s1608_s8 + $0x8] sm:$0xff] %v362_v38  ;;  %368 = vst [vmem:[%s1608_s8 + $0x18] sm:$0xff] %v362_v38 }
  0x46   : > { %370 = vst [vmem:[%s1608_s8 + $0x28] sm:$0xff] %v362_v38  ;;  %372 = vst [vmem:[%s1608_s8 + $0x38] sm:$0xff] %v362_v38 }
  0x47   : > { %374 = vst [vmem:[%s1608_s8 + $0x48] sm:$0xff] %v362_v38  ;;  %376 = vst [vmem:[%s1608_s8 + $0x58] sm:$0xff] %v362_v38 }
  0x48   : > { %378 = vst [vmem:[%s1608_s8 + $0x68] sm:$0xff] %v362_v38  ;;  %380 = vst [vmem:[%s1608_s8 + $0x78] sm:$0xff] %v362_v38 }
  0x49   : > { %382 = vst [vmem:[%s1608_s8 + $0x88] sm:$0xff] %v362_v38  ;;  %384 = vst [vmem:[%s1608_s8 + $0x98] sm:$0xff] %v362_v38 }
  0x4a   : > { %386 = vst [vmem:[%s1608_s8 + $0xa8] sm:$0xff] %v362_v38  ;;  %388 = vst [vmem:[%s1608_s8 + $0xb8] sm:$0xff] %v362_v38 }
  0x4b   : > { %390 = vst [vmem:[%s1608_s8 + $0xc8] sm:$0xff] %v362_v38  ;;  %392 = vst [vmem:[%s1608_s8 + $0xd8] sm:$0xff] %v362_v38 }
  0x4c   : > { %394 = vst [vmem:[%s1608_s8 + $0xe8] sm:$0xff] %v362_v38  ;;  %396 = vst [vmem:[%s1608_s8 + $0xf8] sm:$0xff] %v362_v38 }
  0x4d PF: > { %v469_v39 = vld [vmem:[%s1603_s5 + $0x40] sm:$0xff]  ;;  %v1441_v41 = vmov 0   ;;  %v470_v42 = vld [vmem:[%s1603_s5 + $0x48] sm:$0xff]  ;;  %v464_v44 = vld [vmem:[%s1603_s5 + $0x18] sm:$0xff] }
  0x4e   : > { %v461_v40 = vld [vmem:[%s1603_s5] sm:$0xff]  ;;  %1336 = vset.pattern.permute.xlu1 %v1441_v41  ;;  %1335 = vset.pattern.permute.xlu0 %v1441_v41  ;;  %v462_v43 = vld [vmem:[%s1603_s5 + $0x8] sm:$0xff]  ;;  %v463_v47 = vld [vmem:[%s1603_s5 + $0x10] sm:$0xff] }
  0x4f   : > { %519 = vperm.xlu1 %1336, %v469_v39   ;;  %479 = vperm.xlu0 %1335, %v461_v40   ;;  %v1337_v45 = vld [vmem:[%s1613_s10 + $0x4] ss:$8 sps:$4 sm:$0xff]   ;;  %v1339_v46 = vld [vmem:[%s1613_s10] ss:$8 sps:$4 sm:$0xff]   ;;  %v1340_v48 = vld [vmem:[%s1613_s10 + $0x14] ss:$8 sps:$4 sm:$0xff]  }
  0x50   : > { %861 = vmatprep.subr.bf16.mxu0 %v1337_v45  ;;  %1246 = vmatprep.subr.bf16.mxu1 %v1337_v45  ;;  %v1342_v49 = vld [vmem:[%s1613_s10 + $0x10] ss:$8 sps:$4 sm:$0xff]   ;;  %v1343_v52 = vld [vmem:[%s1613_s10 + $0x24] ss:$8 sps:$4 sm:$0xff]   ;;  %v1345_v53 = vld [vmem:[%s1613_s10 + $0x20] ss:$8 sps:$4 sm:$0xff]  }
  0x51   : > { %862 = vmatpush1.bf16.msra.mxu0 %v1339_v46  ;;  %1262 = vmatpush1.bf16.msra.mxu1 %v1339_v46  ;;  %v472_v50 = vld [vmem:[%s1603_s5 + $0x58] sm:$0xff]  ;;  %v471_v51 = vld [vmem:[%s1603_s5 + $0x50] sm:$0xff]  ;;  %v466_v54 = vld [vmem:[%s1603_s5 + $0x28] sm:$0xff] }
  0x52   : > { %863 = vmatprep.subr.bf16.mxu0 %v1340_v48  ;;  %1247 = vmatprep.subr.bf16.mxu1 %v1340_v48  ;;  %v465_v55 = vld [vmem:[%s1603_s5 + $0x20] sm:$0xff]  ;;  %v1346_v56 = vld [vmem:[%s1613_s10 + $0x34] ss:$8 sps:$4 sm:$0xff]   ;;  %v1348_v57 = vld [vmem:[%s1613_s10 + $0x30] ss:$8 sps:$4 sm:$0xff]  }
  0x53   : > { %524 = vperm.xlu1 %1336, %v470_v42   ;;  %484 = vperm.xlu0 %1335, %v462_v43   ;;  %v474_v58 = vld [vmem:[%s1603_s5 + $0x68] sm:$0xff]  ;;  %v473_v59 = vld [vmem:[%s1603_s5 + $0x60] sm:$0xff]  ;;  %v468_v62 = vld [vmem:[%s1603_s5 + $0x38] sm:$0xff] }
  0x54   : > { %v1349_v60 = vld [vmem:[%s1613_s10 + $0x44] ss:$8 sps:$4 sm:$0xff]   ;;  %v1351_v61 = vld [vmem:[%s1613_s10 + $0x40] ss:$8 sps:$4 sm:$0xff]   ;;  %v467_v63 = vld [vmem:[%s1603_s5 + $0x30] sm:$0xff] }
  0x55   : > { %864 = vmatpush1.bf16.msra.mxu0 %v1342_v49  ;;  %1263 = vmatpush1.bf16.msra.mxu1 %v1342_v49  ;;  %v1352_v0 = vld [vmem:[%s1613_s10 + $0x54] ss:$8 sps:$4 sm:$0xff]   ;;  %v1354_v1 = vld [vmem:[%s1613_s10 + $0x50] ss:$8 sps:$4 sm:$0xff]   ;;  %v1355_v4 = vld [vmem:[%s1613_s10 + $0x64] ss:$8 sps:$4 sm:$0xff]  }
  0x56   : > { %865 = vmatprep.subr.bf16.mxu0 %v1343_v52  ;;  %1248 = vmatprep.subr.bf16.mxu1 %v1343_v52  ;;  %v476_v2 = vld [vmem:[%s1603_s5 + $0x78] sm:$0xff]  ;;  %v475_v3 = vld [vmem:[%s1603_s5 + $0x70] sm:$0xff]  ;;  %v1357_v5 = vld [vmem:[%s1613_s10 + $0x60] ss:$8 sps:$4 sm:$0xff]  }
  0x57   : > { %494 = vperm.xlu1 %1336, %v464_v44   ;;  %489 = vperm.xlu0 %1335, %v463_v47   ;;  %v1358_v6 = vld [vmem:[%s1613_s10 + $0x74] ss:$8 sps:$4 sm:$0xff]   ;;  %v1360_v7 = vld [vmem:[%s1613_s10 + $0x70] ss:$8 sps:$4 sm:$0xff]   ;;  %v1361_v8 = vld [vmem:[%s1613_s10 + $0x84] ss:$8 sps:$4 sm:$0xff]  }
  0x58   : > { %v1363_v9 = vld [vmem:[%s1613_s10 + $0x80] ss:$8 sps:$4 sm:$0xff]   ;;  %v1364_v10 = vld [vmem:[%s1613_s10 + $0x94] ss:$8 sps:$4 sm:$0xff]   ;;  %v1366_v11 = vld [vmem:[%s1613_s10 + $0x90] ss:$8 sps:$4 sm:$0xff]  }
  0x59   : > { %866 = vmatpush1.bf16.msra.mxu0 %v1345_v53  ;;  %1264 = vmatpush1.bf16.msra.mxu1 %v1345_v53  ;;  %v1367_v12 = vld [vmem:[%s1613_s10 + $0xa4] ss:$8 sps:$4 sm:$0xff]   ;;  %v1369_v13 = vld [vmem:[%s1613_s10 + $0xa0] ss:$8 sps:$4 sm:$0xff]   ;;  %v1370_v14 = vld [vmem:[%s1613_s10 + $0xb4] ss:$8 sps:$4 sm:$0xff]  }
  0x5a   : > { %867 = vmatprep.subr.bf16.mxu0 %v1346_v56  ;;  %1249 = vmatprep.subr.bf16.mxu1 %v1346_v56  ;;  %v1372_v15 = vld [vmem:[%s1613_s10 + $0xb0] ss:$8 sps:$4 sm:$0xff]   ;;  %v1373_v16 = vld [vmem:[%s1613_s10 + $0xc4] ss:$8 sps:$4 sm:$0xff]   ;;  %v1375_v17 = vld [vmem:[%s1613_s10 + $0xc0] ss:$8 sps:$4 sm:$0xff]  }
  0x5b   : > { %534 = vperm.xlu1 %1336, %v472_v50   ;;  %529 = vperm.xlu0 %1335, %v471_v51   ;;  %v1376_v18 = vld [vmem:[%s1613_s10 + $0xd4] ss:$8 sps:$4 sm:$0xff]   ;;  %v1378_v19 = vld [vmem:[%s1613_s10 + $0xd0] ss:$8 sps:$4 sm:$0xff]   ;;  %v1379_v20 = vld [vmem:[%s1613_s10 + $0xe4] ss:$8 sps:$4 sm:$0xff]  }
  0x5c   : > { %v1381_v21 = vld [vmem:[%s1613_s10 + $0xe0] ss:$8 sps:$4 sm:$0xff]   ;;  %v1382_v22 = vld [vmem:[%s1613_s10 + $0xf4] ss:$8 sps:$4 sm:$0xff]   ;;  %v1384_v23 = vld [vmem:[%s1613_s10 + $0xf0] ss:$8 sps:$4 sm:$0xff]  }
  0x5d   : > { %868 = vmatpush1.bf16.msra.mxu0 %v1348_v57  ;;  %1265 = vmatpush1.bf16.msra.mxu1 %v1348_v57  ;;  %v415_v24 = vld [vmem:[%s1615_s11 + $0x90] sm:$0xff]  ;;  %v400_v25 = vld [vmem:[%s1615_s11 + $0x18] sm:$0xff]  ;;  %v413_v26 = vld [vmem:[%s1615_s11 + $0x80] sm:$0xff] }
  0x5e   : > { %869 = vmatprep.subr.bf16.mxu0 %v1349_v60  ;;  %1250 = vmatprep.subr.bf16.mxu1 %v1349_v60  ;;  %v399_v27 = vld [vmem:[%s1615_s11 + $0x10] sm:$0xff]  ;;  %v397_v28 = vld [vmem:[%s1615_s11] sm:$0xff]  ;;  %v398_v29 = vld [vmem:[%s1615_s11 + $0x8] sm:$0xff]  ;;  %v447_v33 = vmax.f32 %v415_v24, 0.0  ;;  %v432_v34 = vmax.f32 %v400_v25, 0.0  ;;  %v445_v37 = vmax.f32 %v413_v26, 0.0 }
  0x5f   : > { %504 = vperm.xlu1 %1336, %v466_v54   ;;  %499 = vperm.xlu0 %1335, %v465_v55   ;;  %v416_v30 = vld [vmem:[%s1615_s11 + $0x98] sm:$0xff]  ;;  %v402_v36 = vld [vmem:[%s1615_s11 + $0x28] sm:$0xff]  ;;  %v431_v38 = vmax.f32 %v399_v27, 0.0  ;;  %v429_v40 = vmax.f32 %v397_v28, 0.0  ;;  %v430_v41 = vmax.f32 %v398_v29, 0.0  ;;  %v419_v60 = vld [vmem:[%s1615_s11 + $0xb0] sm:$0xff] }
  0x60   : > { %v404_v35 = vld [vmem:[%s1615_s11 + $0x38] sm:$0xff]  ;;  %v414_v39 = vld [vmem:[%s1615_s11 + $0x88] sm:$0xff]  ;;  %v448_v42 = vmax.f32 %v416_v30, 0.0  ;;  %v434_v44 = vmax.f32 %v402_v36, 0.0  ;;  %v1221_v46 = vpack.c.bf16 %v447_v33, %v445_v37  ;;  %v421_v24 = vld [vmem:[%s1615_s11 + $0xc0] sm:$0xff] }
  0x61   : > { %870 = vmatpush1.bf16.msra.mxu0 %v1351_v61  ;;  %1266 = vmatpush1.bf16.msra.mxu1 %v1351_v61  ;;  %v436_v43 = vmax.f32 %v404_v35, 0.0  ;;  %v1194_v48 = vpack.c.bf16 %v432_v34, %v430_v41  ;;  %v446_v49 = vmax.f32 %v414_v39, 0.0  ;;  %v420_v50 = vld [vmem:[%s1615_s11 + $0xb8] sm:$0xff]  ;;  %v418_v51 = vld [vmem:[%s1615_s11 + $0xa8] sm:$0xff]  ;;  %v1197_v57 = vpack.c.bf16 %v431_v38, %v429_v40  ;;  %v417_v61 = vld [vmem:[%s1615_s11 + $0xa0] sm:$0xff] }
  0x62   : > { %871 = vmatprep.subr.bf16.mxu0 %v1352_v0  ;;  %1251 = vmatprep.subr.bf16.mxu1 %v1352_v0  ;;  %v407_v26 = vld [vmem:[%s1615_s11 + $0x50] sm:$0xff]  ;;  %v405_v27 = vld [vmem:[%s1615_s11 + $0x40] sm:$0xff]  ;;  %v453_v36 = vmax.f32 %v421_v24, 0.0 }
  0x63   : > { %544 = vperm.xlu1 %1336, %v474_v58   ;;  %539 = vperm.xlu0 %1335, %v473_v59   ;;  %v1218_v59 = vpack.c.bf16 %v448_v42, %v446_v49  ;;  %v1200_v0 = vpack.c.bf16 %v436_v43, %v434_v44  ;;  %v425_v52 = vld [vmem:[%s1615_s11 + $0xe0] sm:$0xff]  ;;  %v411_v54 = vld [vmem:[%s1615_s11 + $0x70] sm:$0xff] }
  0x64   : > { %v409_v55 = vld [vmem:[%s1615_s11 + $0x60] sm:$0xff] }
  0x65   : > { %872 = vmatpush1.bf16.msra.mxu0 %v1354_v1  ;;  %1267 = vmatpush1.bf16.msra.mxu1 %v1354_v1  ;;  %v452_v1 = vmax.f32 %v420_v50, 0.0 }
  0x66   : > { %873 = vmatprep.subr.bf16.mxu0 %v1355_v4  ;;  %1252 = vmatprep.subr.bf16.mxu1 %v1355_v4 }
  0x67   : > { %514 = vperm.xlu1 %1336, %v468_v62   ;;  %509 = vperm.xlu0 %1335, %v467_v63   ;;  %v403_v62 = vld [vmem:[%s1615_s11 + $0x30] sm:$0xff]  ;;  %v401_v63 = vld [vmem:[%s1615_s11 + $0x20] sm:$0xff] }
  0x69   : > { %874 = vmatpush1.bf16.msra.mxu0 %v1357_v5  ;;  %1268 = vmatpush1.bf16.msra.mxu1 %v1357_v5  ;;  %v408_v5 = vld [vmem:[%s1615_s11 + $0x58] sm:$0xff] }
  0x6a   : > { %875 = vmatprep.subr.bf16.mxu0 %v1358_v6  ;;  %1253 = vmatprep.subr.bf16.mxu1 %v1358_v6  ;;  %v406_v6 = vld [vmem:[%s1615_s11 + $0x48] sm:$0xff] }
  0x6b   : > { %554 = vperm.xlu1 %1336, %v476_v2   ;;  %549 = vperm.xlu0 %1335, %v475_v3   ;;  %v450_v2 = vmax.f32 %v418_v51, 0.0  ;;  %v427_v51 = vld [vmem:[%s1615_s11 + $0xf0] sm:$0xff] }
  0x6d   : > { %876 = vmatpush1.bf16.msra.mxu0 %v1360_v7  ;;  %1269 = vmatpush1.bf16.msra.mxu1 %v1360_v7  ;;  %v451_v7 = vmax.f32 %v419_v60, 0.0 }
  0x6e   : > { %877 = vmatprep.subr.bf16.mxu0 %v1361_v8  ;;  %1254 = vmatprep.subr.bf16.mxu1 %v1361_v8  ;;  %v449_v8 = vmax.f32 %v417_v61, 0.0  ;;  %v459_v61 = vmax.f32 %v427_v51, 0.0 }
  0x70   : > { %v1227_v25 = vpack.c.bf16 %v451_v7, %v449_v8 }
  0x71   : > { %878 = vmatpush1.bf16.msra.mxu0 %v1363_v9  ;;  %1270 = vmatpush1.bf16.msra.mxu1 %v1363_v9  ;;  %v435_v9 = vmax.f32 %v403_v62, 0.0  ;;  %v457_v62 = vmax.f32 %v425_v52, 0.0 }
  0x72   : > { %879 = vmatprep.subr.bf16.mxu0 %v1364_v10  ;;  %1255 = vmatprep.subr.bf16.mxu1 %v1364_v10  ;;  %v433_v10 = vmax.f32 %v401_v63, 0.0  ;;  %v443_v63 = vmax.f32 %v411_v54, 0.0  ;;  %v629_v54 = vld [vmem:[%s1608_s8 + $0x40] sm:$0xff] }
  0x75   : > { %880 = vmatpush1.bf16.msra.mxu0 %v1366_v11  ;;  %1271 = vmatpush1.bf16.msra.mxu1 %v1366_v11  ;;  %v1224_v11 = vpack.c.bf16 %v452_v1, %v450_v2 }
  0x76   : > { %881 = vmatprep.subr.bf16.mxu0 %v1367_v12  ;;  %1256 = vmatprep.subr.bf16.mxu1 %v1367_v12  ;;  %v440_v12 = vmax.f32 %v408_v5, 0.0  ;;  %v1239_v5 = vpack.c.bf16 %v459_v61, %v457_v62 }
  0x79   : > { %882 = vmatpush1.bf16.msra.mxu0 %v1369_v13  ;;  %1272 = vmatpush1.bf16.msra.mxu1 %v1369_v13  ;;  %v438_v13 = vmax.f32 %v406_v6, 0.0  ;;  %v621_v6 = vld [vmem:[%s1608_s8] sm:$0xff] }
  0x7a   : > { %883 = vmatprep.subr.bf16.mxu0 %v1370_v14  ;;  %1257 = vmatprep.subr.bf16.mxu1 %v1370_v14 }
  0x7b   : > { %v1206_v28 = vpack.c.bf16 %v440_v12, %v438_v13 }
  0x7d   : > { %884 = vmatpush1.bf16.msra.mxu0 %v1372_v15  ;;  %1273 = vmatpush1.bf16.msra.mxu1 %v1372_v15 }
  0x7e   : > { %885 = vmatprep.subr.bf16.mxu0 %v1373_v16  ;;  %1258 = vmatprep.subr.bf16.mxu1 %v1373_v16  ;;  %v424_v16 = vld [vmem:[%s1615_s11 + $0xd8] sm:$0xff] }
  0x7f   : > { %v456_v29 = vmax.f32 %v424_v16, 0.0  ;;  %v624_v16 = vld [vmem:[%s1608_s8 + $0x18] sm:$0xff] }
  0x81   : > { %886 = vmatpush1.bf16.msra.mxu0 %v1375_v17  ;;  %1274 = vmatpush1.bf16.msra.mxu1 %v1375_v17  ;;  %v422_v17 = vld [vmem:[%s1615_s11 + $0xc8] sm:$0xff] }
  0x82   : > { %887 = vmatprep.subr.bf16.mxu0 %v1376_v18  ;;  %1259 = vmatprep.subr.bf16.mxu1 %v1376_v18  ;;  %v454_v30 = vmax.f32 %v422_v17, 0.0 }
  0x84   : > { %v1230_v39 = vpack.c.bf16 %v456_v29, %v454_v30 }
  0x85   : > { %888 = vmatpush1.bf16.msra.mxu0 %v1378_v19  ;;  %1275 = vmatpush1.bf16.msra.mxu1 %v1378_v19 }
  0x86   : > { %889 = vmatprep.subr.bf16.mxu0 %v1379_v20  ;;  %1260 = vmatprep.subr.bf16.mxu1 %v1379_v20 }
  0x89   : > { %890 = vmatpush1.bf16.msra.mxu0 %v1381_v21  ;;  %1276 = vmatpush1.bf16.msra.mxu1 %v1381_v21  ;;  %v640_v21 = vld [vmem:[%s1608_s8 + $0x98] sm:$0xff] }
  0x8a   : > { %891 = vmatprep.subr.bf16.mxu0 %v1382_v22  ;;  %1261 = vmatprep.subr.bf16.mxu1 %v1382_v22  ;;  %v1203_v22 = vpack.c.bf16 %v435_v9, %v433_v10 }
  0x8d   : > { %892 = vmatpush1.bf16.msra.mxu0 %v1384_v23  ;;  %1277 = vmatpush1.bf16.msra.mxu1 %v1384_v23  ;;  %v423_v23 = vld [vmem:[%s1615_s11 + $0xd0] sm:$0xff] }
  0x8e   : > { %v455_v35 = vmax.f32 %v423_v23, 0.0 }
  0x90   : > { %v1233_v53 = vpack.c.bf16 %v455_v35, %v453_v36 }
  0xce   : > { %v520_v31 = vpop.permute.xlu1 %519  ;;  %v480_v32 = vpop.permute.xlu0 %479 }
  0xcf   : > { %vm1713_vm0 = vcmp.ge.f32.partialorder %v445_v37, %v520_v31  ;;  %vm1729_vm4 = vcmp.ge.f32.partialorder %v429_v40, %v480_v32  ;;  %vm558_vm8 = vcmp.ge.f32.partialorder %v430_v41, %v480_v32  ;;  %vm574_vm10 = vcmp.ge.f32.partialorder %v446_v49, %v520_v31 }
  0xd0   : > { %v439_v37 = vmax.f32 %v407_v26, 0.0 }
  0xd2   : > { %v525_v45 = vpop.permute.xlu1 %524  ;;  %v485_v47 = vpop.permute.xlu0 %484 }
  0xd3   : > { %vm1717_vm1 = vcmp.ge.f32.partialorder %v447_v33, %v525_v45  ;;  %vm1721_vm2 = vcmp.ge.f32.partialorder %v431_v38, %v485_v47  ;;  %vm1725_vm3 = vcmp.ge.f32.partialorder %v432_v34, %v485_v47  ;;  %vm1737_vm6 = vcmp.ge.f32.partialorder %v448_v42, %v525_v45  ;;  %v412_v33 = vld [vmem:[%s1615_s11 + $0x78] sm:$0xff]  ;;  %v410_v34 = vld [vmem:[%s1615_s11 + $0x68] sm:$0xff] }
  0xd4   : > { %vm1220_vm5 = vmpackc.low %vm1717_vm1, %vm1713_vm0  ;;  %v437_v38 = vmax.f32 %v405_v27, 0.0  ;;  %v444_v40 = vmax.f32 %v412_v33, 0.0  ;;  %v442_v41 = vmax.f32 %v410_v34, 0.0  ;;  %v426_v45 = vld [vmem:[%s1615_s11 + $0xe8] sm:$0xff] }
  0xd5   : > { %vm1196_vm7 = vmpackc.low %vm1721_vm2, %vm1729_vm4  ;;  %v458_v58 = vmax.f32 %v426_v45, 0.0  ;;  %v642_v34 = vld [vmem:[%s1608_s8 + $0xa8] sm:$0xff]  ;;  %v644_v45 = vld [vmem:[%s1608_s8 + $0xb8] sm:$0xff] }
  0xd6   : > { %vm1193_vm9 = vmpackc.low %vm1725_vm3, %vm558_vm8  ;;  %v495_v3 = vpop.permute.xlu1 %494  ;;  %v490_v4 = vpop.permute.xlu0 %489  ;;  %v1209_v50 = vpack.c.bf16 %v439_v37, %v437_v38  ;;  %v1212_v56 = vpack.c.bf16 %v444_v40, %v442_v41 }
  0xd7   : > { %1195 = vmatprep.mubr.msk.bf16.mxu0 %vm1193_vm9, %v1194_v48  ;;  %vm1217_vm11 = vmpackc.low %vm1737_vm6, %vm574_vm10  ;;  %vm564_vm12 = vcmp.ge.f32.partialorder %v436_v43, %v495_v3  ;;  %vm562_vm13 = vcmp.ge.f32.partialorder %v434_v44, %v490_v4  ;;  %vm1775_vm1 = vcmp.ge.f32.partialorder %v435_v9, %v495_v3  ;;  %vm1779_vm4 = vcmp.ge.f32.partialorder %v433_v10, %v490_v4  ;;  %v428_v44 = vld [vmem:[%s1615_s11 + $0xf8] sm:$0xff]  ;;  %v638_v10 = vld [vmem:[%s1608_s8 + $0x88] sm:$0xff] }
  0xd8   : > { %1219 = vmatprep.mubr.msk.bf16.mxu1 %vm1217_vm11, %v1218_v59  ;;  %vm1199_vm14 = vmpackc.low %vm564_vm12, %vm562_vm13  ;;  %1198 = vmatmul.mubr.msk.bf16.vlgmr.msra.gmra.mrb[0].mxu0 %vm1196_vm7, %v1197_v57  ;;  %v460_v57 = vmax.f32 %v428_v44, 0.0 }
  0xd9   : > { %1222 = vmatmul.mubr.msk.bf16.vlgmr.msra.gmra.mrb[0].mxu1 %vm1220_vm5, %v1221_v46  ;;  %1201 = vmatprep.mubr.msk.bf16.mxu0 %vm1199_vm14, %v1200_v0  ;;  %vm1202_vm7 = vmpackc.low %vm1775_vm1, %vm1779_vm4  ;;  %v441_v0 = vmax.f32 %v409_v55, 0.0  ;;  %v645_v55 = vld [vmem:[%s1608_s8 + $0xc0] sm:$0xff] }
  0xda   : > { %v535_v14 = vpop.permute.xlu1 %534  ;;  %v530_v15 = vpop.permute.xlu0 %529 }
  0xdb   : > { %vm1767_vm15 = vcmp.ge.f32.partialorder %v451_v7, %v535_v14  ;;  %vm580_vm2 = vcmp.ge.f32.partialorder %v452_v1, %v535_v14  ;;  %vm1771_vm3 = vcmp.ge.f32.partialorder %v449_v8, %v530_v15  ;;  %vm578_vm0 = vcmp.ge.f32.partialorder %v450_v2, %v530_v15  ;;  %v637_v7 = vld [vmem:[%s1608_s8 + $0x80] sm:$0xff]  ;;  %v622_v8 = vld [vmem:[%s1608_s8 + $0x8] sm:$0xff]  ;;  %v639_v15 = vld [vmem:[%s1608_s8 + $0x90] sm:$0xff] }
  0xdc   : > { %vm1223_vm5 = vmpackc.low %vm580_vm2, %vm578_vm0  ;;  %v1236_v1 = vpack.c.bf16 %v460_v57, %v458_v58  ;;  %v1215_v4 = vpack.c.bf16 %v443_v63, %v441_v0 }
  0xdd   : > { %1225 = vmatprep.mubr.msk.bf16.mxu1 %vm1223_vm5, %v1224_v11  ;;  %vm1226_vm6 = vmpackc.low %vm1767_vm15, %vm1771_vm3  ;;  %v623_v11 = vld [vmem:[%s1608_s8 + $0x10] sm:$0xff] }
  0xde   : > { %v505_v31 = vpop.permute.xlu1 %504  ;;  %v500_v32 = vpop.permute.xlu0 %499 }
  0xdf   : > { %vm568_vm8 = vcmp.ge.f32.partialorder %v440_v12, %v505_v31  ;;  %vm566_vm9 = vcmp.ge.f32.partialorder %v438_v13, %v500_v32  ;;  %vm1807_vm15 = vcmp.ge.f32.partialorder %v439_v37, %v505_v31  ;;  %vm1811_vm2 = vcmp.ge.f32.partialorder %v437_v38, %v500_v32  ;;  %v641_v31 = vld [vmem:[%s1608_s8 + $0xa0] sm:$0xff]  ;;  %v626_v32 = vld [vmem:[%s1608_s8 + $0x28] sm:$0xff] }
  0xe0   : > { %vm1205_vm10 = vmpackc.low %vm568_vm8, %vm566_vm9  ;;  %1204 = vmatmul.mubr.msk.bf16.gmra.mrb[4].mxu0 %vm1202_vm7, %v1203_v22 }
  0xe1   : > { %1228 = vmatmul.mubr.msk.bf16.gmra.mrb[4].mxu1 %vm1226_vm6, %v1227_v25  ;;  %1207 = vmatprep.mubr.msk.bf16.mxu0 %vm1205_vm10, %v1206_v28  ;;  %vm1208_vm1 = vmpackc.low %vm1807_vm15, %vm1811_vm2 }
  0xe2   : > { %v545_v42 = vpop.permute.xlu1 %544  ;;  %v540_v43 = vpop.permute.xlu0 %539 }
  0xe3   : > { %vm1799_vm11 = vcmp.ge.f32.partialorder %v455_v35, %v545_v42  ;;  %vm584_vm12 = vcmp.ge.f32.partialorder %v456_v29, %v545_v42  ;;  %vm1803_vm13 = vcmp.ge.f32.partialorder %v453_v36, %v540_v43  ;;  %vm582_vm14 = vcmp.ge.f32.partialorder %v454_v30, %v540_v43  ;;  %v625_v30 = vld [vmem:[%s1608_s8 + $0x20] sm:$0xff]  ;;  %v627_v35 = vld [vmem:[%s1608_s8 + $0x30] sm:$0xff] }
  0xe4   : > { %vm1229_vm3 = vmpackc.low %vm584_vm12, %vm582_vm14 }
  0xe5   : > { %1231 = vmatprep.mubr.msk.bf16.mxu1 %vm1229_vm3, %v1230_v39  ;;  %vm1232_vm0 = vmpackc.low %vm1799_vm11, %vm1803_vm13  ;;  %v643_v39 = vld [vmem:[%s1608_s8 + $0xb0] sm:$0xff] }
  0xe6   : > { %v515_v59 = vpop.permute.xlu1 %514  ;;  %v510_v60 = vpop.permute.xlu0 %509 }
  0xe7   : > { %vm572_vm4 = vcmp.ge.f32.partialorder %v444_v40, %v515_v59  ;;  %vm570_vm5 = vcmp.ge.f32.partialorder %v442_v41, %v510_v60  ;;  %vm571_vm11 = vcmp.ge.f32.partialorder %v443_v63, %v515_v59  ;;  %vm569_vm12 = vcmp.ge.f32.partialorder %v441_v0, %v510_v60  ;;  %v628_v40 = vld [vmem:[%s1608_s8 + $0x38] sm:$0xff]  ;;  %v631_v59 = vld [vmem:[%s1608_s8 + $0x50] sm:$0xff] }
  0xe8   : > { %vm1211_vm6 = vmpackc.low %vm572_vm4, %vm570_vm5  ;;  %1210 = vmatmul.mubr.msk.bf16.gmra.mrb[8].mxu0 %vm1208_vm1, %v1209_v50  ;;  %v647_v63 = vld [vmem:[%s1608_s8 + $0xd0] sm:$0xff]  ;;  %v632_v0 = vld [vmem:[%s1608_s8 + $0x58] sm:$0xff] }
  0xe9   : > { %1234 = vmatmul.mubr.msk.bf16.gmra.mrb[8].mxu1 %vm1232_vm0, %v1233_v53  ;;  %1213 = vmatprep.mubr.msk.bf16.mxu0 %vm1211_vm6, %v1212_v56  ;;  %vm1214_vm15 = vmpackc.low %vm571_vm11, %vm569_vm12  ;;  %v630_v56 = vld [vmem:[%s1608_s8 + $0x48] sm:$0xff] }
  0xea   : > { %v555_v2 = vpop.permute.xlu1 %554  ;;  %v550_v3 = vpop.permute.xlu0 %549 }
  0xeb   : > { %vm587_vm7 = vcmp.ge.f32.partialorder %v459_v61, %v555_v2  ;;  %vm588_vm8 = vcmp.ge.f32.partialorder %v460_v57, %v555_v2  ;;  %vm585_vm9 = vcmp.ge.f32.partialorder %v457_v62, %v550_v3  ;;  %vm586_vm10 = vcmp.ge.f32.partialorder %v458_v58, %v550_v3  ;;  %v646_v58 = vld [vmem:[%s1608_s8 + $0xc8] sm:$0xff] }
  0xec   : > { %vm1235_vm13 = vmpackc.low %vm588_vm8, %vm586_vm10 }
  0xed   : > { %1237 = vmatprep.mubr.msk.bf16.mxu1 %vm1235_vm13, %v1236_v1  ;;  %vm1238_vm14 = vmpackc.low %vm587_vm7, %vm585_vm9 }
  0xf0   : > { %1216 = vmatmul.mubr.msk.bf16.gmra.mrb[12].mxu0 %vm1214_vm15, %v1215_v4 }
  0xf1   : > { %1240 = vmatmul.mubr.msk.bf16.gmra.mrb[12].mxu1 %vm1238_vm14, %v1239_v5  ;;  %v648_v5 = vld [vmem:[%s1608_s8 + $0xd8] sm:$0xff] }
 0x1ab   : > { %v895_v9 = vpop.f32.mrb[0].mxu0 }
 0x1ac   : > { %v974_v12 = vadd.f32 %v895_v9, %v621_v6  ;;  %v935_v13 = vpop.f32.mrb[0].mxu1  ;;  %v897_v14 = vpop.f32.mrb[1].mxu0 }
 0x1ad   : > { %v990_v17 = vadd.f32 %v935_v13, %v637_v7  ;;  %v975_v18 = vadd.f32 %v897_v14, %v622_v8  ;;  %v937_v19 = vpop.f32.mrb[1].mxu1  ;;  %v899_v20 = vpop.f32.mrb[2].mxu0  ;;  %v633_v14 = vld [vmem:[%s1608_s8 + $0x60] sm:$0xff] }
 0x1ae   : > { %1006 = vst [vmem:[%s1608_s8] sm:$0xff] %v974_v12  ;;  %v991_v22 = vadd.f32 %v937_v19, %v638_v10  ;;  %v976_v23 = vadd.f32 %v899_v20, %v623_v11  ;;  %v939_v24 = vpop.f32.mrb[2].mxu1  ;;  %v901_v25 = vpop.f32.mrb[3].mxu0  ;;  %v635_v19 = vld [vmem:[%s1608_s8 + $0x70] sm:$0xff] }
 0x1af   : > { %1022 = vst [vmem:[%s1608_s8 + $0x80] sm:$0xff] %v990_v17  ;;  %1007 = vst [vmem:[%s1608_s8 + $0x8] sm:$0xff] %v975_v18  ;;  %v992_v26 = vadd.f32 %v939_v24, %v639_v15  ;;  %v977_v27 = vadd.f32 %v901_v25, %v624_v16  ;;  %v941_v28 = vpop.f32.mrb[3].mxu1  ;;  %v649_v15 = vld [vmem:[%s1608_s8 + $0xe0] sm:$0xff]  ;;  %v634_v16 = vld [vmem:[%s1608_s8 + $0x68] sm:$0xff] }
 0x1b0   : > { %1023 = vst [vmem:[%s1608_s8 + $0x88] sm:$0xff] %v991_v22  ;;  %1008 = vst [vmem:[%s1608_s8 + $0x10] sm:$0xff] %v976_v23  ;;  %v993_v29 = vadd.f32 %v941_v28, %v640_v21  ;;  %v650_v18 = vld [vmem:[%s1608_s8 + $0xe8] sm:$0xff]  ;;  %v651_v23 = vld [vmem:[%s1608_s8 + $0xf0] sm:$0xff] }
 0x1b1   : > { %1024 = vst [vmem:[%s1608_s8 + $0x90] sm:$0xff] %v992_v26  ;;  %1009 = vst [vmem:[%s1608_s8 + $0x18] sm:$0xff] %v977_v27  ;;  %v636_v24 = vld [vmem:[%s1608_s8 + $0x78] sm:$0xff] }
 0x1b2   : > { %1025 = vst [vmem:[%s1608_s8 + $0x98] sm:$0xff] %v993_v29  ;;  %v652_v29 = vld [vmem:[%s1608_s8 + $0xf8] sm:$0xff] }
 0x1b3   : > { %v905_v33 = vpop.f32.mrb[4].mxu0 }
 0x1b4   : > { %v978_v36 = vadd.f32 %v905_v33, %v625_v30  ;;  %v945_v37 = vpop.f32.mrb[4].mxu1  ;;  %v907_v38 = vpop.f32.mrb[5].mxu0 }
 0x1b5   : > { %v994_v41 = vadd.f32 %v945_v37, %v641_v31  ;;  %v979_v42 = vadd.f32 %v907_v38, %v626_v32  ;;  %v947_v43 = vpop.f32.mrb[5].mxu1  ;;  %v909_v44 = vpop.f32.mrb[6].mxu0 }
 0x1b6   : > { %1010 = vst [vmem:[%s1608_s8 + $0x20] sm:$0xff] %v978_v36  ;;  %v995_v46 = vadd.f32 %v947_v43, %v642_v34  ;;  %v980_v47 = vadd.f32 %v909_v44, %v627_v35  ;;  %v949_v48 = vpop.f32.mrb[6].mxu1  ;;  %v911_v49 = vpop.f32.mrb[7].mxu0 }
 0x1b7   : > { %1026 = vst [vmem:[%s1608_s8 + $0xa0] sm:$0xff] %v994_v41  ;;  %1011 = vst [vmem:[%s1608_s8 + $0x28] sm:$0xff] %v979_v42  ;;  %v996_v50 = vadd.f32 %v949_v48, %v643_v39  ;;  %v981_v51 = vadd.f32 %v911_v49, %v628_v40  ;;  %v951_v52 = vpop.f32.mrb[7].mxu1 }
 0x1b8   : > { %1027 = vst [vmem:[%s1608_s8 + $0xa8] sm:$0xff] %v995_v46  ;;  %1012 = vst [vmem:[%s1608_s8 + $0x30] sm:$0xff] %v980_v47  ;;  %v997_v53 = vadd.f32 %v951_v52, %v644_v45 }
 0x1b9   : > { %1028 = vst [vmem:[%s1608_s8 + $0xb0] sm:$0xff] %v996_v50  ;;  %1013 = vst [vmem:[%s1608_s8 + $0x38] sm:$0xff] %v981_v51 }
 0x1ba   : > { %1029 = vst [vmem:[%s1608_s8 + $0xb8] sm:$0xff] %v997_v53 }
 0x1bb   : > { %v915_v57 = vpop.f32.mrb[8].mxu0 }
 0x1bc   : > { %v982_v60 = vadd.f32 %v915_v57, %v629_v54  ;;  %v955_v61 = vpop.f32.mrb[8].mxu1  ;;  %v917_v62 = vpop.f32.mrb[9].mxu0 }
 0x1bd   : > { %v998_v1 = vadd.f32 %v955_v61, %v645_v55  ;;  %v983_v2 = vadd.f32 %v917_v62, %v630_v56  ;;  %v957_v3 = vpop.f32.mrb[9].mxu1  ;;  %v919_v4 = vpop.f32.mrb[10].mxu0 }
 0x1be   : > { %1014 = vst [vmem:[%s1608_s8 + $0x40] sm:$0xff] %v982_v60  ;;  %v999_v6 = vadd.f32 %v957_v3, %v646_v58  ;;  %v984_v7 = vadd.f32 %v919_v4, %v631_v59  ;;  %v959_v8 = vpop.f32.mrb[10].mxu1  ;;  %v921_v9 = vpop.f32.mrb[11].mxu0 }
 0x1bf   : > { %1030 = vst [vmem:[%s1608_s8 + $0xc0] sm:$0xff] %v998_v1  ;;  %1015 = vst [vmem:[%s1608_s8 + $0x48] sm:$0xff] %v983_v2  ;;  %v1000_v10 = vadd.f32 %v959_v8, %v647_v63  ;;  %v985_v11 = vadd.f32 %v921_v9, %v632_v0  ;;  %v961_v12 = vpop.f32.mrb[11].mxu1 }
 0x1c0   : > { %1031 = vst [vmem:[%s1608_s8 + $0xc8] sm:$0xff] %v999_v6  ;;  %1016 = vst [vmem:[%s1608_s8 + $0x50] sm:$0xff] %v984_v7  ;;  %v1001_v13 = vadd.f32 %v961_v12, %v648_v5 }
 0x1c1   : > { %1032 = vst [vmem:[%s1608_s8 + $0xd0] sm:$0xff] %v1000_v10  ;;  %1017 = vst [vmem:[%s1608_s8 + $0x58] sm:$0xff] %v985_v11 }
 0x1c2   : > { %1033 = vst [vmem:[%s1608_s8 + $0xd8] sm:$0xff] %v1001_v13 }
 0x1c3   : > { %v925_v17 = vpop.f32.mrb[12].mxu0 }
 0x1c4   : > { %v986_v20 = vadd.f32 %v925_v17, %v633_v14  ;;  %v965_v21 = vpop.f32.mrb[12].mxu1  ;;  %v927_v22 = vpop.f32.mrb[13].mxu0 }
 0x1c5   : > { %v1002_v25 = vadd.f32 %v965_v21, %v649_v15  ;;  %v987_v26 = vadd.f32 %v927_v22, %v634_v16  ;;  %v967_v27 = vpop.f32.mrb[13].mxu1  ;;  %v929_v28 = vpop.f32.mrb[14].mxu0 }
 0x1c6   : > { %1018 = vst [vmem:[%s1608_s8 + $0x60] sm:$0xff] %v986_v20  ;;  %v1003_v30 = vadd.f32 %v967_v27, %v650_v18  ;;  %v988_v31 = vadd.f32 %v929_v28, %v635_v19  ;;  %v969_v32 = vpop.f32.mrb[14].mxu1  ;;  %v931_v33 = vpop.f32.mrb[15].mxu0 }
 0x1c7   : > { %1034 = vst [vmem:[%s1608_s8 + $0xe0] sm:$0xff] %v1002_v25  ;;  %1019 = vst [vmem:[%s1608_s8 + $0x68] sm:$0xff] %v987_v26  ;;  %v1004_v34 = vadd.f32 %v969_v32, %v651_v23  ;;  %v989_v35 = vadd.f32 %v931_v33, %v636_v24  ;;  %v971_v36 = vpop.f32.mrb[15].mxu1 }
 0x1c8   : > { %1035 = vst [vmem:[%s1608_s8 + $0xe8] sm:$0xff] %v1003_v30  ;;  %1020 = vst [vmem:[%s1608_s8 + $0x70] sm:$0xff] %v988_v31  ;;  %v1005_v37 = vadd.f32 %v971_v36, %v652_v29 }
 0x1c9   : > { %1036 = vst [vmem:[%s1608_s8 + $0xf0] sm:$0xff] %v1004_v34  ;;  %1021 = vst [vmem:[%s1608_s8 + $0x78] sm:$0xff] %v989_v35 }
 0x1ca   : > { %1037 = vst [vmem:[%s1608_s8 + $0xf8] sm:$0xff] %v1005_v37 }
 0x1cb PF: > { %s14_s21 = sadd.s32 1, %s1439_s21   ;;  %s1945_s15 = smov %s1419_s16 }
 0x1cc   : > { %p11_p13 = scmp.ge.s32.totalorder %s14_s21, 10   ;;  %s1946_s16 = smov %s1518_s28 }
 0x1cd   : > { %s1947_s17 = smov %s1431_s19  ;;  %s1948_s18 = smov %s1435_s20 }
 0x1ce   : > { %s1949_s19 = smov %s1952_s22  ;;  %s1950_s20 = smov %s1956_s23 }
 0x1cf   :  { %13 = sbr.rel (!%p11_p13) target bundleno = 4 (0x4), region = 104 }

// kernel: sparse_autoencoder_forward.2
= control target key start
LH: loop header
LB: loop body
LE: loop exit
PB: predicated region body
PF: predicated region fallthrough
CT: control target
= control target key end

     0   :  { %s6797_s0 = inlined_call_operand.vmem [shape: f32[256,256], index: 0, kind: input, shape index: {}]   ;;  %s6798_s1 = inlined_call_operand.hbm [shape: f32[1,256], index: 1, kind: input, shape index: {}]   ;;  %s6799_s2 = inlined_call_operand.hbm [shape: bf16[256,1024], index: 2, kind: input, shape index: {}]   ;;  %s6800_s3 = inlined_call_operand.vmem [shape: f32[1,1024], index: 3, kind: input, shape index: {}]   ;;  %s6801_s4 = inlined_call_operand.vmem [shape: f32[256,1024], index: 4, kind: output, shape index: {0}]   ;;  %s6802_s5 = inlined_call_operand.vmem [shape: f32[256,128], index: 5, kind: output, shape index: {1}]  }
   0x1   :  { %7076 = sst [smem:[#allocation38_spill]] %s6798_s1 }
   0x2   :  { %7077 = sst [smem:[#allocation39_spill]] %s6801_s4 }
   0x3   :  { %11 = vsyncpa [#allocation4], 0 }
   0x4   :  { %12 = vsyncpa [#allocation6], 0 }
   0x5   :  { %14 = vsyncpa [#allocation6 + $0x1], 0  ;;  %s3111_s18 = smov 0   ;;  %s3113_s19 = smov 0  }
   0x6   :  { %s3115_s20 = smov 0   ;;  %s3117_s21 = smov 0  }
   0x7   :  { %s3119_s22 = smov 0   ;;  %s3121_s23 = smov 0  }
   0x8   :  { %s3123_s24 = smov 0   ;;  %s3125_s25 = smov 0  }
   0x9   :  { %s3127_s26 = smov 0   ;;  %s3129_s27 = smov 0  }
   0xa LB: > { %7078 = sst [smem:[#allocation10_spill]] %s3065_s25  ;;  %s2685_s28 = sadd.s32 4294967295, %s3073_s27   ;;  %s3073_s27 = sphi %s3129_s27, %s20_s27   ;;  %s3069_s26 = sphi %s3127_s26, %s7394_s26   ;;  %s3065_s25 = sphi %s3125_s25, %s7387_s25   ;;  %s3061_s24 = sphi %s3123_s24, %s7393_s24   ;;  %s3057_s23 = sphi %s3121_s23, %s7386_s23   ;;  %s3053_s22 = sphi %s3119_s22, %s7392_s22   ;;  %s3049_s21 = sphi %s3117_s21, %s7391_s21   ;;  %s3045_s20 = sphi %s3115_s20, %s7390_s20   ;;  %s3041_s19 = sphi %s3113_s19, %s7389_s19   ;;  %s3037_s18 = sphi %s3111_s18, %s7388_s18  }
   0xb   : > { %7079 = sst [smem:[#allocation11_spill]] %s3073_s27  ;;  %s86_s29 = sadd.s32 1, %s3053_s22 }
   0xc   : > { %p93_p0 = scmp.ne.s32.totalorder %s3053_s22, %s3049_s21  ;;  %p94_p1 = scmp.eq.s32.totalorder %s3073_s27, 0 }
   0xd   : > { %p99_p2 = scmp.ne.s32.totalorder %s3049_s21, %s3045_s20  ;;  %p3165_p3 = scmp.eq.s32.totalorder %s2685_s28, 0 }
   0xe   : > { %p3169_p4 = por %p94_p1, %p93_p0  ;;  %p150_p6 = scmp.ne.s32.totalorder %s3041_s19, %s3037_s18 }
   0xf   : > { %s7080_s30 = scalar_select %p3165_p3, 1, 0 }
  0x10   : > { %p3176_p5 = por %p3165_p3, %p99_p2  ;;  %p151_p7 = scmp.eq.s32.totalorder %s2685_s28, 7 }
  0x11   : > { %p2687_p8 = scmp.ge.s32.totalorder %s3073_s27, 1  ;;  %p190_p9 = scmp.lt.s32.totalorder %s3073_s27, 9 }
  0x12   : > { %s7082_s8 = scalar_select %p3176_p5, 1, 0 }
  0x13   : > { %p3184_p10 = por %p151_p7, %p150_p6  ;;  %p3188_p11 = pnand %p2687_p8, %p190_p9 }
  0x14   : > { %s3075_s11 = smov [#allocation3]   ;;  %p2794_p13 = scmp.lt.s32.totalorder %s3073_s27, 8 }
  0x15   : > { %s7083_s9 = scalar_select %p3184_p10, 1, 0 }
  0x16   : > { %s7084_s10 = scalar_select %p3188_p11, 1, 0 }
  0x17   : > { %s203_s12 = sshll.u32 %s3075_s11, 4  ;;  %p2785_p12 = pneg %p3188_p11  ;;  %s204_s12 = int_to_ptr.vmem [resolvable:$true] %s203_s12 }
  0x18   : > { %p3203_p1 = pnand %p2794_p13, %p3169_p4  ;;  %s7087_s1 = sld [smem:[#allocation38_spill]] }
  0x19   : > { %p3197_p0 = pnand %p2785_p12, %p3165_p3 }
  0x1a   : > { %s7086_s14 = scalar_select %p3203_p1, 1, 0 }
  0x1b   : > { %p2931_p6 = pneg %p3197_p0 }
  0x1e   : > { %s2929_s17 = scalar_lea.hbm %s7087_s1, 32 }
  0x1f   : > { %p2930_p2 = scmp.ne.s32.totalorder %s7087_s1, %s2929_s17  ;;  %p2936_p9 = scmp.lt.u32.totalorder %s2929_s17, %s7087_s1 }
  0x21   : > { %p2932_p7 = pnand %p2931_p6, %p2930_p2 }
  0x23   : > { %p2933_p8 = pneg %p2932_p7 }
  0x25   : > { %p2938_p4 = pnand %p2936_p9, %p2933_p8 }
  0x27   : > { %2941 = shalt.err (!%p2938_p4)
}
  0x28   : > { %s2942_s6 = scalar_lea.vmem %s204_s12, 32  ;;  %p2950_p5 = scmp.lt.s32.totalorder %s204_s12, %s204_s12 }
  0x29   : > { %p2943_p12 = scmp.ne.s32.totalorder %s204_s12, %s2942_s6  ;;  %p2951_p3 = scmp.lt.s32.totalorder %s2942_s6, %s2942_s6 }
  0x2b   : > { %p2945_p13 = pnand %p2943_p12, %p2931_p6  ;;  %p2952_p11 = por %p2951_p3, %p2950_p5 }
  0x2d   : > { %p2946_p10 = pneg %p2945_p13 }
  0x2f   : > { %p2953_p1 = pnand %p2952_p11, %p2946_p10 }
  0x31   : > { %2956 = shalt.err (!%p2953_p1)
}
  0x32   : > { %2788 = dma.hbm_to_vmem [thread:$0]  (!%p3197_p0), %s7087_s1, 32, %s204_s12, [#allocation4]  }
  0x33   : > { %s29_s7 = sadd.s32 1, %s3065_s25  ;;  %s32_s17 = sadd.s32 1, %s3069_s26 }
  0x34   : > { %p30_p3 = scmp.ge.s32.totalorder %s29_s7, 4  ;;  %s224_s20 = sand.u32 1, %s3053_s22  }
  0x35   : > { %s2690_s28 = sshll.u32 %s224_s20, 8  ;;  %s2744_s11 = sshll.u32 %s3065_s25, 7 }
  0x36   : > { %s7396_s7 = smov (%p30_p3, %s29_s7), 0  ;;  %s7398_s17 = smov (!%p30_p3, %s32_s17), %s3069_s26 }
  0x37   : > { %7088 = sst [smem:[#allocation12_spill]] %s7396_s7  ;;  %s83_s13 = ssub.s32 %s3065_s25, %s7396_s7 }
  0x38   : > { %p34_p5 = scmp.ge.s32.totalorder %s7398_s17, 2  ;;  %p84_p10 = scmp.eq.s32.totalorder %s83_s13, 0 }
  0x39   : > { %s228_s6 = scalar_lea.vmem [#allocation5], %s2690_s28  ;;  %s3244_s4 = scalar_lea.hbm %s6799_s2, %s2744_s11 }
  0x3a   : > { %s235_s12 = sshll.u32 %s228_s6, 4  ;;  %s7400_s17 = smov (%p34_p5, %s7398_s17), 0  ;;  %s3246_s12 = int_to_ptr.vmem [resolvable:$true] %s235_s12 }
  0x3b   : > { %s3237_s15 = scalar_select %p84_p10, %s3053_s22, %s86_s29  }
  0x3c   : > { %s135_s16 = ssub.s32 %s3069_s26, %s7400_s17  ;;  %s7089_s28 = sadd.s32 1, %s3041_s19 }
  0x3d   : > { %s137_s7 = sor.u32 %s135_s16, %s83_s13  ;;  %s3253_s25 = scalar_lea.sflag [#allocation6], %s224_s20 }
  0x3e   : > { %p138_p11 = scmp.eq.s32.totalorder %s137_s7, 0  ;;  %s2957_s29 = scalar_lea.hbm %s3244_s4, 4096 }
  0x3f   : > { %p2958_p0 = scmp.ne.s32.totalorder %s3244_s4, %s2957_s29  ;;  %p7090_p1 = scmp.ne.s32.totalorder %s7086_s14, 0 }
  0x40   : > { %s3251_s6 = scalar_select %p138_p11, %s3041_s19, %s7089_s28  }
  0x41   : > { %p2959_p2 = pneg %p7090_p1  ;;  %s2962_s13 = scalar_lea.hbm %s6799_s2, 16384 }
  0x42   : > { %p2963_p8 = scmp.lt.u32.totalorder %s3244_s4, %s6799_s2  ;;  %p2964_p9 = scmp.lt.u32.totalorder %s2962_s13, %s2957_s29 }
  0x43   : > { %p2960_p6 = pnand %p2959_p2, %p2958_p0  ;;  %p2966_p12 = scmp.lt.u32.totalorder %s2957_s29, %s3244_s4 }
  0x44   : > { %p2965_p4 = por %p2964_p9, %p2963_p8 }
  0x45   : > { %p2961_p7 = pneg %p2960_p6 }
  0x46   : > { %p2967_p13 = por %p2966_p12, %p2965_p4 }
  0x48   : > { %p2968_p3 = pnand %p2967_p13, %p2961_p7 }
  0x4a   : > { %2971 = shalt.err (!%p2968_p3)
}
  0x4b   : > { %s2972_s7 = scalar_lea.vmem %s3246_s12, 4096  ;;  %s3076_s20 = smov [#allocation5]  }
  0x4c   : > { %p2973_p5 = scmp.ne.s32.totalorder %s3246_s12, %s2972_s7  ;;  %s2977_s28 = sshll.u32 %s3076_s20, 4  ;;  %s2978_s28 = int_to_ptr.vmem [resolvable:$false] %s2977_s28 }
  0x4d   : > { %s2979_s1 = scalar_lea.vmem %s2978_s28, 8192  ;;  %p2980_p0 = scmp.lt.s32.totalorder %s3246_s12, %s2978_s28 }
  0x4e   : > { %p2975_p10 = pnand %p2973_p5, %p2959_p2  ;;  %p2981_p6 = scmp.lt.s32.totalorder %s2979_s1, %s2972_s7 }
  0x50   : > { %p2976_p11 = pneg %p2975_p10  ;;  %p2982_p8 = por %p2981_p6, %p2980_p0 }
  0x52   : > { %p2983_p9 = pnand %p2982_p8, %p2976_p11 }
  0x54   : > { %2986 = shalt.err (!%p2983_p9)
}
  0x55   : > { %s3077_s29 = smov 512   ;;  %s3078_s27 = smov 128  }
  0x56   : > { %s3079_s13 = smov 8   ;;  %p7091_p2 = scmp.ne.s32.totalorder %s7084_s10, 0 }
  0x57   : > { %2792 = dma.hbm_to_vmem [thread:$0]  (!%p7090_p1), %s3244_s4, 4096, %s3246_s12, %s3253_s25, %s3077_s29, %s3078_s27, %s3079_s13  }
  0x58   : > { %255 = sbr.rel (%p7091_p2) target bundleno = 1873 (0x751), region = 36 }
  0x5f   : > { %p7092_p7 = scmp.ne.s32.totalorder %s7080_s30, 0 }
  0x61   : > { %3028 = dma.done.wait (%p7092_p7), [#allocation4], 32  }
  0x62   : > { %3030 = vsyncadd (%p7092_p7), [#allocation4], 4294967264  ;;  %s261_s11 = sand.u32 1, %s3049_s21   ;;  %p7093_p4 = scmp.ne.s32.totalorder %s7082_s8, 0 }
  0x63   : > { %s2695_s16 = sshll.u32 %s261_s11, 8  ;;  %s262_s7 = scalar_lea.sflag [#allocation6], %s261_s11 }
  0x64   : > { %s3288_s20 = scalar_lea.vmem [#allocation5], %s2695_s16 }
  0x65   : > { %3032 = dma.done.wait (%p7093_p4), %s262_s7, 4096  }
  0x66   : > { %3034 = vsyncadd (%p7093_p4), %s262_s7, 4294963200  ;;  %s2697_s4 = sshll.u32 %s3061_s24, 4  ;;  %v2881_v0 = vld [vmem:[%s3288_s20 + $0x4] ss:$8 sps:$4 sm:$0xff]   ;;  %v2883_v1 = vld [vmem:[%s3288_s20] ss:$8 sps:$4 sm:$0xff]   ;;  %v6811_v8 = vlaneseq }
  0x67   : > { %p307_p1 = scmp.lt.s32.totalorder %s2697_s4, 31  ;;  %623 = vmatprep.subr.bf16.mxu0 %v2881_v0  ;;  %2747 = vmatprep.subr.bf16.mxu1 %v2881_v0  ;;  %v2884_v2 = vld [vmem:[%s3288_s20 + $0x14] ss:$8 sps:$4 sm:$0xff]   ;;  %v2886_v3 = vld [vmem:[%s3288_s20 + $0x10] ss:$8 sps:$4 sm:$0xff]   ;;  %s3419_s29 = sshll.u32 %s3057_s23, 1 }
  0x68   : > { %624 = vmatpush1.bf16.msra.mxu0 %v2883_v1  ;;  %2763 = vmatpush1.bf16.msra.mxu1 %v2883_v1  ;;  %v2887_v4 = vld [vmem:[%s3288_s20 + $0x24] ss:$8 sps:$4 sm:$0xff]   ;;  %v2889_v5 = vld [vmem:[%s3288_s20 + $0x20] ss:$8 sps:$4 sm:$0xff]   ;;  %v2890_v6 = vld [vmem:[%s3288_s20 + $0x34] ss:$8 sps:$4 sm:$0xff]  }
  0x69   : > { %s7402_s4 = smov (!%p307_p1, %s2697_s4), 31  ;;  %625 = vmatprep.subr.bf16.mxu0 %v2884_v2  ;;  %2748 = vmatprep.subr.bf16.mxu1 %v2884_v2  ;;  %v2892_v7 = vld [vmem:[%s3288_s20 + $0x30] ss:$8 sps:$4 sm:$0xff]   ;;  %v2893_v9 = vld [vmem:[%s3288_s20 + $0x44] ss:$8 sps:$4 sm:$0xff]   ;;  %v3315_v11 = vshrl.u32 %v6811_v8, 7 }
  0x6a   : > { %s2702_s25 = sshll.u32 %s7402_s4, 3  ;;  %v2895_v10 = vld [vmem:[%s3288_s20 + $0x40] ss:$8 sps:$4 sm:$0xff]   ;;  %s2745_s8 = sshll.u32 %s7402_s4, 4  ;;  %v2896_v12 = vld [vmem:[%s3288_s20 + $0x54] ss:$8 sps:$4 sm:$0xff]  }
  0x6b   : > { %s3301_s14 = scalar_lea.vmem %s6802_s5, %s2702_s25  ;;  %s3321_s1 = scalar_lea.vmem %s6797_s0, %s2745_s8  ;;  %v2898_v13 = vld [vmem:[%s3288_s20 + $0x50] ss:$8 sps:$4 sm:$0xff]   ;;  %v367_v14 = vsub.s32 1, %v3315_v11  ;;  %v2899_v15 = vld [vmem:[%s3288_s20 + $0x64] ss:$8 sps:$4 sm:$0xff]   ;;  %v363_v42 = vsub.s32 0, %v3315_v11 }
  0x6c   : > { %626 = vmatpush1.bf16.msra.mxu0 %v2886_v3  ;;  %2764 = vmatpush1.bf16.msra.mxu1 %v2886_v3  ;;  %v328_v16 = vld [vmem:[%s3321_s1 + $0x8] sm:$0xff]  ;;  %v330_v17 = vld [vmem:[%s3321_s1 + $0x18] sm:$0xff]  ;;  %v359_v18 = vld [vmem:[#allocation3] sm:$0x3]  ;;  %p315_p12 = scmp.lt.s32.totalorder %s3419_s29, 7  ;;  %s296_s7 = sand.u32 1, %s3037_s18  }
  0x6d   : > { %627 = vmatprep.subr.bf16.mxu0 %v2887_v4  ;;  %2749 = vmatprep.subr.bf16.mxu1 %v2887_v4  ;;  %v344_v19 = vld [vmem:[%s3321_s1 + $0x88] sm:$0xff]  ;;  %v346_v20 = vld [vmem:[%s3321_s1 + $0x98] sm:$0xff]  ;;  %v3333_v22 = vrot.slane %v359_v18, %v367_v14  ;;  %v3358_v46 = vrot.slane %v359_v18, %v363_v42  ;;  %v327_v48 = vld [vmem:[%s3321_s1] sm:$0xff]  ;;  %p2735_p13 = scmp.ne.s32.totalorder %s3057_s23, 0 }
  0x6e   : > { %v2901_v21 = vld [vmem:[%s3288_s20 + $0x60] ss:$8 sps:$4 sm:$0xff]   ;;  %v2902_v23 = vld [vmem:[%s3288_s20 + $0x74] ss:$8 sps:$4 sm:$0xff]   ;;  %v2904_v28 = vld [vmem:[%s3288_s20 + $0x70] ss:$8 sps:$4 sm:$0xff]  }
  0x6f   : > { %v372_v24 = vsub.f32 %v328_v16, %v3333_v22  ;;  %v374_v25 = vsub.f32 %v330_v17, %v3333_v22  ;;  %v388_v26 = vsub.f32 %v344_v19, %v3333_v22  ;;  %v390_v27 = vsub.f32 %v346_v20, %v3333_v22  ;;  %v2905_v31 = vld [vmem:[%s3288_s20 + $0x84] ss:$8 sps:$4 sm:$0xff]   ;;  %v2907_v32 = vld [vmem:[%s3288_s20 + $0x80] ss:$8 sps:$4 sm:$0xff]   ;;  %v2908_v33 = vld [vmem:[%s3288_s20 + $0x94] ss:$8 sps:$4 sm:$0xff]  }
  0x70   : > { %628 = vmatpush1.bf16.msra.mxu0 %v2889_v5  ;;  %2765 = vmatpush1.bf16.msra.mxu1 %v2889_v5  ;;  %v2910_v34 = vld [vmem:[%s3288_s20 + $0x90] ss:$8 sps:$4 sm:$0xff]   ;;  %v2911_v35 = vld [vmem:[%s3288_s20 + $0xa4] ss:$8 sps:$4 sm:$0xff]   ;;  %v2913_v36 = vld [vmem:[%s3288_s20 + $0xa0] ss:$8 sps:$4 sm:$0xff]   ;;  %v371_v56 = vsub.f32 %v327_v48, %v3358_v46 }
  0x71   : > { %629 = vmatprep.subr.bf16.mxu0 %v2890_v6  ;;  %2750 = vmatprep.subr.bf16.mxu1 %v2890_v6  ;;  %v404_v29 = vpack.c.bf16 %v374_v25, %v372_v24  ;;  %v412_v30 = vpack.c.bf16 %v390_v27, %v388_v26  ;;  %v2914_v37 = vld [vmem:[%s3288_s20 + $0xb4] ss:$8 sps:$4 sm:$0xff]   ;;  %v2916_v38 = vld [vmem:[%s3288_s20 + $0xb0] ss:$8 sps:$4 sm:$0xff]   ;;  %v2917_v39 = vld [vmem:[%s3288_s20 + $0xc4] ss:$8 sps:$4 sm:$0xff]  }
  0x72   : > { %v2919_v40 = vld [vmem:[%s3288_s20 + $0xc0] ss:$8 sps:$4 sm:$0xff]   ;;  %v2920_v41 = vld [vmem:[%s3288_s20 + $0xd4] ss:$8 sps:$4 sm:$0xff]   ;;  %v2922_v43 = vld [vmem:[%s3288_s20 + $0xd0] ss:$8 sps:$4 sm:$0xff]  }
  0x73   : > { %655 = vmatprep.mubr.bf16.mxu0 %v404_v29  ;;  %695 = vmatprep.mubr.bf16.mxu1 %v412_v30  ;;  %v2923_v44 = vld [vmem:[%s3288_s20 + $0xe4] ss:$8 sps:$4 sm:$0xff]   ;;  %v2925_v45 = vld [vmem:[%s3288_s20 + $0xe0] ss:$8 sps:$4 sm:$0xff]   ;;  %v2926_v47 = vld [vmem:[%s3288_s20 + $0xf4] ss:$8 sps:$4 sm:$0xff]  }
  0x74   : > { %630 = vmatpush1.bf16.msra.mxu0 %v2892_v7  ;;  %2766 = vmatpush1.bf16.msra.mxu1 %v2892_v7  ;;  %v329_v49 = vld [vmem:[%s3321_s1 + $0x10] sm:$0xff]  ;;  %v343_v50 = vld [vmem:[%s3321_s1 + $0x80] sm:$0xff]  ;;  %v332_v52 = vld [vmem:[%s3321_s1 + $0x28] sm:$0xff]  ;;  %s316_s27 = scalar_select %p315_p12, %s3419_s29, 7 }
  0x75   : > { %631 = vmatprep.subr.bf16.mxu0 %v2893_v9  ;;  %2751 = vmatprep.subr.bf16.mxu1 %v2893_v9  ;;  %v345_v51 = vld [vmem:[%s3321_s1 + $0x90] sm:$0xff]  ;;  %v334_v53 = vld [vmem:[%s3321_s1 + $0x38] sm:$0xff]  ;;  %v348_v54 = vld [vmem:[%s3321_s1 + $0xa8] sm:$0xff]  ;;  %v373_v57 = vsub.f32 %v329_v49, %v3358_v46  ;;  %v387_v58 = vsub.f32 %v343_v50, %v3358_v46  ;;  %v376_v60 = vsub.f32 %v332_v52, %v3333_v22 }
  0x76   : > { %v350_v55 = vld [vmem:[%s3321_s1 + $0xb8] sm:$0xff]  ;;  %v389_v59 = vsub.f32 %v345_v51, %v3358_v46  ;;  %v378_v62 = vsub.f32 %v334_v53, %v3333_v22  ;;  %v392_v63 = vsub.f32 %v348_v54, %v3333_v22  ;;  %v331_v3 = vld [vmem:[%s3321_s1 + $0x20] sm:$0xff]  ;;  %v333_v4 = vld [vmem:[%s3321_s1 + $0x30] sm:$0xff]  ;;  %s317_s16 = scalar_lea.vmem %s6800_s3, %s316_s27 }
  0x77   : > { %v2928_v61 = vld [vmem:[%s3288_s20 + $0xf0] ss:$8 sps:$4 sm:$0xff]   ;;  %v394_v0 = vsub.f32 %v350_v55, %v3333_v22  ;;  %v403_v1 = vpack.c.bf16 %v373_v57, %v371_v56  ;;  %v347_v7 = vld [vmem:[%s3321_s1 + $0xa0] sm:$0xff]  ;;  %v375_v16 = vsub.f32 %v331_v3, %v3358_v46  ;;  %v377_v17 = vsub.f32 %v333_v4, %v3358_v46  ;;  %s2696_s20 = sshll.u32 %s296_s7, 8 }
  0x78   : > { %632 = vmatpush1.bf16.msra.mxu0 %v2895_v10  ;;  %2767 = vmatpush1.bf16.msra.mxu1 %v2895_v10  ;;  %v411_v2 = vpack.c.bf16 %v389_v59, %v387_v58  ;;  %v406_v5 = vpack.c.bf16 %v378_v62, %v376_v60  ;;  %v349_v9 = vld [vmem:[%s3321_s1 + $0xb0] sm:$0xff]  ;;  %v336_v10 = vld [vmem:[%s3321_s1 + $0x48] sm:$0xff]  ;;  %v391_v18 = vsub.f32 %v347_v7, %v3358_v46  ;;  %v335_v27 = vld [vmem:[%s3321_s1 + $0x40] sm:$0xff]  ;;  %s3447_s18 = scalar_lea.vmem [#allocation7], %s2696_s20 }
  0x79   : > { %633 = vmatprep.subr.bf16.mxu0 %v2896_v12  ;;  %2752 = vmatprep.subr.bf16.mxu1 %v2896_v12  ;;  %v414_v6 = vpack.c.bf16 %v394_v0, %v392_v63  ;;  %v338_v12 = vld [vmem:[%s3321_s1 + $0x58] sm:$0xff]  ;;  %v393_v19 = vsub.f32 %v349_v9, %v3358_v46  ;;  %v380_v20 = vsub.f32 %v336_v10, %v3333_v22  ;;  %v339_v49 = vld [vmem:[%s3321_s1 + $0x60] sm:$0xff]  ;;  %v341_v52 = vld [vmem:[%s3321_s1 + $0x70] sm:$0xff] }
  0x7a   : > { %v405_v25 = vpack.c.bf16 %v377_v17, %v375_v16  ;;  %v355_v53 = vld [vmem:[%s3321_s1 + $0xe0] sm:$0xff]  ;;  %v357_v54 = vld [vmem:[%s3321_s1 + $0xf0] sm:$0xff]  ;;  %v383_v55 = vsub.f32 %v339_v49, %v3358_v46  ;;  %v385_v56 = vsub.f32 %v341_v52, %v3358_v46 }
  0x7b   : > { %v413_v26 = vpack.c.bf16 %v393_v19, %v391_v18  ;;  %v399_v57 = vsub.f32 %v355_v53, %v3358_v46  ;;  %v451_v60 = vld [vmem:[%s317_s16] sm:$0x3] }
  0x7c   : > { %634 = vmatpush1.bf16.msra.mxu0 %v2898_v13  ;;  %2768 = vmatpush1.bf16.msra.mxu1 %v2898_v13  ;;  %v352_v13 = vld [vmem:[%s3321_s1 + $0xc8] sm:$0xff]  ;;  %v409_v58 = vpack.c.bf16 %v385_v56, %v383_v55 }
  0x7d   : > { %635 = vmatprep.subr.bf16.mxu0 %v2899_v15  ;;  %2753 = vmatprep.subr.bf16.mxu1 %v2899_v15  ;;  %v354_v15 = vld [vmem:[%s3321_s1 + $0xd8] sm:$0xff] }
  0x7e   : > { %v398_v24 = vsub.f32 %v354_v15, %v3333_v22 }
  0x80   : > { %636 = vmatpush1.bf16.msra.mxu0 %v2901_v21  ;;  %2769 = vmatpush1.bf16.msra.mxu1 %v2901_v21  ;;  %v382_v21 = vsub.f32 %v338_v12, %v3333_v22 }
  0x81   : > { %637 = vmatprep.subr.bf16.mxu0 %v2902_v23  ;;  %2754 = vmatprep.subr.bf16.mxu1 %v2902_v23  ;;  %v396_v23 = vsub.f32 %v352_v13, %v3333_v22 }
  0x82   : > { %v408_v29 = vpack.c.bf16 %v382_v21, %v380_v20 }
  0x83   : > { %v416_v30 = vpack.c.bf16 %v398_v24, %v396_v23 }
  0x84   : > { %638 = vmatpush1.bf16.msra.mxu0 %v2904_v28  ;;  %2770 = vmatpush1.bf16.msra.mxu1 %v2904_v28  ;;  %v337_v28 = vld [vmem:[%s3321_s1 + $0x50] sm:$0xff] }
  0x85   : > { %639 = vmatprep.subr.bf16.mxu0 %v2905_v31  ;;  %2755 = vmatprep.subr.bf16.mxu1 %v2905_v31  ;;  %v351_v31 = vld [vmem:[%s3321_s1 + $0xc0] sm:$0xff] }
  0x88   : > { %640 = vmatpush1.bf16.msra.mxu0 %v2907_v32  ;;  %2771 = vmatpush1.bf16.msra.mxu1 %v2907_v32  ;;  %v353_v32 = vld [vmem:[%s3321_s1 + $0xd0] sm:$0xff] }
  0x89   : > { %641 = vmatprep.subr.bf16.mxu0 %v2908_v33  ;;  %2756 = vmatprep.subr.bf16.mxu1 %v2908_v33  ;;  %v340_v33 = vld [vmem:[%s3321_s1 + $0x68] sm:$0xff] }
  0x8c   : > { %642 = vmatpush1.bf16.msra.mxu0 %v2910_v34  ;;  %2772 = vmatpush1.bf16.msra.mxu1 %v2910_v34  ;;  %v342_v34 = vld [vmem:[%s3321_s1 + $0x78] sm:$0xff] }
  0x8d   : > { %643 = vmatprep.subr.bf16.mxu0 %v2911_v35  ;;  %2757 = vmatprep.subr.bf16.mxu1 %v2911_v35  ;;  %v356_v35 = vld [vmem:[%s3321_s1 + $0xe8] sm:$0xff] }
  0x90   : > { %644 = vmatpush1.bf16.msra.mxu0 %v2913_v36  ;;  %2773 = vmatpush1.bf16.msra.mxu1 %v2913_v36  ;;  %v358_v36 = vld [vmem:[%s3321_s1 + $0xf8] sm:$0xff] }
  0x91   : > { %645 = vmatprep.subr.bf16.mxu0 %v2914_v37  ;;  %2758 = vmatprep.subr.bf16.mxu1 %v2914_v37  ;;  %v379_v37 = vsub.f32 %v335_v27, %v3358_v46 }
  0x94   : > { %646 = vmatpush1.bf16.msra.mxu0 %v2916_v38  ;;  %2774 = vmatpush1.bf16.msra.mxu1 %v2916_v38  ;;  %v381_v38 = vsub.f32 %v337_v28, %v3358_v46 }
  0x95   : > { %647 = vmatprep.subr.bf16.mxu0 %v2917_v39  ;;  %2759 = vmatprep.subr.bf16.mxu1 %v2917_v39  ;;  %v395_v39 = vsub.f32 %v351_v31, %v3358_v46 }
  0x98   : > { %648 = vmatpush1.bf16.msra.mxu0 %v2919_v40  ;;  %2775 = vmatpush1.bf16.msra.mxu1 %v2919_v40  ;;  %v397_v40 = vsub.f32 %v353_v32, %v3358_v46 }
  0x99   : > { %649 = vmatprep.subr.bf16.mxu0 %v2920_v41  ;;  %2760 = vmatprep.subr.bf16.mxu1 %v2920_v41  ;;  %v384_v41 = vsub.f32 %v340_v33, %v3333_v22 }
  0x9a   : > { %v415_v48 = vpack.c.bf16 %v397_v40, %v395_v39 }
  0x9c   : > { %650 = vmatpush1.bf16.msra.mxu0 %v2922_v43  ;;  %2776 = vmatpush1.bf16.msra.mxu1 %v2922_v43  ;;  %v386_v43 = vsub.f32 %v342_v34, %v3333_v22 }
  0x9d   : > { %651 = vmatprep.subr.bf16.mxu0 %v2923_v44  ;;  %2761 = vmatprep.subr.bf16.mxu1 %v2923_v44  ;;  %v400_v44 = vsub.f32 %v356_v35, %v3333_v22 }
  0x9e   : > { %v410_v50 = vpack.c.bf16 %v386_v43, %v384_v41 }
  0xa0   : > { %652 = vmatpush1.bf16.msra.mxu0 %v2925_v45  ;;  %2777 = vmatpush1.bf16.msra.mxu1 %v2925_v45  ;;  %v402_v45 = vsub.f32 %v358_v36, %v3333_v22  ;;  %v401_v22 = vsub.f32 %v357_v54, %v3358_v46  ;;  %v3429_v46 = vrot.slane %v451_v60, %v363_v42 }
  0xa1   : > { %653 = vmatprep.subr.bf16.mxu0 %v2926_v47  ;;  %2762 = vmatprep.subr.bf16.mxu1 %v2926_v47  ;;  %v407_v47 = vpack.c.bf16 %v381_v38, %v379_v37 }
  0xa2   : > { %v418_v51 = vpack.c.bf16 %v402_v45, %v400_v44  ;;  %v417_v59 = vpack.c.bf16 %v401_v22, %v399_v57 }
  0xa4   : > { %654 = vmatpush1.bf16.msra.mxu0 %v2928_v61  ;;  %2778 = vmatpush1.bf16.msra.mxu1 %v2928_v61  ;;  %v3433_v61 = vrot.slane %v451_v60, %v367_v14 }
  0xa7   : > { %656 = vmatmul.mubr.bf16.vlgmr.msra.gmra.mrb[0].mxu0 %v403_v1  ;;  %696 = vmatmul.mubr.bf16.vlgmr.msra.gmra.mrb[0].mxu1 %v411_v2 }
  0xa8   : > { %665 = vmatprep.mubr.bf16.mxu0 %v406_v5  ;;  %705 = vmatprep.mubr.bf16.mxu1 %v414_v6 }
  0xaf   : > { %666 = vmatmul.mubr.bf16.gmra.mrb[4].mxu0 %v405_v25  ;;  %706 = vmatmul.mubr.bf16.gmra.mrb[4].mxu1 %v413_v26 }
  0xb0   : > { %675 = vmatprep.mubr.bf16.mxu0 %v408_v29  ;;  %715 = vmatprep.mubr.bf16.mxu1 %v416_v30 }
  0xb7   : > { %676 = vmatmul.mubr.bf16.gmra.mrb[8].mxu0 %v407_v47  ;;  %716 = vmatmul.mubr.bf16.gmra.mrb[8].mxu1 %v415_v48 }
  0xb8   : > { %685 = vmatprep.mubr.bf16.mxu0 %v410_v50  ;;  %725 = vmatprep.mubr.bf16.mxu1 %v418_v51 }
  0xbf   : > { %686 = vmatmul.mubr.bf16.gmra.mrb[12].mxu0 %v409_v58  ;;  %726 = vmatmul.mubr.bf16.gmra.mrb[12].mxu1 %v417_v59 }
 0x17a   : > { %v657_v62 = vpop.f32.mrb[0].mxu0  ;;  %v697_v63 = vpop.f32.mrb[0].mxu1 }
 0x17b   : > { %v3436_v0 = vadd.f32 %v657_v62, %v3429_v46  ;;  %v3439_v1 = vadd.f32 %v697_v63, %v3429_v46  ;;  %v659_v2 = vpop.f32.mrb[1].mxu0  ;;  %v699_v3 = vpop.f32.mrb[1].mxu1 }
 0x17c   : > { %v3442_v4 = vadd.f32 %v659_v2, %v3433_v61  ;;  %v3445_v42 = vadd.f32 %v699_v3, %v3433_v61  ;;  %v661_v5 = vpop.f32.mrb[2].mxu0  ;;  %v701_v11 = vpop.f32.mrb[2].mxu1 }
 0x17d   : > { %736 = vst [vmem:[%s3447_s18] sm:$0xff] %v3436_v0  ;;  %752 = vst [vmem:[%s3447_s18 + $0x80] sm:$0xff] %v3439_v1  ;;  %v3454_v14 = vadd.f32 %v661_v5, %v3429_v46  ;;  %v3457_v6 = vadd.f32 %v701_v11, %v3429_v46  ;;  %v663_v7 = vpop.f32.mrb[3].mxu0  ;;  %v703_v9 = vpop.f32.mrb[3].mxu1 }
 0x17e   : > { %737 = vst [vmem:[%s3447_s18 + $0x8] sm:$0xff] %v3442_v4  ;;  %753 = vst [vmem:[%s3447_s18 + $0x88] sm:$0xff] %v3445_v42  ;;  %v3464_v10 = vadd.f32 %v663_v7, %v3433_v61  ;;  %v3467_v12 = vadd.f32 %v703_v9, %v3433_v61 }
 0x17f   : > { %738 = vst [vmem:[%s3447_s18 + $0x10] sm:$0xff] %v3454_v14  ;;  %754 = vst [vmem:[%s3447_s18 + $0x90] sm:$0xff] %v3457_v6 }
 0x180   : > { %739 = vst [vmem:[%s3447_s18 + $0x18] sm:$0xff] %v3464_v10  ;;  %755 = vst [vmem:[%s3447_s18 + $0x98] sm:$0xff] %v3467_v12 }
 0x182   : > { %v667_v13 = vpop.f32.mrb[4].mxu0  ;;  %v707_v15 = vpop.f32.mrb[4].mxu1 }
 0x183   : > { %v3478_v16 = vadd.f32 %v667_v13, %v3429_v46  ;;  %v3481_v17 = vadd.f32 %v707_v15, %v3429_v46  ;;  %v669_v18 = vpop.f32.mrb[5].mxu0  ;;  %v709_v19 = vpop.f32.mrb[5].mxu1 }
 0x184   : > { %v3484_v20 = vadd.f32 %v669_v18, %v3433_v61  ;;  %v3487_v21 = vadd.f32 %v709_v19, %v3433_v61  ;;  %v671_v23 = vpop.f32.mrb[6].mxu0  ;;  %v711_v24 = vpop.f32.mrb[6].mxu1 }
 0x185   : > { %740 = vst [vmem:[%s3447_s18 + $0x20] sm:$0xff] %v3478_v16  ;;  %756 = vst [vmem:[%s3447_s18 + $0xa0] sm:$0xff] %v3481_v17  ;;  %v3494_v25 = vadd.f32 %v671_v23, %v3429_v46  ;;  %v3497_v26 = vadd.f32 %v711_v24, %v3429_v46  ;;  %v673_v27 = vpop.f32.mrb[7].mxu0  ;;  %v713_v28 = vpop.f32.mrb[7].mxu1 }
 0x186   : > { %741 = vst [vmem:[%s3447_s18 + $0x28] sm:$0xff] %v3484_v20  ;;  %757 = vst [vmem:[%s3447_s18 + $0xa8] sm:$0xff] %v3487_v21  ;;  %v3504_v29 = vadd.f32 %v673_v27, %v3433_v61  ;;  %v3507_v30 = vadd.f32 %v713_v28, %v3433_v61 }
 0x187   : > { %742 = vst [vmem:[%s3447_s18 + $0x30] sm:$0xff] %v3494_v25  ;;  %758 = vst [vmem:[%s3447_s18 + $0xb0] sm:$0xff] %v3497_v26 }
 0x188   : > { %743 = vst [vmem:[%s3447_s18 + $0x38] sm:$0xff] %v3504_v29  ;;  %759 = vst [vmem:[%s3447_s18 + $0xb8] sm:$0xff] %v3507_v30 }
 0x18a   : > { %v677_v31 = vpop.f32.mrb[8].mxu0  ;;  %v717_v32 = vpop.f32.mrb[8].mxu1 }
 0x18b   : > { %v3518_v33 = vadd.f32 %v677_v31, %v3429_v46  ;;  %v3521_v34 = vadd.f32 %v717_v32, %v3429_v46  ;;  %v679_v35 = vpop.f32.mrb[9].mxu0  ;;  %v719_v36 = vpop.f32.mrb[9].mxu1 }
 0x18c   : > { %v3524_v37 = vadd.f32 %v679_v35, %v3433_v61  ;;  %v3527_v38 = vadd.f32 %v719_v36, %v3433_v61  ;;  %v681_v39 = vpop.f32.mrb[10].mxu0  ;;  %v721_v40 = vpop.f32.mrb[10].mxu1 }
 0x18d   : > { %744 = vst [vmem:[%s3447_s18 + $0x40] sm:$0xff] %v3518_v33  ;;  %760 = vst [vmem:[%s3447_s18 + $0xc0] sm:$0xff] %v3521_v34  ;;  %v3534_v41 = vadd.f32 %v681_v39, %v3429_v46  ;;  %v3537_v43 = vadd.f32 %v721_v40, %v3429_v46  ;;  %v683_v44 = vpop.f32.mrb[11].mxu0  ;;  %v723_v45 = vpop.f32.mrb[11].mxu1 }
 0x18e   : > { %745 = vst [vmem:[%s3447_s18 + $0x48] sm:$0xff] %v3524_v37  ;;  %761 = vst [vmem:[%s3447_s18 + $0xc8] sm:$0xff] %v3527_v38  ;;  %v684_v47 = vadd.f32 %v683_v44, %v3433_v61  ;;  %v3545_v48 = vadd.f32 %v723_v45, %v3433_v61 }
 0x18f   : > { %746 = vst [vmem:[%s3447_s18 + $0x50] sm:$0xff] %v3534_v41  ;;  %762 = vst [vmem:[%s3447_s18 + $0xd0] sm:$0xff] %v3537_v43 }
 0x190   : > { %747 = vst [vmem:[%s3447_s18 + $0x58] sm:$0xff] %v684_v47  ;;  %763 = vst [vmem:[%s3447_s18 + $0xd8] sm:$0xff] %v3545_v48 }
 0x192   : > { %v687_v49 = vpop.f32.mrb[12].mxu0  ;;  %v727_v50 = vpop.f32.mrb[12].mxu1  ;;  %771 = sbr.rel (%p2735_p13) target bundleno = 417 (0x1a1), region = 48 }
 0x193   : > { %v3555_v51 = vadd.f32 %v687_v49, %v3429_v46  ;;  %v3558_v52 = vadd.f32 %v727_v50, %v3429_v46  ;;  %v689_v53 = vpop.f32.mrb[13].mxu0  ;;  %v729_v54 = vpop.f32.mrb[13].mxu1 }
 0x194   : > { %v690_v55 = vadd.f32 %v689_v53, %v3433_v61  ;;  %v3562_v56 = vadd.f32 %v729_v54, %v3433_v61  ;;  %v691_v57 = vpop.f32.mrb[14].mxu0  ;;  %v731_v22 = vpop.f32.mrb[14].mxu1 }
 0x195   : > { %748 = vst [vmem:[%s3447_s18 + $0x60] sm:$0xff] %v3555_v51  ;;  %764 = vst [vmem:[%s3447_s18 + $0xe0] sm:$0xff] %v3558_v52  ;;  %v692_v58 = vadd.f32 %v691_v57, %v3429_v46  ;;  %v3570_v59 = vadd.f32 %v731_v22, %v3429_v46  ;;  %v693_v60 = vpop.f32.mrb[15].mxu0  ;;  %v733_v62 = vpop.f32.mrb[15].mxu1  ;;  %v3080_v46 = vmov (!%p2735_p13), -inf  }
 0x196   : > { %749 = vst [vmem:[%s3447_s18 + $0x68] sm:$0xff] %v690_v55  ;;  %765 = vst [vmem:[%s3447_s18 + $0xe8] sm:$0xff] %v3562_v56  ;;  %v694_v63 = vadd.f32 %v693_v60, %v3433_v61  ;;  %v3577_v2 = vadd.f32 %v733_v62, %v3433_v61 }
 0x197   : > { %750 = vst [vmem:[%s3447_s18 + $0x70] sm:$0xff] %v692_v58  ;;  %766 = vst [vmem:[%s3447_s18 + $0xf0] sm:$0xff] %v3570_v59 }
 0x198   : > { %751 = vst [vmem:[%s3447_s18 + $0x78] sm:$0xff] %v694_v63  ;;  %767 = vst [vmem:[%s3447_s18 + $0xf8] sm:$0xff] %v3577_v2 }
 0x199   : > { %772 = vst [vmem:[#allocation2] sm:$0xff] %v3080_v46  ;;  %773 = vst [vmem:[#allocation2 + $0x8] sm:$0xff] %v3080_v46 }
 0x19a   : > { %774 = vst [vmem:[#allocation2 + $0x10] sm:$0xff] %v3080_v46  ;;  %775 = vst [vmem:[#allocation2 + $0x18] sm:$0xff] %v3080_v46 }
 0x19b   : > { %776 = vst [vmem:[#allocation2 + $0x20] sm:$0xff] %v3080_v46  ;;  %777 = vst [vmem:[#allocation2 + $0x28] sm:$0xff] %v3080_v46 }
 0x19c   : > { %778 = vst [vmem:[#allocation2 + $0x30] sm:$0xff] %v3080_v46  ;;  %779 = vst [vmem:[#allocation2 + $0x38] sm:$0xff] %v3080_v46 }
 0x19d   : > { %780 = vst [vmem:[#allocation2 + $0x40] sm:$0xff] %v3080_v46  ;;  %781 = vst [vmem:[#allocation2 + $0x48] sm:$0xff] %v3080_v46 }
 0x19e   : > { %782 = vst [vmem:[#allocation2 + $0x50] sm:$0xff] %v3080_v46  ;;  %783 = vst [vmem:[#allocation2 + $0x58] sm:$0xff] %v3080_v46 }
 0x19f   : > { %784 = vst [vmem:[#allocation2 + $0x60] sm:$0xff] %v3080_v46  ;;  %785 = vst [vmem:[#allocation2 + $0x68] sm:$0xff] %v3080_v46 }
 0x1a0   : > { %786 = vst [vmem:[#allocation2 + $0x70] sm:$0xff] %v3080_v46  ;;  %787 = vst [vmem:[#allocation2 + $0x78] sm:$0xff] %v3080_v46 }
 0x1a1 PF: > { %v3587_v61 = vmax.f32 %v3478_v16, 0.0  ;;  %v3590_v3 = vmax.f32 %v3484_v20, 0.0  ;;  %v3593_v5 = vmax.f32 %v3436_v0, 0.0  ;;  %v3596_v11 = vmax.f32 %v3442_v4, 0.0  ;;  %v823_v54 = vld [vmem:[#allocation2 + $0x18] sm:$0xff]  ;;  %p2736_p3 = scmp.ne.s32.totalorder %s3057_s23, 3 }
 0x1a2   : > { %v3599_v7 = vmax.f32 %v3494_v25, 0.0  ;;  %v3602_v9 = vmax.f32 %v3504_v29, 0.0  ;;  %v3605_v13 = vmax.f32 %v3454_v14, 0.0  ;;  %v3608_v15 = vmax.f32 %v3464_v10, 0.0 }
 0x1a3   : > { %v844_v16 = vmax.f32 %v3587_v61, %v3590_v3  ;;  %v838_v0 = vmax.f32 %v3593_v5, %v3596_v11  ;;  %v3615_v4 = vmax.f32 %v3534_v41, 0.0  ;;  %v3617_v18 = vmax.f32 %v684_v47, 0.0  ;;  %v3716_v57 = vld [vmem:[#allocation2 + $0x38] sm:$0xff]  ;;  %v3718_v22 = vld [vmem:[#allocation2 + $0x30] sm:$0xff] }
 0x1a4   : > { %v847_v14 = vmax.f32 %v3599_v7, %v3602_v9  ;;  %v841_v10 = vmax.f32 %v3605_v13, %v3608_v15  ;;  %v3624_v19 = vmax.f32 %v3518_v33, 0.0  ;;  %v3627_v20 = vmax.f32 %v3524_v37, 0.0 }
 0x1a5   : > { %845 = vmax.xlane.f32.xlu1 %v844_v16  ;;  %839 = vmax.xlane.f32.xlu0 %v838_v0  ;;  %v853_v23 = vmax.f32 %v3615_v4, %v3617_v18  ;;  %v3631_v24 = vmax.f32 %v692_v58, 0.0  ;;  %v3635_v27 = vmax.f32 %v694_v63, 0.0  ;;  %v3638_v28 = vmax.f32 %v3555_v51, 0.0  ;;  %v3722_v58 = vld [vmem:[#allocation2 + $0x48] sm:$0xff]  ;;  %v3728_v60 = vld [vmem:[#allocation2 + $0x58] sm:$0xff]  ;;  %v3730_v62 = vld [vmem:[#allocation2 + $0x50] sm:$0xff] }
 0x1a6   : > { %v850_v25 = vmax.f32 %v3624_v19, %v3627_v20  ;;  %v3640_v29 = vmax.f32 %v690_v55, 0.0  ;;  %v3643_v31 = vmax.f32 %v3457_v6, 0.0  ;;  %v3646_v32 = vmax.f32 %v3467_v12, 0.0  ;;  %v3710_v55 = vld [vmem:[#allocation2 + $0x28] sm:$0xff] }
 0x1a7   : > { %v859_v33 = vmax.f32 %v3631_v24, %v3635_v27  ;;  %v3653_v36 = vmax.f32 %v3439_v1, 0.0  ;;  %v3656_v37 = vmax.f32 %v3445_v42, 0.0  ;;  %v3661_v12 = vmax.f32 %v3497_v26, 0.0  ;;  %v3734_v63 = vld [vmem:[#allocation2 + $0x68] sm:$0xff]  ;;  %v3740_v46 = vld [vmem:[#allocation2 + $0x78] sm:$0xff]  ;;  %v3742_v16 = vld [vmem:[#allocation2 + $0x70] sm:$0xff] }
 0x1a8   : > { %v856_v35 = vmax.f32 %v3638_v28, %v3640_v29  ;;  %v865_v6 = vmax.f32 %v3643_v31, %v3646_v32  ;;  %v3666_v40 = vmax.f32 %v3507_v30, 0.0  ;;  %v3669_v1 = vmax.f32 %v3481_v17, 0.0  ;;  %v821_v51 = vld [vmem:[#allocation2 + $0x8] sm:$0xff]  ;;  %v820_v53 = vld [vmem:[#allocation2] sm:$0xff]  ;;  %7102 = vst [vmem:[#allocation21_spill] sm:$0xff] %v3740_v46  ;;  %7103 = vst [vmem:[#allocation22_spill] sm:$0xff] %v3742_v16 }
 0x1a9   : > { %848 = vmax.xlane.f32.xlu1 %v847_v14  ;;  %842 = vmax.xlane.f32.xlu0 %v841_v10  ;;  %v862_v39 = vmax.f32 %v3653_v36, %v3656_v37  ;;  %v3672_v42 = vmax.f32 %v3487_v21, 0.0  ;;  %v3675_v41 = vmax.f32 %v3537_v43, 0.0  ;;  %v3678_v26 = vmax.f32 %v3545_v48, 0.0 }
 0x1aa   : > { %v871_v44 = vmax.f32 %v3661_v12, %v3666_v40  ;;  %v3685_v17 = vmax.f32 %v3521_v34, 0.0  ;;  %v3688_v21 = vmax.f32 %v3527_v38, 0.0  ;;  %v3693_v45 = vmax.f32 %v3570_v59, 0.0  ;;  %v3724_v59 = vld [vmem:[#allocation2 + $0x40] sm:$0xff] }
 0x1ab   : > { %7094 = vst [vmem:[#allocation13_spill] sm:$0xff] %v3675_v41  ;;  %7095 = vst [vmem:[#allocation14_spill] sm:$0xff] %v3678_v26  ;;  %v868_v30 = vmax.f32 %v3669_v1, %v3672_v42  ;;  %v877_v43 = vmax.f32 %v3675_v41, %v3678_v26  ;;  %v3698_v48 = vmax.f32 %v3577_v2, 0.0  ;;  %v3701_v34 = vmax.f32 %v3558_v52, 0.0  ;;  %v822_v52 = vld [vmem:[#allocation2 + $0x10] sm:$0xff]  ;;  %v3736_v2 = vld [vmem:[#allocation2 + $0x60] sm:$0xff] }
 0x1ac   : > { %7096 = vst [vmem:[#allocation15_spill] sm:$0xff] %v3685_v17  ;;  %7097 = vst [vmem:[#allocation16_spill] sm:$0xff] %v3688_v21  ;;  %v874_v47 = vmax.f32 %v3685_v17, %v3688_v21  ;;  %v3704_v38 = vmax.f32 %v3562_v56, 0.0  ;;  %v3712_v56 = vld [vmem:[#allocation2 + $0x20] sm:$0xff] }
 0x1ad   : > { %854 = vmax.xlane.f32.xlu1 %v853_v23  ;;  %851 = vmax.xlane.f32.xlu0 %v850_v25  ;;  %7098 = vst [vmem:[#allocation17_spill] sm:$0xff] %v3693_v45  ;;  %7099 = vst [vmem:[#allocation18_spill] sm:$0xff] %v3698_v48  ;;  %v883_v49 = vmax.f32 %v3693_v45, %v3698_v48 }
 0x1ae   : > { %7100 = vst [vmem:[#allocation19_spill] sm:$0xff] %v3701_v34  ;;  %7101 = vst [vmem:[#allocation20_spill] sm:$0xff] %v3704_v38  ;;  %v880_v50 = vmax.f32 %v3701_v34, %v3704_v38 }
 0x1b1   : > { %860 = vmax.xlane.f32.xlu1 %v859_v33  ;;  %857 = vmax.xlane.f32.xlu0 %v856_v35 }
 0x1b5   : > { %866 = vmax.xlane.f32.xlu1 %v865_v6  ;;  %863 = vmax.xlane.f32.xlu0 %v862_v39 }
 0x1b9   : > { %872 = vmax.xlane.f32.xlu1 %v871_v44  ;;  %869 = vmax.xlane.f32.xlu0 %v868_v30 }
 0x1bd   : > { %878 = vmax.xlane.f32.xlu1 %v877_v43  ;;  %875 = vmax.xlane.f32.xlu0 %v874_v47 }
 0x1c1   : > { %884 = vmax.xlane.f32.xlu1 %v883_v49  ;;  %881 = vmax.xlane.f32.xlu0 %v880_v50 }
 0x1c5   : > { %888 = vmax.xlane.f32.xlu1 %v821_v51  ;;  %886 = vmax.xlane.f32.xlu0 %v820_v53 }
 0x1c9   : > { %892 = vmax.xlane.f32.xlu1 %v823_v54  ;;  %890 = vmax.xlane.f32.xlu0 %v822_v52 }
 0x1cd   : > { %896 = vmax.xlane.f32.xlu1 %v3710_v55  ;;  %894 = vmax.xlane.f32.xlu0 %v3712_v56 }
 0x1d1   : > { %900 = vmax.xlane.f32.xlu1 %v3716_v57  ;;  %898 = vmax.xlane.f32.xlu0 %v3718_v22 }
 0x1d5   : > { %904 = vmax.xlane.f32.xlu1 %v3722_v58  ;;  %902 = vmax.xlane.f32.xlu0 %v3724_v59 }
 0x1d9   : > { %908 = vmax.xlane.f32.xlu1 %v3728_v60  ;;  %906 = vmax.xlane.f32.xlu0 %v3730_v62 }
 0x1dd   : > { %912 = vmax.xlane.f32.xlu1 %v3734_v63  ;;  %910 = vmax.xlane.f32.xlu0 %v3736_v2 }
 0x1e1   : > { %916 = vmax.xlane.f32.xlu1 %v3740_v46  ;;  %914 = vmax.xlane.f32.xlu0 %v3742_v16 }
 0x232   : > { %v846_v0 = vpop.xlane.xlu1 %845  ;;  %v840_v14 = vpop.xlane.xlu0 %839 }
 0x236   : > { %v849_v10 = vpop.xlane.xlu1 %848  ;;  %v843_v23 = vpop.xlane.xlu0 %842 }
 0x23a   : > { %v855_v25 = vpop.xlane.xlu1 %854  ;;  %v852_v33 = vpop.xlane.xlu0 %851 }
 0x23e   : > { %v861_v35 = vpop.xlane.xlu1 %860  ;;  %v858_v6 = vpop.xlane.xlu0 %857 }
 0x242   : > { %v867_v39 = vpop.xlane.xlu1 %866  ;;  %v864_v44 = vpop.xlane.xlu0 %863 }
 0x246   : > { %v873_v30 = vpop.xlane.xlu1 %872  ;;  %v870_v43 = vpop.xlane.xlu0 %869 }
 0x24a   : > { %v3746_v47 = vpop.xlane.xlu1 %878  ;;  %v3748_v49 = vpop.xlane.xlu0 %875 }
 0x24e   : > { %v3750_v50 = vpop.xlane.xlu1 %884  ;;  %v3752_v8 = vpop.xlane.xlu0 %881 }
 0x252   : > { %v889_v16 = vpop.xlane.xlu1 %888  ;;  %v887_v46 = vpop.xlane.xlu0 %886 }
 0x253   : > { %v3754_v38 = vmax.f32 %v843_v23, %v889_v16  ;;  %v3756_v34 = vmax.f32 %v840_v14, %v887_v46 }
 0x255   : > { %vm1016_vm0 = vcmp.ge.f32.partialorder %v821_v51, %v3754_v38  ;;  %vm1015_vm1 = vcmp.ge.f32.partialorder %v820_v53, %v3756_v34  ;;  %vm953_vm12 = vcmp.ge.f32.partialorder %v3605_v13, %v3754_v38  ;;  %vm954_vm13 = vcmp.ge.f32.partialorder %v3608_v15, %v3754_v38 }
 0x256   : > { %v893_v48 = vpop.xlane.xlu1 %892  ;;  %v891_v45 = vpop.xlane.xlu0 %890  ;;  %v3760_v21 = vsel %vm1016_vm0, -inf, %v821_v51  ;;  %v3762_v17 = vsel %vm1015_vm1, -inf, %v820_v53  ;;  %vm951_vm14 = vcmp.ge.f32.partialorder %v3593_v5, %v3756_v34  ;;  %vm952_vm15 = vcmp.ge.f32.partialorder %v3596_v11, %v3756_v34 }
 0x257   : > { %v3764_v26 = vmax.f32 %v849_v10, %v893_v48  ;;  %v3766_v41 = vmax.f32 %v846_v0, %v891_v45  ;;  %1097 = vmax.xlane.f32.xlu1 %v3760_v21  ;;  %1095 = vmax.xlane.f32.xlu0 %v3762_v17 }
 0x259   : > { %vm1018_vm2 = vcmp.ge.f32.partialorder %v823_v54, %v3764_v26  ;;  %vm1017_vm3 = vcmp.ge.f32.partialorder %v822_v52, %v3766_v41 }
 0x25a   : > { %v897_v46 = vpop.xlane.xlu1 %896  ;;  %v895_v16 = vpop.xlane.xlu0 %894  ;;  %v3772_v14 = vsel %vm1018_vm2, -inf, %v823_v54  ;;  %v3774_v51 = vsel %vm1017_vm3, -inf, %v822_v52  ;;  %vm957_vm2 = vcmp.ge.f32.partialorder %v3599_v7, %v3764_v26  ;;  %vm958_vm3 = vcmp.ge.f32.partialorder %v3602_v9, %v3764_v26 }
 0x25b   : > { %v3776_v53 = vmax.f32 %v855_v25, %v897_v46  ;;  %v3778_v48 = vmax.f32 %v852_v33, %v895_v16  ;;  %1101 = vmax.xlane.f32.xlu1 %v3772_v14  ;;  %1099 = vmax.xlane.f32.xlu0 %v3774_v51 }
 0x25d   : > { %vm1020_vm4 = vcmp.ge.f32.partialorder %v3710_v55, %v3776_v53  ;;  %vm1019_vm5 = vcmp.ge.f32.partialorder %v3712_v56, %v3778_v48 }
 0x25e   : > { %v901_v45 = vpop.xlane.xlu1 %900  ;;  %v899_v0 = vpop.xlane.xlu0 %898  ;;  %v3787_v54 = vsel %vm1020_vm4, -inf, %v3710_v55  ;;  %v3790_v52 = vsel %vm1019_vm5, -inf, %v3712_v56  ;;  %vm955_vm4 = vcmp.ge.f32.partialorder %v3587_v61, %v3766_v41  ;;  %vm956_vm5 = vcmp.ge.f32.partialorder %v3590_v3, %v3766_v41 }
 0x25f   : > { %v3792_v10 = vmax.f32 %v861_v35, %v901_v45  ;;  %v3794_v23 = vmax.f32 %v858_v6, %v899_v0  ;;  %1105 = vmax.xlane.f32.xlu1 %v3787_v54  ;;  %1103 = vmax.xlane.f32.xlu0 %v3790_v52 }
 0x261   : > { %vm1022_vm6 = vcmp.ge.f32.partialorder %v3716_v57, %v3792_v10  ;;  %vm1021_vm7 = vcmp.ge.f32.partialorder %v3718_v22, %v3794_v23 }
 0x262   : > { %v905_v25 = vpop.xlane.xlu1 %904  ;;  %v903_v55 = vpop.xlane.xlu0 %902  ;;  %v3803_v33 = vsel %vm1022_vm6, -inf, %v3716_v57  ;;  %v3806_v56 = vsel %vm1021_vm7, -inf, %v3718_v22  ;;  %vm961_vm6 = vcmp.ge.f32.partialorder %v3615_v4, %v3776_v53  ;;  %vm962_vm7 = vcmp.ge.f32.partialorder %v3617_v18, %v3776_v53 }
 0x263   : > { %v3808_v35 = vmax.f32 %v867_v39, %v905_v25  ;;  %v3810_v6 = vmax.f32 %v864_v44, %v903_v55  ;;  %1109 = vmax.xlane.f32.xlu1 %v3803_v33  ;;  %1107 = vmax.xlane.f32.xlu0 %v3806_v56  ;;  %v3902_v55 = vsel %vm956_vm5, -inf, %v3590_v3 }
 0x265   : > { %vm1024_vm8 = vcmp.ge.f32.partialorder %v3722_v58, %v3808_v35  ;;  %vm1023_vm9 = vcmp.ge.f32.partialorder %v3724_v59, %v3810_v6 }
 0x266   : > { %v909_v46 = vpop.xlane.xlu1 %908  ;;  %v907_v57 = vpop.xlane.xlu0 %906  ;;  %v3819_v16 = vsel %vm1024_vm8, -inf, %v3722_v58  ;;  %v3822_v22 = vsel %vm1023_vm9, -inf, %v3724_v59  ;;  %vm959_vm8 = vcmp.ge.f32.partialorder %v3624_v19, %v3778_v48  ;;  %vm960_vm9 = vcmp.ge.f32.partialorder %v3627_v20, %v3778_v48 }
 0x267   : > { %v3824_v39 = vmax.f32 %v873_v30, %v909_v46  ;;  %v3826_v44 = vmax.f32 %v870_v43, %v907_v57  ;;  %1113 = vmax.xlane.f32.xlu1 %v3819_v16  ;;  %1111 = vmax.xlane.f32.xlu0 %v3822_v22  ;;  %v3923_v46 = vsel %vm959_vm8, -inf, %v3624_v19  ;;  %v3926_v57 = vsel %vm960_vm9, -inf, %v3627_v20 }
 0x269   : > { %vm1026_vm10 = vcmp.ge.f32.partialorder %v3728_v60, %v3824_v39  ;;  %vm1025_vm11 = vcmp.ge.f32.partialorder %v3730_v62, %v3826_v44  ;;  %vm972_vm5 = vcmp.ge.f32.partialorder %v3672_v42, %v3826_v44 }
 0x26a   : > { %v913_v58 = vpop.xlane.xlu1 %912  ;;  %v911_v59 = vpop.xlane.xlu0 %910  ;;  %v3837_v30 = vsel %vm1026_vm10, -inf, %v3728_v60  ;;  %v3840_v43 = vsel %vm1025_vm11, -inf, %v3730_v62  ;;  %v3857_v60 = vsel %vm953_vm12, -inf, %v3605_v13  ;;  %v3864_v62 = vsel %vm954_vm13, -inf, %v3608_v15 }
 0x26b   : > { %v3847_v45 = vmax.f32 %v3746_v47, %v913_v58  ;;  %v3850_v0 = vmax.f32 %v3748_v49, %v911_v59  ;;  %1117 = vmax.xlane.f32.xlu1 %v3837_v30  ;;  %1115 = vmax.xlane.f32.xlu0 %v3840_v43  ;;  %v3867_v47 = vsel %vm951_vm14, -inf, %v3593_v5  ;;  %v3876_v13 = vsel %vm952_vm15, -inf, %v3596_v11 }
 0x26c   : > { %v1050_v5 = vmax.f32 %v3857_v60, %v3864_v62  ;;  %v1047_v11 = vmax.f32 %v3867_v47, %v3876_v13  ;;  %v3893_v15 = vsel %vm957_vm2, -inf, %v3599_v7  ;;  %v3917_v7 = vsel %vm961_vm6, -inf, %v3615_v4 }
 0x26d   : > { %vm1028_vm0 = vcmp.ge.f32.partialorder %v3734_v63, %v3847_v45  ;;  %vm1027_vm1 = vcmp.ge.f32.partialorder %v3736_v2, %v3850_v0  ;;  %vm965_vm10 = vcmp.ge.f32.partialorder %v3631_v24, %v3792_v10  ;;  %vm966_vm11 = vcmp.ge.f32.partialorder %v3635_v27, %v3792_v10 }
 0x26e   : > { %v3870_v49 = vsel %vm1028_vm0, -inf, %v3734_v63  ;;  %v3873_v25 = vsel %vm1027_vm1, -inf, %v3736_v2  ;;  %v3896_v63 = vsel %vm958_vm3, -inf, %v3602_v9  ;;  %v3899_v2 = vsel %vm955_vm4, -inf, %v3587_v61 }
 0x26f   : > { %1121 = vmax.xlane.f32.xlu1 %v3870_v49  ;;  %1119 = vmax.xlane.f32.xlu0 %v3873_v25  ;;  %v1056_v61 = vmax.f32 %v3893_v15, %v3896_v63  ;;  %v1053_v3 = vmax.f32 %v3899_v2, %v3902_v55  ;;  %v3920_v9 = vsel %vm962_vm7, -inf, %v3617_v18  ;;  %vm963_vm12 = vcmp.ge.f32.partialorder %v3638_v28, %v3794_v23 }
 0x270   : > { %vm964_vm13 = vcmp.ge.f32.partialorder %v3640_v29, %v3794_v23  ;;  %v1062_v4 = vmax.f32 %v3917_v7, %v3920_v9  ;;  %v1059_v18 = vmax.f32 %v3923_v46, %v3926_v57  ;;  %v3941_v19 = vsel %vm965_vm10, -inf, %v3631_v24  ;;  %v917_v24 = vpop.xlane.xlu1 %916 }
 0x271   : > { %7104 = vst [vmem:[#allocation23_spill] sm:$0xff] %v3941_v19  ;;  %v3944_v20 = vsel %vm966_vm11, -inf, %v3635_v27  ;;  %v3947_v58 = vsel %vm963_vm12, -inf, %v3638_v28  ;;  %v3950_v59 = vsel %vm964_vm13, -inf, %v3640_v29  ;;  %vm969_vm14 = vcmp.ge.f32.partialorder %v3643_v31, %v3808_v35 }
 0x272   : > { %7105 = vst [vmem:[#allocation24_spill] sm:$0xff] %v3944_v20  ;;  %7106 = vst [vmem:[#allocation25_spill] sm:$0xff] %v3947_v58  ;;  %vm970_vm15 = vcmp.ge.f32.partialorder %v3646_v32, %v3808_v35  ;;  %vm967_vm0 = vcmp.ge.f32.partialorder %v3653_v36, %v3810_v6  ;;  %vm968_vm1 = vcmp.ge.f32.partialorder %v3656_v37, %v3810_v6  ;;  %v3965_v29 = vsel %vm969_vm14, -inf, %v3643_v31 }
 0x273   : > { %1051 = vmax.xlane.f32.xlu1 %v1050_v5  ;;  %1048 = vmax.xlane.f32.xlu0 %v1047_v11  ;;  %7107 = vst [vmem:[#allocation26_spill] sm:$0xff] %v3950_v59  ;;  %v1068_v27 = vmax.f32 %v3941_v19, %v3944_v20  ;;  %v1065_v28 = vmax.f32 %v3947_v58, %v3950_v59  ;;  %7108 = vst [vmem:[#allocation27_spill] sm:$0xff] %v3965_v29  ;;  %v915_v5 = vpop.xlane.xlu0 %914  ;;  %v3968_v11 = vsel %vm970_vm15, -inf, %v3646_v32 }
 0x274   : > { %7109 = vst [vmem:[#allocation28_spill] sm:$0xff] %v3968_v11  ;;  %vm973_vm2 = vcmp.ge.f32.partialorder %v3661_v12, %v3824_v39  ;;  %vm974_vm3 = vcmp.ge.f32.partialorder %v3666_v40, %v3824_v39  ;;  %vm971_vm4 = vcmp.ge.f32.partialorder %v3669_v1, %v3826_v44  ;;  %v3985_v31 = vmax.f32 %v3750_v50, %v917_v24  ;;  %v7117_v24 = vld [vmem:[#allocation14_spill] sm:$0xff] }
 0x275   : > { %v3988_v32 = vmax.f32 %v3752_v8, %v915_v5  ;;  %v4004_v50 = vsel %vm972_vm5, -inf, %v3672_v42  ;;  %v7116_v8 = vld [vmem:[#allocation13_spill] sm:$0xff]  ;;  %vm978_vm7 = vcmp.ge.f32.partialorder %v7117_v24, %v3847_v45 }
 0x276   : > { %7115 = vst [vmem:[#allocation34_spill] sm:$0xff] %v4004_v50  ;;  %vm977_vm6 = vcmp.ge.f32.partialorder %v7116_v8, %v3847_v45  ;;  %v4022_v5 = vsel %vm978_vm7, -inf, %v7117_v24  ;;  %v7127_v24 = vld [vmem:[#allocation20_spill] sm:$0xff] }
 0x277   : > { %1057 = vmax.xlane.f32.xlu1 %v1056_v61  ;;  %1054 = vmax.xlane.f32.xlu0 %v1053_v3  ;;  %v3971_v61 = vsel %vm967_vm0, -inf, %v3653_v36  ;;  %v3974_v3 = vsel %vm968_vm1, -inf, %v3656_v37  ;;  %v1074_v36 = vmax.f32 %v3965_v29, %v3968_v11  ;;  %7121 = vst [vmem:[#allocation14_spill] sm:$0xff] %v4022_v5  ;;  %vm980_vm13 = vcmp.ge.f32.partialorder %v7127_v24, %v3988_v32 }
 0x278   : > { %7110 = vst [vmem:[#allocation29_spill] sm:$0xff] %v3971_v61  ;;  %7111 = vst [vmem:[#allocation30_spill] sm:$0xff] %v3974_v3  ;;  %v1071_v37 = vmax.f32 %v3971_v61, %v3974_v3  ;;  %v7124_v3 = vld [vmem:[#allocation17_spill] sm:$0xff] }
 0x279   : > { %vm981_vm10 = vcmp.ge.f32.partialorder %v7124_v3, %v3985_v31 }
 0x27b   : > { %1063 = vmax.xlane.f32.xlu1 %v1062_v4  ;;  %1060 = vmax.xlane.f32.xlu0 %v1059_v18  ;;  %v3995_v4 = vsel %vm973_vm2, -inf, %v3661_v12  ;;  %v3998_v18 = vsel %vm974_vm3, -inf, %v3666_v40  ;;  %v7118_v12 = vld [vmem:[#allocation15_spill] sm:$0xff]  ;;  %v7119_v40 = vld [vmem:[#allocation16_spill] sm:$0xff] }
 0x27c   : > { %7112 = vst [vmem:[#allocation31_spill] sm:$0xff] %v3995_v4  ;;  %7113 = vst [vmem:[#allocation32_spill] sm:$0xff] %v3998_v18  ;;  %vm975_vm8 = vcmp.ge.f32.partialorder %v7118_v12, %v3850_v0  ;;  %vm976_vm9 = vcmp.ge.f32.partialorder %v7119_v40, %v3850_v0 }
 0x27f   : > { %1069 = vmax.xlane.f32.xlu1 %v1068_v27  ;;  %1066 = vmax.xlane.f32.xlu0 %v1065_v28  ;;  %v4001_v27 = vsel %vm971_vm4, -inf, %v3669_v1  ;;  %v1080_v1 = vmax.f32 %v3995_v4, %v3998_v18  ;;  %v4019_v28 = vsel %vm977_vm6, -inf, %v7116_v8  ;;  %v7125_v18 = vld [vmem:[#allocation18_spill] sm:$0xff]  ;;  %v7126_v8 = vld [vmem:[#allocation19_spill] sm:$0xff]  ;;  %v7136_v4 = vlaneseq }
 0x280   : > { %7114 = vst [vmem:[#allocation33_spill] sm:$0xff] %v4001_v27  ;;  %v1077_v42 = vmax.f32 %v4001_v27, %v4004_v50  ;;  %7120 = vst [vmem:[#allocation13_spill] sm:$0xff] %v4019_v28  ;;  %vm982_vm11 = vcmp.ge.f32.partialorder %v7125_v18, %v3985_v31  ;;  %vm979_vm12 = vcmp.ge.f32.partialorder %v7126_v8, %v3988_v32  ;;  %v4043_v50 = vsel %vm981_vm10, -inf, %v7124_v3  ;;  %v7132_v3 = vld [vmem:[#allocation21_spill] sm:$0xff] }
 0x281   : > { %7128 = vst [vmem:[#allocation17_spill] sm:$0xff] %v4043_v50  ;;  %v4052_v27 = vsel %vm980_vm13, -inf, %v7127_v24  ;;  %vm1030_vm14 = vcmp.ge.f32.partialorder %v7132_v3, %v3985_v31 }
 0x282   : > { %7131 = vst [vmem:[#allocation20_spill] sm:$0xff] %v4052_v27 }
 0x283   : > { %1075 = vmax.xlane.f32.xlu1 %v1074_v36  ;;  %1072 = vmax.xlane.f32.xlu0 %v1071_v37  ;;  %v4025_v36 = vsel %vm975_vm8, -inf, %v7118_v12  ;;  %v4028_v37 = vsel %vm976_vm9, -inf, %v7119_v40  ;;  %v1086_v12 = vmax.f32 %v4019_v28, %v4022_v5 }
 0x284   : > { %7122 = vst [vmem:[#allocation15_spill] sm:$0xff] %v4025_v36  ;;  %7123 = vst [vmem:[#allocation16_spill] sm:$0xff] %v4028_v37  ;;  %v1083_v40 = vmax.f32 %v4025_v36, %v4028_v37 }
 0x287   : > { %1081 = vmax.xlane.f32.xlu1 %v1080_v1  ;;  %1078 = vmax.xlane.f32.xlu0 %v1077_v42  ;;  %v4046_v1 = vsel %vm982_vm11, -inf, %v7125_v18  ;;  %v4049_v42 = vsel %vm979_vm12, -inf, %v7126_v8  ;;  %v7133_v18 = vld [vmem:[#allocation22_spill] sm:$0xff]  ;;  %v4063_v8 = vsel %vm1030_vm14, -inf, %v7132_v3 }
 0x288   : > { %7129 = vst [vmem:[#allocation18_spill] sm:$0xff] %v4046_v1  ;;  %7130 = vst [vmem:[#allocation19_spill] sm:$0xff] %v4049_v42  ;;  %v1092_v5 = vmax.f32 %v4043_v50, %v4046_v1  ;;  %v1089_v37 = vmax.f32 %v4049_v42, %v4052_v27  ;;  %vm1029_vm15 = vcmp.ge.f32.partialorder %v7133_v18, %v3988_v32 }
 0x289   : > { %7134 = vst [vmem:[#allocation21_spill] sm:$0xff] %v4063_v8  ;;  %v4066_v24 = vsel %vm1029_vm15, -inf, %v7133_v18 }
 0x28a   : > { %7135 = vst [vmem:[#allocation22_spill] sm:$0xff] %v4066_v24 }
 0x28b   : > { %1087 = vmax.xlane.f32.xlu1 %v1086_v12  ;;  %1084 = vmax.xlane.f32.xlu0 %v1083_v40 }
 0x28f   : > { %1093 = vmax.xlane.f32.xlu1 %v1092_v5  ;;  %1090 = vmax.xlane.f32.xlu0 %v1089_v37 }
 0x293   : > { %1125 = vmax.xlane.f32.xlu1 %v4063_v8  ;;  %1123 = vmax.xlane.f32.xlu0 %v4066_v24  ;;  %v4079_v8 = vand.u32 127, %v7136_v4 }
 0x295   : > { %vm934_vm0 = vcmp.eq.s32.totalorder %v4079_v8, 0  ;;  %vm1143_vm1 = vcmp.eq.s32.totalorder %v4079_v8, 1 }
 0x296   : > { %v936_v20 = vsel %vm934_vm0, %v3754_v38, -inf  ;;  %v935_v4 = vsel %vm934_vm0, %v3756_v34, -inf }
 0x2e4   : > { %v1098_v12 = vpop.xlane.xlu1 %1097  ;;  %v1096_v40 = vpop.xlane.xlu0 %1095 }
 0x2e8   : > { %v1102_v5 = vpop.xlane.xlu1 %1101  ;;  %v1100_v37 = vpop.xlane.xlu0 %1099 }
 0x2ec   : > { %v1106_v27 = vpop.xlane.xlu1 %1105  ;;  %v1104_v42 = vpop.xlane.xlu0 %1103 }
 0x2f0   : > { %v1110_v1 = vpop.xlane.xlu1 %1109  ;;  %v1108_v50 = vpop.xlane.xlu0 %1107 }
 0x2f4   : > { %v4070_v36 = vpop.xlane.xlu1 %1113  ;;  %v4072_v28 = vpop.xlane.xlu0 %1111 }
 0x2f8   : > { %v4074_v3 = vpop.xlane.xlu1 %1117  ;;  %v4076_v18 = vpop.xlane.xlu0 %1115 }
 0x2fc   : > { %v4081_v24 = vpop.xlane.xlu1 %1121  ;;  %v4083_v61 = vpop.xlane.xlu0 %1119 }
 0x300   : > { %v1052_v11 = vpop.xlane.xlu1 %1051  ;;  %v1049_v29 = vpop.xlane.xlu0 %1048 }
 0x301   : > { %v4087_v59 = vmax.f32 %v1052_v11, %v1098_v12  ;;  %v4089_v58 = vmax.f32 %v1049_v29, %v1096_v40 }
 0x303   : > { %v4100_v19 = vsel %vm1143_vm1, %v4087_v59, %v936_v20  ;;  %v4105_v11 = vsel %vm1143_vm1, %v4089_v58, %v935_v4  ;;  %vm1225_vm2 = vcmp.ge.f32.partialorder %v3760_v21, %v4087_v59  ;;  %vm1224_vm3 = vcmp.ge.f32.partialorder %v3762_v17, %v4089_v58 }
 0x304   : > { %v1058_v38 = vpop.xlane.xlu1 %1057  ;;  %v1055_v29 = vpop.xlane.xlu0 %1054  ;;  %v4112_v34 = vsel %vm1225_vm2, -inf, %v3760_v21  ;;  %v4115_v12 = vsel %vm1224_vm3, -inf, %v3762_v17  ;;  %v938_v4 = vsel %vm934_vm0, %v3764_v26, -inf  ;;  %v937_v21 = vsel %vm934_vm0, %v3766_v41, -inf }
 0x305   : > { %v4117_v20 = vmax.f32 %v1058_v38, %v1102_v5  ;;  %v4119_v40 = vmax.f32 %v1055_v29, %v1100_v37  ;;  %1306 = vmax.xlane.f32.xlu1 %v4112_v34  ;;  %1304 = vmax.xlane.f32.xlu0 %v4115_v12  ;;  %vm1162_vm12 = vcmp.ge.f32.partialorder %v3857_v60, %v4087_v59 }
 0x306   : > { %vm1163_vm13 = vcmp.ge.f32.partialorder %v3864_v62, %v4087_v59  ;;  %vm1160_vm14 = vcmp.ge.f32.partialorder %v3867_v47, %v4089_v58  ;;  %vm1161_vm15 = vcmp.ge.f32.partialorder %v3876_v13, %v4089_v58 }
 0x307   : > { %v4132_v17 = vsel %vm1143_vm1, %v4117_v20, %v938_v4  ;;  %v4137_v5 = vsel %vm1143_vm1, %v4119_v40, %v937_v21  ;;  %vm1227_vm4 = vcmp.ge.f32.partialorder %v3772_v14, %v4117_v20  ;;  %vm1226_vm5 = vcmp.ge.f32.partialorder %v3774_v51, %v4119_v40 }
 0x308   : > { %v1064_v26 = vpop.xlane.xlu1 %1063  ;;  %v1061_v37 = vpop.xlane.xlu0 %1060  ;;  %v4144_v41 = vsel %vm1227_vm4, -inf, %v3772_v14  ;;  %v4147_v38 = vsel %vm1226_vm5, -inf, %v3774_v51  ;;  %v940_v21 = vsel %vm934_vm0, %v3776_v53, -inf  ;;  %v939_v14 = vsel %vm934_vm0, %v3778_v48, -inf }
 0x309   : > { %v4149_v29 = vmax.f32 %v1064_v26, %v1106_v27  ;;  %v4151_v4 = vmax.f32 %v1061_v37, %v1104_v42  ;;  %1310 = vmax.xlane.f32.xlu1 %v4144_v41  ;;  %1308 = vmax.xlane.f32.xlu0 %v4147_v38  ;;  %vm1166_vm4 = vcmp.ge.f32.partialorder %v3893_v15, %v4117_v20 }
 0x30b   : > { %v4164_v51 = vsel %vm1143_vm1, %v4149_v29, %v940_v21  ;;  %v4169_v27 = vsel %vm1143_vm1, %v4151_v4, %v939_v14  ;;  %vm1229_vm6 = vcmp.ge.f32.partialorder %v3787_v54, %v4149_v29  ;;  %vm1228_vm7 = vcmp.ge.f32.partialorder %v3790_v52, %v4151_v4 }
 0x30c   : > { %v1070_v53 = vpop.xlane.xlu1 %1069  ;;  %v1067_v42 = vpop.xlane.xlu0 %1066  ;;  %v4176_v48 = vsel %vm1229_vm6, -inf, %v3787_v54  ;;  %v4179_v26 = vsel %vm1228_vm7, -inf, %v3790_v52  ;;  %v942_v14 = vsel %vm934_vm0, %v3792_v10, -inf  ;;  %v941_v54 = vsel %vm934_vm0, %v3794_v23, -inf }
 0x30d   : > { %v4181_v37 = vmax.f32 %v1070_v53, %v1110_v1  ;;  %v4183_v21 = vmax.f32 %v1067_v42, %v1108_v50  ;;  %1314 = vmax.xlane.f32.xlu1 %v4176_v48  ;;  %1312 = vmax.xlane.f32.xlu0 %v4179_v26  ;;  %vm1167_vm7 = vcmp.ge.f32.partialorder %v3896_v63, %v4117_v20 }
 0x30f   : > { %v4196_v52 = vsel %vm1143_vm1, %v4181_v37, %v942_v14  ;;  %v4201_v50 = vsel %vm1143_vm1, %v4183_v21, %v941_v54  ;;  %vm1231_vm8 = vcmp.ge.f32.partialorder %v3803_v33, %v4181_v37  ;;  %vm1230_vm9 = vcmp.ge.f32.partialorder %v3806_v56, %v4183_v21 }
 0x310   : > { %v1076_v10 = vpop.xlane.xlu1 %1075  ;;  %v1073_v1 = vpop.xlane.xlu0 %1072  ;;  %v4208_v23 = vsel %vm1231_vm8, -inf, %v3803_v33  ;;  %v4211_v53 = vsel %vm1230_vm9, -inf, %v3806_v56  ;;  %v944_v54 = vsel %vm934_vm0, %v3808_v35, -inf  ;;  %v943_v33 = vsel %vm934_vm0, %v3810_v6, -inf }
 0x311   : > { %v4214_v42 = vmax.f32 %v1076_v10, %v4070_v36  ;;  %v4217_v14 = vmax.f32 %v1073_v1, %v4072_v28  ;;  %1318 = vmax.xlane.f32.xlu1 %v4208_v23  ;;  %1316 = vmax.xlane.f32.xlu0 %v4211_v53  ;;  %v946_v1 = vsel %vm934_vm0, %v3824_v39, -inf  ;;  %v948_v39 = vsel %vm934_vm0, %v3847_v45, -inf }
 0x312   : > { %v4319_v45 = vsel %vm1160_vm14, -inf, %v3867_v47  ;;  %vm1164_vm8 = vcmp.ge.f32.partialorder %v3899_v2, %v4119_v40  ;;  %vm1165_vm9 = vcmp.ge.f32.partialorder %v3902_v55, %v4119_v40 }
 0x313   : > { %v4230_v56 = vsel %vm1143_vm1, %v4214_v42, %v944_v54  ;;  %v4235_v28 = vsel %vm1143_vm1, %v4217_v14, %v943_v33  ;;  %vm1233_vm10 = vcmp.ge.f32.partialorder %v3819_v16, %v4214_v42  ;;  %vm1232_vm11 = vcmp.ge.f32.partialorder %v3822_v22, %v4217_v14 }
 0x314   : > { %7137 = vst [vmem:[#allocation35_spill] sm:$0xff] %v4235_v28  ;;  %v1082_v35 = vpop.xlane.xlu1 %1081  ;;  %v1079_v36 = vpop.xlane.xlu0 %1078  ;;  %v4242_v6 = vsel %vm1233_vm10, -inf, %v3819_v16  ;;  %v4245_v10 = vsel %vm1232_vm11, -inf, %v3822_v22  ;;  %v945_v54 = vsel %vm934_vm0, %v3826_v44, -inf  ;;  %vm1170_vm10 = vcmp.ge.f32.partialorder %v3917_v7, %v4149_v29 }
 0x315   : > { %v4254_v33 = vmax.f32 %v1082_v35, %v4074_v3  ;;  %v4257_v28 = vmax.f32 %v1079_v36, %v4076_v18  ;;  %1322 = vmax.xlane.f32.xlu1 %v4242_v6  ;;  %1320 = vmax.xlane.f32.xlu0 %v4245_v10  ;;  %v947_v36 = vsel %vm934_vm0, %v3850_v0, -inf  ;;  %v4325_v0 = vsel %vm1161_vm15, -inf, %v3876_v13 }
 0x316   : > { %vm1171_vm11 = vcmp.ge.f32.partialorder %v3920_v9, %v4149_v29 }
 0x317   : > { %v4272_v16 = vsel %vm1143_vm1, %v4254_v33, %v946_v1  ;;  %v4277_v22 = vsel %vm1143_vm1, %v4257_v28, %v945_v54  ;;  %vm1235_vm2 = vcmp.ge.f32.partialorder %v3837_v30, %v4254_v33  ;;  %vm1234_vm3 = vcmp.ge.f32.partialorder %v3840_v43, %v4257_v28 }
 0x318   : > { %v1088_v44 = vpop.xlane.xlu1 %1087  ;;  %v1085_v3 = vpop.xlane.xlu0 %1084  ;;  %v4287_v18 = vsel %vm1235_vm2, -inf, %v3837_v30  ;;  %v4290_v35 = vsel %vm1234_vm3, -inf, %v3840_v43  ;;  %v4307_v30 = vsel %vm1162_vm12, -inf, %v3857_v60  ;;  %v4313_v43 = vsel %vm1163_vm13, -inf, %v3864_v62 }
 0x319   : > { %v4296_v1 = vmax.f32 %v1088_v44, %v4081_v24  ;;  %v4299_v54 = vmax.f32 %v1085_v3, %v4083_v61  ;;  %1326 = vmax.xlane.f32.xlu1 %v4287_v18  ;;  %1324 = vmax.xlane.f32.xlu0 %v4290_v35  ;;  %v4365_v61 = vsel %vm1166_vm4, -inf, %v3893_v15  ;;  %v4368_v24 = vsel %vm1167_vm7, -inf, %v3896_v63 }
 0x31a   : > { %v4374_v3 = vsel %vm1165_vm9, -inf, %v3902_v55  ;;  %vm1168_vm12 = vcmp.ge.f32.partialorder %v3923_v46, %v4151_v4  ;;  %vm1169_vm13 = vcmp.ge.f32.partialorder %v3926_v57, %v4151_v4  ;;  %v949_v55 = vsel %vm934_vm0, %v3988_v32, -inf }
 0x31b   : > { %v4332_v60 = vsel %vm1143_vm1, %v4296_v1, %v948_v39  ;;  %v4337_v62 = vsel %vm1143_vm1, %v4299_v54, %v947_v36  ;;  %vm1237_vm5 = vcmp.ge.f32.partialorder %v3870_v49, %v4296_v1  ;;  %vm1236_vm6 = vcmp.ge.f32.partialorder %v3873_v25, %v4299_v54 }
 0x31c   : > { %v1094_v47 = vpop.xlane.xlu1 %1093  ;;  %v1091_v13 = vpop.xlane.xlu0 %1090  ;;  %v4344_v58 = vsel %vm1237_vm5, -inf, %v3870_v49  ;;  %v4347_v59 = vsel %vm1236_vm6, -inf, %v3873_v25  ;;  %v1259_v49 = vmax.f32 %v4307_v30, %v4313_v43  ;;  %v1256_v25 = vmax.f32 %v4319_v45, %v4325_v0 }
 0x31d   : > { %1330 = vmax.xlane.f32.xlu1 %v4344_v58  ;;  %1328 = vmax.xlane.f32.xlu0 %v4347_v59  ;;  %v4371_v39 = vsel %vm1164_vm8, -inf, %v3899_v2  ;;  %v950_v2 = vsel %vm934_vm0, %v3985_v31, -inf  ;;  %v1265_v20 = vmax.f32 %v4365_v61, %v4368_v24  ;;  %v4409_v36 = vsel %vm1170_vm10, -inf, %v3917_v7  ;;  %v7140_v7 = vld [vmem:[#allocation25_spill] sm:$0xff] }
 0x31e   : > { %v1262_v31 = vmax.f32 %v4371_v39, %v4374_v3  ;;  %v4412_v32 = vsel %vm1171_vm11, -inf, %v3920_v9  ;;  %vm1172_vm14 = vcmp.ge.f32.partialorder %v7140_v7, %v4183_v21  ;;  %v7141_v9 = vld [vmem:[#allocation26_spill] sm:$0xff] }
 0x31f   : > { %vm1173_vm15 = vcmp.ge.f32.partialorder %v7141_v9, %v4183_v21  ;;  %v7144_v21 = vld [vmem:[#allocation27_spill] sm:$0xff] }
 0x320   : > { %v1126_v44 = vpop.xlane.xlu1 %1125  ;;  %v1124_v40 = vpop.xlane.xlu0 %1123  ;;  %vm1178_vm2 = vcmp.ge.f32.partialorder %v7144_v21, %v4214_v42 }
 0x321   : > { %v4382_v15 = vmax.f32 %v1094_v47, %v1126_v44  ;;  %v4384_v63 = vmax.f32 %v1091_v13, %v1124_v40  ;;  %1260 = vmax.xlane.f32.xlu1 %v1259_v49  ;;  %1257 = vmax.xlane.f32.xlu0 %v1256_v25  ;;  %v4415_v47 = vsel %vm1168_vm12, -inf, %v3923_v46  ;;  %v4418_v13 = vsel %vm1169_vm13, -inf, %v3926_v57  ;;  %v7138_v49 = vld [vmem:[#allocation23_spill] sm:$0xff]  ;;  %v7139_v25 = vld [vmem:[#allocation24_spill] sm:$0xff] }
 0x322   : > { %vm1174_vm0 = vcmp.ge.f32.partialorder %v7138_v49, %v4181_v37  ;;  %v1271_v46 = vmax.f32 %v4409_v36, %v4412_v32  ;;  %v1268_v57 = vmax.f32 %v4415_v47, %v4418_v13 }
 0x323   : > { %v4399_v29 = vsel %vm1143_vm1, %v4382_v15, %v950_v2  ;;  %v4404_v4 = vsel %vm1143_vm1, %v4384_v63, %v949_v55  ;;  %vm1175_vm1 = vcmp.ge.f32.partialorder %v7139_v25, %v4181_v37  ;;  %v4433_v44 = vsel %vm1174_vm0, -inf, %v7138_v49  ;;  %v7145_v55 = vld [vmem:[#allocation28_spill] sm:$0xff] }
 0x324   : > { %v4436_v40 = vsel %vm1175_vm1, -inf, %v7139_v25  ;;  %v4439_v37 = vsel %vm1172_vm14, -inf, %v7140_v7  ;;  %v4442_v2 = vsel %vm1173_vm15, -inf, %v7141_v9  ;;  %vm1179_vm3 = vcmp.ge.f32.partialorder %v7145_v55, %v4214_v42 }
 0x325   : > { %1266 = vmax.xlane.f32.xlu1 %v1265_v20  ;;  %1263 = vmax.xlane.f32.xlu0 %v1262_v31  ;;  %7142 = vst [vmem:[#allocation23_spill] sm:$0xff] %v4439_v37  ;;  %7143 = vst [vmem:[#allocation24_spill] sm:$0xff] %v4442_v2  ;;  %v7146_v20 = vld [vmem:[#allocation29_spill] sm:$0xff]  ;;  %v7147_v31 = vld [vmem:[#allocation30_spill] sm:$0xff]  ;;  %v1277_v49 = vmax.f32 %v4433_v44, %v4436_v40  ;;  %v1274_v25 = vmax.f32 %v4439_v37, %v4442_v2  ;;  %v4457_v7 = vsel %vm1178_vm2, -inf, %v7144_v21 }
 0x326   : > { %vm1176_vm4 = vcmp.ge.f32.partialorder %v7146_v20, %v4217_v14  ;;  %vm1177_vm5 = vcmp.ge.f32.partialorder %v7147_v31, %v4217_v14  ;;  %7148 = vst [vmem:[#allocation25_spill] sm:$0xff] %v4457_v7  ;;  %v4460_v9 = vsel %vm1179_vm3, -inf, %v7145_v55  ;;  %v7152_v14 = vld [vmem:[#allocation31_spill] sm:$0xff]  ;;  %v7154_v21 = vld [vmem:[#allocation33_spill] sm:$0xff]  ;;  %v7155_v55 = vld [vmem:[#allocation34_spill] sm:$0xff] }
 0x327   : > { %7149 = vst [vmem:[#allocation26_spill] sm:$0xff] %v4460_v9  ;;  %v4463_v42 = vsel %vm1176_vm4, -inf, %v7146_v20  ;;  %vm1182_vm6 = vcmp.ge.f32.partialorder %v7152_v14, %v4254_v33  ;;  %vm1180_vm8 = vcmp.ge.f32.partialorder %v7154_v21, %v4257_v28  ;;  %vm1181_vm9 = vcmp.ge.f32.partialorder %v7155_v55, %v4257_v28  ;;  %v7160_v28 = vld [vmem:[#allocation13_spill] sm:$0xff] }
 0x328   : > { %7150 = vst [vmem:[#allocation27_spill] sm:$0xff] %v4463_v42  ;;  %v1283_v20 = vmax.f32 %v4457_v7, %v4460_v9  ;;  %v4481_v2 = vsel %vm1182_vm6, -inf, %v7152_v14  ;;  %vm1186_vm10 = vcmp.ge.f32.partialorder %v7160_v28, %v4296_v1  ;;  %v7161_v9 = vld [vmem:[#allocation14_spill] sm:$0xff]  ;;  %v7162_v14 = vld [vmem:[#allocation15_spill] sm:$0xff]  ;;  %vm1352_vm4 = vcmp.eq.s32.totalorder %v4079_v8, 2 }
 0x329   : > { %1272 = vmax.xlane.f32.xlu1 %v1271_v46  ;;  %1269 = vmax.xlane.f32.xlu0 %v1268_v57  ;;  %v4466_v46 = vsel %vm1177_vm5, -inf, %v7147_v31  ;;  %v7153_v57 = vld [vmem:[#allocation32_spill] sm:$0xff]  ;;  %7156 = vst [vmem:[#allocation29_spill] sm:$0xff] %v4481_v2  ;;  %vm1187_vm11 = vcmp.ge.f32.partialorder %v7161_v9, %v4296_v1  ;;  %vm1184_vm12 = vcmp.ge.f32.partialorder %v7162_v14, %v4299_v54 }
 0x32a   : > { %7151 = vst [vmem:[#allocation28_spill] sm:$0xff] %v4466_v46  ;;  %vm1183_vm7 = vcmp.ge.f32.partialorder %v7153_v57, %v4254_v33  ;;  %v1280_v31 = vmax.f32 %v4463_v42, %v4466_v46  ;;  %v4487_v33 = vsel %vm1180_vm8, -inf, %v7154_v21  ;;  %v4505_v46 = vsel %vm1186_vm10, -inf, %v7160_v28  ;;  %v7170_v28 = vld [vmem:[#allocation19_spill] sm:$0xff] }
 0x32b   : > { %7158 = vst [vmem:[#allocation31_spill] sm:$0xff] %v4487_v33  ;;  %7164 = vst [vmem:[#allocation33_spill] sm:$0xff] %v4505_v46  ;;  %v4511_v1 = vsel %vm1184_vm12, -inf, %v7162_v14  ;;  %vm1188_vm14 = vcmp.ge.f32.partialorder %v7170_v28, %v4384_v63 }
 0x32c   : > { %7166 = vst [vmem:[#allocation13_spill] sm:$0xff] %v4511_v1 }
 0x32d   : > { %1278 = vmax.xlane.f32.xlu1 %v1277_v49  ;;  %1275 = vmax.xlane.f32.xlu0 %v1274_v25  ;;  %v4484_v49 = vsel %vm1183_vm7, -inf, %v7153_v57  ;;  %v4490_v25 = vsel %vm1181_vm9, -inf, %v7155_v55  ;;  %v7163_v57 = vld [vmem:[#allocation16_spill] sm:$0xff] }
 0x32e   : > { %7157 = vst [vmem:[#allocation30_spill] sm:$0xff] %v4484_v49  ;;  %7159 = vst [vmem:[#allocation32_spill] sm:$0xff] %v4490_v25  ;;  %vm1185_vm13 = vcmp.ge.f32.partialorder %v7163_v57, %v4299_v54  ;;  %v1289_v21 = vmax.f32 %v4481_v2, %v4484_v49  ;;  %v1286_v55 = vmax.f32 %v4487_v33, %v4490_v25  ;;  %v7168_v54 = vld [vmem:[#allocation17_spill] sm:$0xff]  ;;  %v7169_v49 = vld [vmem:[#allocation18_spill] sm:$0xff] }
 0x32f   : > { %vm1190_vm0 = vcmp.ge.f32.partialorder %v7168_v54, %v4382_v15  ;;  %vm1191_vm1 = vcmp.ge.f32.partialorder %v7169_v49, %v4382_v15 }
 0x330   : > { %v4529_v25 = vsel %vm1190_vm0, -inf, %v7168_v54  ;;  %v7176_v54 = vld [vmem:[#allocation21_spill] sm:$0xff] }
 0x331   : > { %1284 = vmax.xlane.f32.xlu1 %v1283_v20  ;;  %1281 = vmax.xlane.f32.xlu0 %v1280_v31  ;;  %v4508_v20 = vsel %vm1187_vm11, -inf, %v7161_v9  ;;  %v4514_v31 = vsel %vm1185_vm13, -inf, %v7163_v57  ;;  %v7171_v9 = vld [vmem:[#allocation20_spill] sm:$0xff]  ;;  %7172 = vst [vmem:[#allocation15_spill] sm:$0xff] %v4529_v25  ;;  %vm1239_vm2 = vcmp.ge.f32.partialorder %v7176_v54, %v4382_v15 }
 0x332   : > { %7165 = vst [vmem:[#allocation34_spill] sm:$0xff] %v4508_v20  ;;  %7167 = vst [vmem:[#allocation14_spill] sm:$0xff] %v4514_v31  ;;  %vm1189_vm15 = vcmp.ge.f32.partialorder %v7171_v9, %v4384_v63  ;;  %v1295_v14 = vmax.f32 %v4505_v46, %v4508_v20  ;;  %v1292_v57 = vmax.f32 %v4511_v1, %v4514_v31 }
 0x333   : > { %v4538_v33 = vsel %vm1189_vm15, -inf, %v7171_v9 }
 0x334   : > { %7175 = vst [vmem:[#allocation18_spill] sm:$0xff] %v4538_v33 }
 0x335   : > { %1290 = vmax.xlane.f32.xlu1 %v1289_v21  ;;  %1287 = vmax.xlane.f32.xlu0 %v1286_v55  ;;  %v4532_v21 = vsel %vm1191_vm1, -inf, %v7169_v49  ;;  %v4535_v55 = vsel %vm1188_vm14, -inf, %v7170_v28  ;;  %v7177_v49 = vld [vmem:[#allocation22_spill] sm:$0xff]  ;;  %v4549_v28 = vsel %vm1239_vm2, -inf, %v7176_v54 }
 0x336   : > { %7173 = vst [vmem:[#allocation16_spill] sm:$0xff] %v4532_v21  ;;  %7174 = vst [vmem:[#allocation17_spill] sm:$0xff] %v4535_v55  ;;  %v1301_v20 = vmax.f32 %v4529_v25, %v4532_v21  ;;  %v1298_v31 = vmax.f32 %v4535_v55, %v4538_v33  ;;  %vm1238_vm3 = vcmp.ge.f32.partialorder %v7177_v49, %v4384_v63 }
 0x337   : > { %7178 = vst [vmem:[#allocation19_spill] sm:$0xff] %v4549_v28  ;;  %v4552_v9 = vsel %vm1238_vm3, -inf, %v7177_v49 }
 0x338   : > { %7179 = vst [vmem:[#allocation20_spill] sm:$0xff] %v4552_v9 }
 0x339   : > { %1296 = vmax.xlane.f32.xlu1 %v1295_v14  ;;  %1293 = vmax.xlane.f32.xlu0 %v1292_v57 }
 0x33d   : > { %1302 = vmax.xlane.f32.xlu1 %v1301_v20  ;;  %1299 = vmax.xlane.f32.xlu0 %v1298_v31 }
 0x341   : > { %1334 = vmax.xlane.f32.xlu1 %v4549_v28  ;;  %1332 = vmax.xlane.f32.xlu0 %v4552_v9 }
 0x392   : > { %v1307_v14 = vpop.xlane.xlu1 %1306  ;;  %v1305_v57 = vpop.xlane.xlu0 %1304 }
 0x396   : > { %v1311_v20 = vpop.xlane.xlu1 %1310  ;;  %v1309_v31 = vpop.xlane.xlu0 %1308 }
 0x39a   : > { %v1315_v33 = vpop.xlane.xlu1 %1314  ;;  %v1313_v55 = vpop.xlane.xlu0 %1312 }
 0x39e   : > { %v1319_v15 = vpop.xlane.xlu1 %1318  ;;  %v1317_v21 = vpop.xlane.xlu0 %1316 }
 0x3a2   : > { %v1323_v25 = vpop.xlane.xlu1 %1322  ;;  %v1321_v63 = vpop.xlane.xlu0 %1320 }
 0x3a6   : > { %v4556_v1 = vpop.xlane.xlu1 %1326  ;;  %v4558_v54 = vpop.xlane.xlu0 %1324 }
 0x3aa   : > { %v4560_v49 = vpop.xlane.xlu1 %1330  ;;  %v4562_v46 = vpop.xlane.xlu0 %1328 }
 0x3ae   : > { %v1261_v9 = vpop.xlane.xlu1 %1260  ;;  %v1258_v28 = vpop.xlane.xlu0 %1257 }
 0x3af   : > { %v4565_v2 = vmax.f32 %v1261_v9, %v1307_v14  ;;  %v4567_v42 = vmax.f32 %v1258_v28, %v1305_v57 }
 0x3b1   : > { %v4573_v7 = vsel %vm1352_vm4, %v4565_v2, %v4100_v19  ;;  %v4579_v37 = vsel %vm1352_vm4, %v4567_v42, %v4105_v11  ;;  %vm1434_vm5 = vcmp.ge.f32.partialorder %v4112_v34, %v4565_v2  ;;  %vm1433_vm6 = vcmp.ge.f32.partialorder %v4115_v12, %v4567_v42 }
 0x3b2   : > { %7180 = vst [vmem:[#allocation21_spill] sm:$0xff] %v4573_v7  ;;  %v1267_v28 = vpop.xlane.xlu1 %1266  ;;  %v1264_v9 = vpop.xlane.xlu0 %1263  ;;  %v4586_v14 = vsel %vm1434_vm5, -inf, %v4112_v34  ;;  %v4589_v19 = vsel %vm1433_vm6, -inf, %v4115_v12  ;;  %vm1371_vm1 = vcmp.ge.f32.partialorder %v4307_v30, %v4565_v2  ;;  %vm1372_vm14 = vcmp.ge.f32.partialorder %v4313_v43, %v4565_v2 }
 0x3b3   : > { %v4591_v57 = vmax.f32 %v1267_v28, %v1311_v20  ;;  %v4593_v7 = vmax.f32 %v1264_v9, %v1309_v31  ;;  %1515 = vmax.xlane.f32.xlu1 %v4586_v14  ;;  %1513 = vmax.xlane.f32.xlu0 %v4589_v19  ;;  %vm1369_vm15 = vcmp.ge.f32.partialorder %v4319_v45, %v4567_v42 }
 0x3b4   : > { %vm1370_vm2 = vcmp.ge.f32.partialorder %v4325_v0, %v4567_v42 }
 0x3b5   : > { %v4601_v11 = vsel %vm1352_vm4, %v4591_v57, %v4132_v17  ;;  %v4607_v34 = vsel %vm1352_vm4, %v4593_v7, %v4137_v5  ;;  %vm1436_vm7 = vcmp.ge.f32.partialorder %v4144_v41, %v4591_v57  ;;  %vm1435_vm8 = vcmp.ge.f32.partialorder %v4147_v38, %v4593_v7 }
 0x3b6   : > { %v1273_v12 = vpop.xlane.xlu1 %1272  ;;  %v1270_v20 = vpop.xlane.xlu0 %1269  ;;  %v4614_v31 = vsel %vm1436_vm7, -inf, %v4144_v41  ;;  %v4617_v17 = vsel %vm1435_vm8, -inf, %v4147_v38  ;;  %vm1375_vm6 = vcmp.ge.f32.partialorder %v4365_v61, %v4591_v57 }
 0x3b7   : > { %v4619_v28 = vmax.f32 %v1273_v12, %v1315_v33  ;;  %v4621_v9 = vmax.f32 %v1270_v20, %v1313_v55  ;;  %1519 = vmax.xlane.f32.xlu1 %v4614_v31  ;;  %1517 = vmax.xlane.f32.xlu0 %v4617_v17 }
 0x3b9   : > { %v4629_v5 = vsel %vm1352_vm4, %v4619_v28, %v4164_v51  ;;  %v4635_v41 = vsel %vm1352_vm4, %v4621_v9, %v4169_v27  ;;  %vm1438_vm9 = vcmp.ge.f32.partialorder %v4176_v48, %v4619_v28  ;;  %vm1437_vm10 = vcmp.ge.f32.partialorder %v4179_v26, %v4621_v9 }
 0x3ba   : > { %v1279_v38 = vpop.xlane.xlu1 %1278  ;;  %v1276_v33 = vpop.xlane.xlu0 %1275  ;;  %v4642_v55 = vsel %vm1438_vm9, -inf, %v4176_v48  ;;  %v4645_v51 = vsel %vm1437_vm10, -inf, %v4179_v26  ;;  %vm1376_vm9 = vcmp.ge.f32.partialorder %v4368_v24, %v4591_v57  ;;  %vm1373_vm10 = vcmp.ge.f32.partialorder %v4371_v39, %v4593_v7 }
 0x3bb   : > { %v4647_v12 = vmax.f32 %v1279_v38, %v1319_v15  ;;  %v4649_v20 = vmax.f32 %v1276_v33, %v1317_v21  ;;  %1523 = vmax.xlane.f32.xlu1 %v4642_v55  ;;  %1521 = vmax.xlane.f32.xlu0 %v4645_v51  ;;  %v4816_v42 = vsel %vm1376_vm9, -inf, %v4368_v24 }
 0x3bd   : > { %v4657_v27 = vsel %vm1352_vm4, %v4647_v12, %v4196_v52  ;;  %v4663_v48 = vsel %vm1352_vm4, %v4649_v20, %v4201_v50  ;;  %vm1440_vm11 = vcmp.ge.f32.partialorder %v4208_v23, %v4647_v12  ;;  %vm1439_vm12 = vcmp.ge.f32.partialorder %v4211_v53, %v4649_v20 }
 0x3be   : > { %7181 = vst [vmem:[#allocation22_spill] sm:$0xff] %v4663_v48  ;;  %v1285_v26 = vpop.xlane.xlu1 %1284  ;;  %v1282_v21 = vpop.xlane.xlu0 %1281  ;;  %v4670_v15 = vsel %vm1440_vm11, -inf, %v4208_v23  ;;  %v4673_v52 = vsel %vm1439_vm12, -inf, %v4211_v53  ;;  %v7182_v48 = vld [vmem:[#allocation35_spill] sm:$0xff]  ;;  %vm1374_vm11 = vcmp.ge.f32.partialorder %v4374_v3, %v4593_v7  ;;  %vm1379_vm12 = vcmp.ge.f32.partialorder %v4409_v36, %v4619_v28 }
 0x3bf   : > { %v4675_v38 = vmax.f32 %v1285_v26, %v1323_v25  ;;  %v4677_v33 = vmax.f32 %v1282_v21, %v1321_v63  ;;  %1527 = vmax.xlane.f32.xlu1 %v4670_v15  ;;  %1525 = vmax.xlane.f32.xlu0 %v4673_v52 }
 0x3c1   : > { %v4685_v50 = vsel %vm1352_vm4, %v4675_v38, %v4230_v56  ;;  %v4691_v23 = vsel %vm1352_vm4, %v4677_v33, %v7182_v48  ;;  %vm1442_vm13 = vcmp.ge.f32.partialorder %v4242_v6, %v4675_v38  ;;  %vm1441_vm0 = vcmp.ge.f32.partialorder %v4245_v10, %v4677_v33 }
 0x3c2   : > { %v1291_v53 = vpop.xlane.xlu1 %1290  ;;  %v1288_v25 = vpop.xlane.xlu0 %1287  ;;  %v4698_v63 = vsel %vm1442_vm13, -inf, %v4242_v6  ;;  %v4701_v56 = vsel %vm1441_vm0, -inf, %v4245_v10  ;;  %vm1380_vm13 = vcmp.ge.f32.partialorder %v4412_v32, %v4619_v28  ;;  %vm1377_vm0 = vcmp.ge.f32.partialorder %v4415_v47, %v4621_v9 }
 0x3c3   : > { %v4704_v26 = vmax.f32 %v1291_v53, %v4556_v1  ;;  %v4707_v48 = vmax.f32 %v1288_v25, %v4558_v54  ;;  %1531 = vmax.xlane.f32.xlu1 %v4698_v63  ;;  %1529 = vmax.xlane.f32.xlu0 %v4701_v56  ;;  %v4753_v25 = vsel %vm1371_vm1, -inf, %v4307_v30  ;;  %vm1378_vm1 = vcmp.ge.f32.partialorder %v4418_v13, %v4621_v9 }
 0x3c4   : > { %v4853_v9 = vsel %vm1379_vm12, -inf, %v4409_v36  ;;  %v7184_v36 = vld [vmem:[#allocation24_spill] sm:$0xff] }
 0x3c5   : > { %v4723_v6 = vsel %vm1352_vm4, %v4704_v26, %v4272_v16  ;;  %v4729_v10 = vsel %vm1352_vm4, %v4707_v48, %v4277_v22  ;;  %vm1444_vm3 = vcmp.ge.f32.partialorder %v4287_v18, %v4704_v26  ;;  %vm1443_vm5 = vcmp.ge.f32.partialorder %v4290_v35, %v4707_v48 }
 0x3c6   : > { %v1297_v1 = vpop.xlane.xlu1 %1296  ;;  %v1294_v54 = vpop.xlane.xlu0 %1293  ;;  %v4736_v21 = vsel %vm1444_vm3, -inf, %v4287_v18  ;;  %v4739_v16 = vsel %vm1443_vm5, -inf, %v4290_v35  ;;  %v4759_v18 = vsel %vm1372_vm14, -inf, %v4313_v43  ;;  %v4765_v35 = vsel %vm1369_vm15, -inf, %v4319_v45 }
 0x3c7   : > { %v4742_v53 = vmax.f32 %v1297_v1, %v4560_v49  ;;  %v4745_v22 = vmax.f32 %v1294_v54, %v4562_v46  ;;  %1535 = vmax.xlane.f32.xlu1 %v4736_v21  ;;  %1533 = vmax.xlane.f32.xlu0 %v4739_v16  ;;  %v4771_v46 = vsel %vm1370_vm2, -inf, %v4325_v0  ;;  %v4819_v49 = vsel %vm1373_vm10, -inf, %v4371_v39 }
 0x3c8   : > { %v4822_v54 = vsel %vm1374_vm11, -inf, %v4374_v3  ;;  %vm1383_vm14 = vcmp.ge.f32.partialorder %v4433_v44, %v4647_v12  ;;  %vm1382_vm2 = vcmp.ge.f32.partialorder %v7184_v36, %v4649_v20 }
 0x3c9   : > { %v4779_v30 = vsel %vm1352_vm4, %v4742_v53, %v4332_v60  ;;  %v4785_v43 = vsel %vm1352_vm4, %v4745_v22, %v4337_v62  ;;  %vm1446_vm7 = vcmp.ge.f32.partialorder %v4344_v58, %v4742_v53  ;;  %vm1445_vm8 = vcmp.ge.f32.partialorder %v4347_v59, %v4745_v22 }
 0x3ca   : > { %v1303_v45 = vpop.xlane.xlu1 %1302  ;;  %v1300_v0 = vpop.xlane.xlu0 %1299  ;;  %v4792_v2 = vsel %vm1446_vm7, -inf, %v4344_v58  ;;  %v4795_v60 = vsel %vm1445_vm8, -inf, %v4347_v59  ;;  %v1468_v62 = vmax.f32 %v4753_v25, %v4759_v18  ;;  %v1465_v58 = vmax.f32 %v4765_v35, %v4771_v46 }
 0x3cb   : > { %1539 = vmax.xlane.f32.xlu1 %v4792_v2  ;;  %1537 = vmax.xlane.f32.xlu0 %v4795_v60  ;;  %v4813_v59 = vsel %vm1375_vm6, -inf, %v4365_v61  ;;  %v1471_v28 = vmax.f32 %v4819_v49, %v4822_v54 }
 0x3cc   : > { %v1474_v39 = vmax.f32 %v4813_v59, %v4816_v42 }
 0x3ce   : > { %v1335_v1 = vpop.xlane.xlu1 %1334  ;;  %v1333_v7 = vpop.xlane.xlu0 %1332 }
 0x3cf   : > { %v4830_v61 = vmax.f32 %v1303_v45, %v1335_v1  ;;  %v4832_v24 = vmax.f32 %v1300_v0, %v1333_v7  ;;  %1469 = vmax.xlane.f32.xlu1 %v1468_v62  ;;  %1466 = vmax.xlane.f32.xlu0 %v1465_v58  ;;  %v4856_v45 = vsel %vm1380_vm13, -inf, %v4412_v32  ;;  %v4859_v0 = vsel %vm1377_vm0, -inf, %v4415_v47  ;;  %v7188_v1 = vld [vmem:[#allocation26_spill] sm:$0xff] }
 0x3d0   : > { %v1480_v32 = vmax.f32 %v4853_v9, %v4856_v45  ;;  %v4886_v58 = vsel %vm1382_vm2, -inf, %v7184_v36  ;;  %vm1388_vm5 = vcmp.ge.f32.partialorder %v7188_v1, %v4675_v38 }
 0x3d1   : > { %v4842_v3 = vsel %vm1352_vm4, %v4830_v61, %v4399_v29  ;;  %v4848_v57 = vsel %vm1352_vm4, %v4832_v24, %v4404_v4  ;;  %v4862_v29 = vsel %vm1378_vm1, -inf, %v4418_v13  ;;  %vm1384_vm4 = vcmp.ge.f32.partialorder %v4436_v40, %v4647_v12  ;;  %v7183_v4 = vld [vmem:[#allocation23_spill] sm:$0xff] }
 0x3d2   : > { %vm1381_vm15 = vcmp.ge.f32.partialorder %v7183_v4, %v4649_v20  ;;  %v1477_v47 = vmax.f32 %v4859_v0, %v4862_v29  ;;  %v4877_v13 = vsel %vm1383_vm14, -inf, %v4433_v44  ;;  %v4880_v62 = vsel %vm1384_vm4, -inf, %v4436_v40  ;;  %7186 = vst [vmem:[#allocation23_spill] sm:$0xff] %v4886_v58  ;;  %v7187_v20 = vld [vmem:[#allocation25_spill] sm:$0xff]  ;;  %v7189_v44 = vld [vmem:[#allocation27_spill] sm:$0xff]  ;;  %v7190_v40 = vld [vmem:[#allocation28_spill] sm:$0xff] }
 0x3d3   : > { %1475 = vmax.xlane.f32.xlu1 %v1474_v39  ;;  %1472 = vmax.xlane.f32.xlu0 %v1471_v28  ;;  %v4883_v12 = vsel %vm1381_vm15, -inf, %v7183_v4  ;;  %vm1387_vm3 = vcmp.ge.f32.partialorder %v7187_v20, %v4675_v38  ;;  %vm1385_vm6 = vcmp.ge.f32.partialorder %v7189_v44, %v4677_v33  ;;  %vm1386_vm7 = vcmp.ge.f32.partialorder %v7190_v40, %v4677_v33  ;;  %v7195_v33 = vld [vmem:[#allocation29_spill] sm:$0xff] }
 0x3d4   : > { %7185 = vst [vmem:[#allocation35_spill] sm:$0xff] %v4883_v12  ;;  %v1486_v7 = vmax.f32 %v4877_v13, %v4880_v62  ;;  %v1483_v39 = vmax.f32 %v4883_v12, %v4886_v58  ;;  %v4901_v28 = vsel %vm1387_vm3, -inf, %v7187_v20  ;;  %v4904_v4 = vsel %vm1388_vm5, -inf, %v7188_v1  ;;  %v7198_v20 = vld [vmem:[#allocation32_spill] sm:$0xff] }
 0x3d5   : > { %7191 = vst [vmem:[#allocation24_spill] sm:$0xff] %v4901_v28  ;;  %7192 = vst [vmem:[#allocation25_spill] sm:$0xff] %v4904_v4  ;;  %v4907_v38 = vsel %vm1385_vm6, -inf, %v7189_v44  ;;  %v4910_v36 = vsel %vm1386_vm7, -inf, %v7190_v40  ;;  %vm1391_vm8 = vcmp.ge.f32.partialorder %v7195_v33, %v4704_v26  ;;  %vm1390_vm11 = vcmp.ge.f32.partialorder %v7198_v20, %v4707_v48 }
 0x3d6   : > { %7193 = vst [vmem:[#allocation26_spill] sm:$0xff] %v4907_v38  ;;  %7194 = vst [vmem:[#allocation27_spill] sm:$0xff] %v4910_v36  ;;  %v1492_v1 = vmax.f32 %v4901_v28, %v4904_v4  ;;  %v1489_v44 = vmax.f32 %v4907_v38, %v4910_v36  ;;  %v4925_v40 = vsel %vm1391_vm8, -inf, %v7195_v33  ;;  %v7204_v4 = vld [vmem:[#allocation34_spill] sm:$0xff]  ;;  %v7205_v33 = vld [vmem:[#allocation13_spill] sm:$0xff]  ;;  %vm1561_vm6 = vcmp.eq.s32.totalorder %v4079_v8, 3 }
 0x3d7   : > { %1481 = vmax.xlane.f32.xlu1 %v1480_v32  ;;  %1478 = vmax.xlane.f32.xlu0 %v1477_v47  ;;  %v7196_v32 = vld [vmem:[#allocation30_spill] sm:$0xff]  ;;  %v7197_v47 = vld [vmem:[#allocation31_spill] sm:$0xff]  ;;  %7199 = vst [vmem:[#allocation28_spill] sm:$0xff] %v4925_v40  ;;  %vm1396_vm13 = vcmp.ge.f32.partialorder %v7204_v4, %v4742_v53  ;;  %vm1393_vm0 = vcmp.ge.f32.partialorder %v7205_v33, %v4745_v22  ;;  %v7223_v28 = vld [vmem:[#allocation21_spill] sm:$0xff] }
 0x3d8   : > { %vm1392_vm9 = vcmp.ge.f32.partialorder %v7196_v32, %v4704_v26  ;;  %vm1389_vm10 = vcmp.ge.f32.partialorder %v7197_v47, %v4707_v48  ;;  %v7203_v48 = vld [vmem:[#allocation33_spill] sm:$0xff] }
 0x3d9   : > { %v4931_v26 = vsel %vm1389_vm10, -inf, %v7197_v47  ;;  %vm1395_vm12 = vcmp.ge.f32.partialorder %v7203_v48, %v4742_v53  ;;  %v4955_v53 = vsel %vm1393_vm0, -inf, %v7205_v33 }
 0x3da   : > { %7201 = vst [vmem:[#allocation30_spill] sm:$0xff] %v4931_v26  ;;  %v4949_v36 = vsel %vm1395_vm12, -inf, %v7203_v48  ;;  %7209 = vst [vmem:[#allocation34_spill] sm:$0xff] %v4955_v53  ;;  %v7213_v48 = vld [vmem:[#allocation17_spill] sm:$0xff] }
 0x3db   : > { %1487 = vmax.xlane.f32.xlu1 %v1486_v7  ;;  %1484 = vmax.xlane.f32.xlu0 %v1483_v39  ;;  %v4928_v7 = vsel %vm1392_vm9, -inf, %v7196_v32  ;;  %v4934_v39 = vsel %vm1390_vm11, -inf, %v7198_v20  ;;  %v7206_v32 = vld [vmem:[#allocation14_spill] sm:$0xff]  ;;  %7207 = vst [vmem:[#allocation32_spill] sm:$0xff] %v4949_v36  ;;  %vm1397_vm15 = vcmp.ge.f32.partialorder %v7213_v48, %v4832_v24 }
 0x3dc   : > { %7200 = vst [vmem:[#allocation29_spill] sm:$0xff] %v4928_v7  ;;  %7202 = vst [vmem:[#allocation31_spill] sm:$0xff] %v4934_v39  ;;  %vm1394_vm1 = vcmp.ge.f32.partialorder %v7206_v32, %v4745_v22  ;;  %v1498_v47 = vmax.f32 %v4925_v40, %v4928_v7  ;;  %v1495_v20 = vmax.f32 %v4931_v26, %v4934_v39  ;;  %v7211_v22 = vld [vmem:[#allocation15_spill] sm:$0xff]  ;;  %v7212_v7 = vld [vmem:[#allocation16_spill] sm:$0xff] }
 0x3dd   : > { %vm1399_vm14 = vcmp.ge.f32.partialorder %v7211_v22, %v4830_v61  ;;  %vm1400_vm4 = vcmp.ge.f32.partialorder %v7212_v7, %v4830_v61 }
 0x3de   : > { %v4973_v39 = vsel %vm1399_vm14, -inf, %v7211_v22  ;;  %v7219_v22 = vld [vmem:[#allocation19_spill] sm:$0xff] }
 0x3df   : > { %1493 = vmax.xlane.f32.xlu1 %v1492_v1  ;;  %1490 = vmax.xlane.f32.xlu0 %v1489_v44  ;;  %v4952_v1 = vsel %vm1396_vm13, -inf, %v7204_v4  ;;  %v4958_v44 = vsel %vm1394_vm1, -inf, %v7206_v32  ;;  %v7214_v4 = vld [vmem:[#allocation18_spill] sm:$0xff]  ;;  %7215 = vst [vmem:[#allocation14_spill] sm:$0xff] %v4973_v39  ;;  %vm1448_vm3 = vcmp.ge.f32.partialorder %v7219_v22, %v4830_v61 }
 0x3e0   : > { %7208 = vst [vmem:[#allocation33_spill] sm:$0xff] %v4952_v1  ;;  %7210 = vst [vmem:[#allocation13_spill] sm:$0xff] %v4958_v44  ;;  %vm1398_vm2 = vcmp.ge.f32.partialorder %v7214_v4, %v4832_v24  ;;  %v1504_v33 = vmax.f32 %v4949_v36, %v4952_v1  ;;  %v1501_v32 = vmax.f32 %v4955_v53, %v4958_v44 }
 0x3e1   : > { %v4982_v26 = vsel %vm1398_vm2, -inf, %v7214_v4 }
 0x3e2   : > { %7218 = vst [vmem:[#allocation17_spill] sm:$0xff] %v4982_v26 }
 0x3e3   : > { %1499 = vmax.xlane.f32.xlu1 %v1498_v47  ;;  %1496 = vmax.xlane.f32.xlu0 %v1495_v20  ;;  %v4976_v47 = vsel %vm1400_vm4, -inf, %v7212_v7  ;;  %v4979_v20 = vsel %vm1397_vm15, -inf, %v7213_v48  ;;  %v7220_v7 = vld [vmem:[#allocation20_spill] sm:$0xff]  ;;  %v4993_v48 = vsel %vm1448_vm3, -inf, %v7219_v22 }
 0x3e4   : > { %7216 = vst [vmem:[#allocation15_spill] sm:$0xff] %v4976_v47  ;;  %7217 = vst [vmem:[#allocation16_spill] sm:$0xff] %v4979_v20  ;;  %v1510_v1 = vmax.f32 %v4973_v39, %v4976_v47  ;;  %v1507_v44 = vmax.f32 %v4979_v20, %v4982_v26  ;;  %vm1447_vm5 = vcmp.ge.f32.partialorder %v7220_v7, %v4832_v24 }
 0x3e5   : > { %7221 = vst [vmem:[#allocation18_spill] sm:$0xff] %v4993_v48  ;;  %v4996_v4 = vsel %vm1447_vm5, -inf, %v7220_v7 }
 0x3e6   : > { %7222 = vst [vmem:[#allocation19_spill] sm:$0xff] %v4996_v4 }
 0x3e7   : > { %1505 = vmax.xlane.f32.xlu1 %v1504_v33  ;;  %1502 = vmax.xlane.f32.xlu0 %v1501_v32 }
 0x3eb   : > { %1511 = vmax.xlane.f32.xlu1 %v1510_v1  ;;  %1508 = vmax.xlane.f32.xlu0 %v1507_v44 }
 0x3ef   : > { %1543 = vmax.xlane.f32.xlu1 %v4993_v48  ;;  %1541 = vmax.xlane.f32.xlu0 %v4996_v4 }
 0x440   : > { %v1516_v33 = vpop.xlane.xlu1 %1515  ;;  %v1514_v32 = vpop.xlane.xlu0 %1513 }
 0x444   : > { %v1520_v1 = vpop.xlane.xlu1 %1519  ;;  %v1518_v44 = vpop.xlane.xlu0 %1517 }
 0x448   : > { %v1524_v26 = vpop.xlane.xlu1 %1523  ;;  %v1522_v20 = vpop.xlane.xlu0 %1521 }
 0x44c   : > { %v1528_v61 = vpop.xlane.xlu1 %1527  ;;  %v1526_v47 = vpop.xlane.xlu0 %1525 }
 0x450   : > { %v1532_v39 = vpop.xlane.xlu1 %1531  ;;  %v1530_v24 = vpop.xlane.xlu0 %1529 }
 0x454   : > { %v5000_v53 = vpop.xlane.xlu1 %1535  ;;  %v5002_v22 = vpop.xlane.xlu0 %1533 }
 0x458   : > { %v5004_v7 = vpop.xlane.xlu1 %1539  ;;  %v5006_v36 = vpop.xlane.xlu0 %1537 }
 0x45c   : > { %v1470_v4 = vpop.xlane.xlu1 %1469  ;;  %v1467_v48 = vpop.xlane.xlu0 %1466 }
 0x45d   : > { %v5009_v40 = vmax.f32 %v1470_v4, %v1516_v33  ;;  %v5011_v38 = vmax.f32 %v1467_v48, %v1514_v32 }
 0x45f   : > { %v5017_v58 = vsel %vm1561_vm6, %v5009_v40, %v7223_v28  ;;  %v5023_v12 = vsel %vm1561_vm6, %v5011_v38, %v4579_v37  ;;  %vm1643_vm7 = vcmp.ge.f32.partialorder %v4586_v14, %v5009_v40  ;;  %vm1642_vm8 = vcmp.ge.f32.partialorder %v4589_v19, %v5011_v38 }
 0x460   : > { %7224 = vst [vmem:[#allocation20_spill] sm:$0xff] %v5017_v58  ;;  %v1476_v48 = vpop.xlane.xlu1 %1475  ;;  %v1473_v4 = vpop.xlane.xlu0 %1472  ;;  %v5030_v33 = vsel %vm1643_vm7, -inf, %v4586_v14  ;;  %v5033_v28 = vsel %vm1642_vm8, -inf, %v4589_v19  ;;  %vm1580_vm4 = vcmp.ge.f32.partialorder %v4753_v25, %v5009_v40  ;;  %vm1581_vm15 = vcmp.ge.f32.partialorder %v4759_v18, %v5009_v40 }
 0x461   : > { %v5035_v32 = vmax.f32 %v1476_v48, %v1520_v1  ;;  %v5037_v58 = vmax.f32 %v1473_v4, %v1518_v44  ;;  %1724 = vmax.xlane.f32.xlu1 %v5030_v33  ;;  %1722 = vmax.xlane.f32.xlu0 %v5033_v28  ;;  %vm1578_vm2 = vcmp.ge.f32.partialorder %v4765_v35, %v5011_v38 }
 0x462   : > { %vm1579_vm3 = vcmp.ge.f32.partialorder %v4771_v46, %v5011_v38 }
 0x463   : > { %v5045_v37 = vsel %vm1561_vm6, %v5035_v32, %v4601_v11  ;;  %v5051_v14 = vsel %vm1561_vm6, %v5037_v58, %v4607_v34  ;;  %vm1645_vm9 = vcmp.ge.f32.partialorder %v4614_v31, %v5035_v32  ;;  %vm1644_vm10 = vcmp.ge.f32.partialorder %v4617_v17, %v5037_v58 }
 0x464   : > { %v1482_v19 = vpop.xlane.xlu1 %1481  ;;  %v1479_v1 = vpop.xlane.xlu0 %1478  ;;  %v5058_v44 = vsel %vm1645_vm9, -inf, %v4614_v31  ;;  %v5061_v11 = vsel %vm1644_vm10, -inf, %v4617_v17  ;;  %vm1584_vm8 = vcmp.ge.f32.partialorder %v4813_v59, %v5035_v32 }
 0x465   : > { %v5063_v48 = vmax.f32 %v1482_v19, %v1524_v26  ;;  %v5065_v4 = vmax.f32 %v1479_v1, %v1522_v20  ;;  %1728 = vmax.xlane.f32.xlu1 %v5058_v44  ;;  %1726 = vmax.xlane.f32.xlu0 %v5061_v11 }
 0x467   : > { %v5073_v34 = vsel %vm1561_vm6, %v5063_v48, %v4629_v5  ;;  %v5079_v31 = vsel %vm1561_vm6, %v5065_v4, %v4635_v41  ;;  %vm1647_vm11 = vcmp.ge.f32.partialorder %v4642_v55, %v5063_v48  ;;  %vm1646_vm12 = vcmp.ge.f32.partialorder %v4645_v51, %v5065_v4 }
 0x468   : > { %7225 = vst [vmem:[#allocation21_spill] sm:$0xff] %v5079_v31  ;;  %v1488_v17 = vpop.xlane.xlu1 %1487  ;;  %v1485_v26 = vpop.xlane.xlu0 %1484  ;;  %v5086_v20 = vsel %vm1647_vm11, -inf, %v4642_v55  ;;  %v5089_v5 = vsel %vm1646_vm12, -inf, %v4645_v51  ;;  %v7226_v31 = vld [vmem:[#allocation22_spill] sm:$0xff]  ;;  %vm1585_vm11 = vcmp.ge.f32.partialorder %v4816_v42, %v5035_v32  ;;  %vm1582_vm12 = vcmp.ge.f32.partialorder %v4819_v49, %v5037_v58 }
 0x469   : > { %v5091_v19 = vmax.f32 %v1488_v17, %v1528_v61  ;;  %v5093_v1 = vmax.f32 %v1485_v26, %v1526_v47  ;;  %1732 = vmax.xlane.f32.xlu1 %v5086_v20  ;;  %1730 = vmax.xlane.f32.xlu0 %v5089_v5  ;;  %v5260_v40 = vsel %vm1585_vm11, -inf, %v4816_v42 }
 0x46b   : > { %v5101_v41 = vsel %vm1561_vm6, %v5091_v19, %v4657_v27  ;;  %v5107_v55 = vsel %vm1561_vm6, %v5093_v1, %v7226_v31  ;;  %vm1649_vm13 = vcmp.ge.f32.partialorder %v4670_v15, %v5091_v19  ;;  %vm1648_vm0 = vcmp.ge.f32.partialorder %v4673_v52, %v5093_v1 }
 0x46c   : > { %v1494_v51 = vpop.xlane.xlu1 %1493  ;;  %v1491_v47 = vpop.xlane.xlu0 %1490  ;;  %v5114_v61 = vsel %vm1649_vm13, -inf, %v4670_v15  ;;  %v5117_v27 = vsel %vm1648_vm0, -inf, %v4673_v52  ;;  %vm1583_vm13 = vcmp.ge.f32.partialorder %v4822_v54, %v5037_v58  ;;  %vm1588_vm0 = vcmp.ge.f32.partialorder %v4853_v9, %v5063_v48 }
 0x46d   : > { %v5119_v17 = vmax.f32 %v1494_v51, %v1532_v39  ;;  %v5121_v26 = vmax.f32 %v1491_v47, %v1530_v24  ;;  %1736 = vmax.xlane.f32.xlu1 %v5114_v61  ;;  %1734 = vmax.xlane.f32.xlu0 %v5117_v27 }
 0x46f   : > { %v5129_v31 = vsel %vm1561_vm6, %v5119_v17, %v4685_v50  ;;  %v5135_v15 = vsel %vm1561_vm6, %v5121_v26, %v4691_v23  ;;  %vm1651_vm1 = vcmp.ge.f32.partialorder %v4698_v63, %v5119_v17  ;;  %vm1650_vm14 = vcmp.ge.f32.partialorder %v4701_v56, %v5121_v26 }
 0x470   : > { %v1500_v52 = vpop.xlane.xlu1 %1499  ;;  %v1497_v39 = vpop.xlane.xlu0 %1496  ;;  %v5142_v24 = vsel %vm1651_vm1, -inf, %v4698_v63  ;;  %v5145_v50 = vsel %vm1650_vm14, -inf, %v4701_v56  ;;  %vm1589_vm1 = vcmp.ge.f32.partialorder %v4856_v45, %v5063_v48  ;;  %vm1586_vm14 = vcmp.ge.f32.partialorder %v4859_v0, %v5065_v4 }
 0x471   : > { %v5148_v51 = vmax.f32 %v1500_v52, %v5000_v53  ;;  %v5151_v23 = vmax.f32 %v1497_v39, %v5002_v22  ;;  %1740 = vmax.xlane.f32.xlu1 %v5142_v24  ;;  %1738 = vmax.xlane.f32.xlu0 %v5145_v50  ;;  %v5197_v39 = vsel %vm1580_vm4, -inf, %v4753_v25  ;;  %vm1587_vm4 = vcmp.ge.f32.partialorder %v4862_v29, %v5065_v4 }
 0x472   : > { %v5297_v4 = vsel %vm1588_vm0, -inf, %v4853_v9  ;;  %v7228_v9 = vld [vmem:[#allocation23_spill] sm:$0xff] }
 0x473   : > { %v5167_v63 = vsel %vm1561_vm6, %v5148_v51, %v4723_v6  ;;  %v5173_v56 = vsel %vm1561_vm6, %v5151_v23, %v4729_v10  ;;  %vm1653_vm5 = vcmp.ge.f32.partialorder %v4736_v21, %v5148_v51  ;;  %vm1652_vm7 = vcmp.ge.f32.partialorder %v4739_v16, %v5151_v23 }
 0x474   : > { %v1506_v53 = vpop.xlane.xlu1 %1505  ;;  %v1503_v22 = vpop.xlane.xlu0 %1502  ;;  %v5180_v47 = vsel %vm1653_vm5, -inf, %v4736_v21  ;;  %v5183_v6 = vsel %vm1652_vm7, -inf, %v4739_v16  ;;  %v5203_v21 = vsel %vm1581_vm15, -inf, %v4759_v18  ;;  %v5209_v16 = vsel %vm1578_vm2, -inf, %v4765_v35 }
 0x475   : > { %v5186_v52 = vmax.f32 %v1506_v53, %v5004_v7  ;;  %v5189_v10 = vmax.f32 %v1503_v22, %v5006_v36  ;;  %1744 = vmax.xlane.f32.xlu1 %v5180_v47  ;;  %1742 = vmax.xlane.f32.xlu0 %v5183_v6  ;;  %v5215_v36 = vsel %vm1579_vm3, -inf, %v4771_v46  ;;  %v5263_v7 = vsel %vm1582_vm12, -inf, %v4819_v49 }
 0x476   : > { %v5266_v22 = vsel %vm1583_vm13, -inf, %v4822_v54  ;;  %vm1592_vm15 = vcmp.ge.f32.partialorder %v4877_v13, %v5091_v19  ;;  %vm1591_vm3 = vcmp.ge.f32.partialorder %v7228_v9, %v5093_v1 }
 0x477   : > { %v5223_v25 = vsel %vm1561_vm6, %v5186_v52, %v4779_v30  ;;  %v5229_v18 = vsel %vm1561_vm6, %v5189_v10, %v4785_v43  ;;  %vm1655_vm9 = vcmp.ge.f32.partialorder %v4792_v2, %v5186_v52  ;;  %vm1654_vm10 = vcmp.ge.f32.partialorder %v4795_v60, %v5189_v10 }
 0x478   : > { %v1512_v35 = vpop.xlane.xlu1 %1511  ;;  %v1509_v46 = vpop.xlane.xlu0 %1508  ;;  %v5236_v38 = vsel %vm1655_vm9, -inf, %v4792_v2  ;;  %v5239_v30 = vsel %vm1654_vm10, -inf, %v4795_v60  ;;  %v1677_v43 = vmax.f32 %v5197_v39, %v5203_v21  ;;  %v1674_v2 = vmax.f32 %v5209_v16, %v5215_v36 }
 0x479   : > { %1748 = vmax.xlane.f32.xlu1 %v5236_v38  ;;  %1746 = vmax.xlane.f32.xlu0 %v5239_v30  ;;  %v5257_v60 = vsel %vm1584_vm8, -inf, %v4813_v59  ;;  %v1680_v48 = vmax.f32 %v5263_v7, %v5266_v22 }
 0x47a   : > { %v1683_v49 = vmax.f32 %v5257_v60, %v5260_v40 }
 0x47c   : > { %v1544_v53 = vpop.xlane.xlu1 %1543  ;;  %v1542_v58 = vpop.xlane.xlu0 %1541 }
 0x47d   : > { %v5274_v59 = vmax.f32 %v1512_v35, %v1544_v53  ;;  %v5276_v42 = vmax.f32 %v1509_v46, %v1542_v58  ;;  %1678 = vmax.xlane.f32.xlu1 %v1677_v43  ;;  %1675 = vmax.xlane.f32.xlu0 %v1674_v2  ;;  %v5300_v35 = vsel %vm1589_vm1, -inf, %v4856_v45  ;;  %v5303_v46 = vsel %vm1586_vm14, -inf, %v4859_v0  ;;  %v7232_v53 = vld [vmem:[#allocation25_spill] sm:$0xff] }
 0x47e   : > { %v1689_v45 = vmax.f32 %v5297_v4, %v5300_v35  ;;  %v5330_v2 = vsel %vm1591_vm3, -inf, %v7228_v9  ;;  %vm1597_vm7 = vcmp.ge.f32.partialorder %v7232_v53, %v5119_v17 }
 0x47f   : > { %v5286_v54 = vsel %vm1561_vm6, %v5274_v59, %v4842_v3  ;;  %v5292_v32 = vsel %vm1561_vm6, %v5276_v42, %v4848_v57  ;;  %v5306_v3 = vsel %vm1587_vm4, -inf, %v4862_v29  ;;  %vm1593_vm6 = vcmp.ge.f32.partialorder %v4880_v62, %v5091_v19  ;;  %v7227_v57 = vld [vmem:[#allocation35_spill] sm:$0xff] }
 0x480   : > { %vm1590_vm2 = vcmp.ge.f32.partialorder %v7227_v57, %v5093_v1  ;;  %v1686_v0 = vmax.f32 %v5303_v46, %v5306_v3  ;;  %v5321_v29 = vsel %vm1592_vm15, -inf, %v4877_v13  ;;  %v5324_v43 = vsel %vm1593_vm6, -inf, %v4880_v62  ;;  %7230 = vst [vmem:[#allocation35_spill] sm:$0xff] %v5330_v2  ;;  %v7231_v1 = vld [vmem:[#allocation24_spill] sm:$0xff]  ;;  %v7233_v13 = vld [vmem:[#allocation26_spill] sm:$0xff]  ;;  %v7234_v62 = vld [vmem:[#allocation27_spill] sm:$0xff] }
 0x481   : > { %1684 = vmax.xlane.f32.xlu1 %v1683_v49  ;;  %1681 = vmax.xlane.f32.xlu0 %v1680_v48  ;;  %v5327_v19 = vsel %vm1590_vm2, -inf, %v7227_v57  ;;  %vm1596_vm5 = vcmp.ge.f32.partialorder %v7231_v1, %v5119_v17  ;;  %vm1594_vm8 = vcmp.ge.f32.partialorder %v7233_v13, %v5121_v26  ;;  %vm1595_vm9 = vcmp.ge.f32.partialorder %v7234_v62, %v5121_v26  ;;  %v7239_v26 = vld [vmem:[#allocation28_spill] sm:$0xff] }
 0x482   : > { %7229 = vst [vmem:[#allocation22_spill] sm:$0xff] %v5327_v19  ;;  %v1695_v58 = vmax.f32 %v5321_v29, %v5324_v43  ;;  %v1692_v49 = vmax.f32 %v5327_v19, %v5330_v2  ;;  %v5345_v48 = vsel %vm1596_vm5, -inf, %v7231_v1  ;;  %v5348_v57 = vsel %vm1597_vm7, -inf, %v7232_v53  ;;  %v7242_v1 = vld [vmem:[#allocation31_spill] sm:$0xff] }
 0x483   : > { %7235 = vst [vmem:[#allocation23_spill] sm:$0xff] %v5345_v48  ;;  %7236 = vst [vmem:[#allocation24_spill] sm:$0xff] %v5348_v57  ;;  %v5351_v17 = vsel %vm1594_vm8, -inf, %v7233_v13  ;;  %v5354_v9 = vsel %vm1595_vm9, -inf, %v7234_v62  ;;  %vm1600_vm10 = vcmp.ge.f32.partialorder %v7239_v26, %v5148_v51  ;;  %vm1599_vm13 = vcmp.ge.f32.partialorder %v7242_v1, %v5151_v23 }
 0x484   : > { %7237 = vst [vmem:[#allocation25_spill] sm:$0xff] %v5351_v17  ;;  %7238 = vst [vmem:[#allocation26_spill] sm:$0xff] %v5354_v9  ;;  %v1701_v53 = vmax.f32 %v5345_v48, %v5348_v57  ;;  %v1698_v13 = vmax.f32 %v5351_v17, %v5354_v9  ;;  %v5369_v62 = vsel %vm1600_vm10, -inf, %v7239_v26  ;;  %v7248_v57 = vld [vmem:[#allocation33_spill] sm:$0xff]  ;;  %v7249_v26 = vld [vmem:[#allocation34_spill] sm:$0xff]  ;;  %vm1770_vm8 = vcmp.eq.s32.totalorder %v4079_v8, 4 }
 0x485   : > { %1690 = vmax.xlane.f32.xlu1 %v1689_v45  ;;  %1687 = vmax.xlane.f32.xlu0 %v1686_v0  ;;  %v7240_v45 = vld [vmem:[#allocation29_spill] sm:$0xff]  ;;  %v7241_v0 = vld [vmem:[#allocation30_spill] sm:$0xff]  ;;  %7243 = vst [vmem:[#allocation27_spill] sm:$0xff] %v5369_v62  ;;  %vm1605_vm1 = vcmp.ge.f32.partialorder %v7248_v57, %v5186_v52  ;;  %vm1602_vm14 = vcmp.ge.f32.partialorder %v7249_v26, %v5189_v10  ;;  %v7267_v48 = vld [vmem:[#allocation20_spill] sm:$0xff] }
 0x486   : > { %vm1601_vm11 = vcmp.ge.f32.partialorder %v7240_v45, %v5148_v51  ;;  %vm1598_vm12 = vcmp.ge.f32.partialorder %v7241_v0, %v5151_v23  ;;  %v7247_v23 = vld [vmem:[#allocation32_spill] sm:$0xff] }
 0x487   : > { %v5375_v51 = vsel %vm1598_vm12, -inf, %v7241_v0  ;;  %vm1604_vm0 = vcmp.ge.f32.partialorder %v7247_v23, %v5186_v52  ;;  %v5399_v52 = vsel %vm1602_vm14, -inf, %v7249_v26 }
 0x488   : > { %7245 = vst [vmem:[#allocation29_spill] sm:$0xff] %v5375_v51  ;;  %v5393_v9 = vsel %vm1604_vm0, -inf, %v7247_v23  ;;  %7253 = vst [vmem:[#allocation33_spill] sm:$0xff] %v5399_v52  ;;  %v7257_v23 = vld [vmem:[#allocation16_spill] sm:$0xff] }
 0x489   : > { %1696 = vmax.xlane.f32.xlu1 %v1695_v58  ;;  %1693 = vmax.xlane.f32.xlu0 %v1692_v49  ;;  %v5372_v58 = vsel %vm1601_vm11, -inf, %v7240_v45  ;;  %v5378_v49 = vsel %vm1599_vm13, -inf, %v7242_v1  ;;  %v7250_v45 = vld [vmem:[#allocation13_spill] sm:$0xff]  ;;  %7251 = vst [vmem:[#allocation31_spill] sm:$0xff] %v5393_v9  ;;  %vm1606_vm2 = vcmp.ge.f32.partialorder %v7257_v23, %v5276_v42 }
 0x48a   : > { %7244 = vst [vmem:[#allocation28_spill] sm:$0xff] %v5372_v58  ;;  %7246 = vst [vmem:[#allocation30_spill] sm:$0xff] %v5378_v49  ;;  %vm1603_vm4 = vcmp.ge.f32.partialorder %v7250_v45, %v5189_v10  ;;  %v1707_v0 = vmax.f32 %v5369_v62, %v5372_v58  ;;  %v1704_v1 = vmax.f32 %v5375_v51, %v5378_v49  ;;  %v7255_v10 = vld [vmem:[#allocation14_spill] sm:$0xff]  ;;  %v7256_v58 = vld [vmem:[#allocation15_spill] sm:$0xff] }
 0x48b   : > { %vm1608_vm15 = vcmp.ge.f32.partialorder %v7255_v10, %v5274_v59  ;;  %vm1609_vm6 = vcmp.ge.f32.partialorder %v7256_v58, %v5274_v59 }
 0x48c   : > { %v5417_v49 = vsel %vm1608_vm15, -inf, %v7255_v10  ;;  %v7263_v10 = vld [vmem:[#allocation18_spill] sm:$0xff] }
 0x48d   : > { %1702 = vmax.xlane.f32.xlu1 %v1701_v53  ;;  %1699 = vmax.xlane.f32.xlu0 %v1698_v13  ;;  %v5396_v53 = vsel %vm1605_vm1, -inf, %v7248_v57  ;;  %v5402_v13 = vsel %vm1603_vm4, -inf, %v7250_v45  ;;  %v7258_v57 = vld [vmem:[#allocation17_spill] sm:$0xff]  ;;  %7259 = vst [vmem:[#allocation13_spill] sm:$0xff] %v5417_v49  ;;  %vm1657_vm5 = vcmp.ge.f32.partialorder %v7263_v10, %v5274_v59 }
 0x48e   : > { %7252 = vst [vmem:[#allocation32_spill] sm:$0xff] %v5396_v53  ;;  %7254 = vst [vmem:[#allocation34_spill] sm:$0xff] %v5402_v13  ;;  %vm1607_vm3 = vcmp.ge.f32.partialorder %v7258_v57, %v5276_v42  ;;  %v1713_v26 = vmax.f32 %v5393_v9, %v5396_v53  ;;  %v1710_v45 = vmax.f32 %v5399_v52, %v5402_v13 }
 0x48f   : > { %v5426_v51 = vsel %vm1607_vm3, -inf, %v7258_v57 }
 0x490   : > { %7262 = vst [vmem:[#allocation16_spill] sm:$0xff] %v5426_v51 }
 0x491   : > { %1708 = vmax.xlane.f32.xlu1 %v1707_v0  ;;  %1705 = vmax.xlane.f32.xlu0 %v1704_v1  ;;  %v5420_v0 = vsel %vm1609_vm6, -inf, %v7256_v58  ;;  %v5423_v1 = vsel %vm1606_vm2, -inf, %v7257_v23  ;;  %v7264_v58 = vld [vmem:[#allocation19_spill] sm:$0xff]  ;;  %v5437_v23 = vsel %vm1657_vm5, -inf, %v7263_v10 }
 0x492   : > { %7260 = vst [vmem:[#allocation14_spill] sm:$0xff] %v5420_v0  ;;  %7261 = vst [vmem:[#allocation15_spill] sm:$0xff] %v5423_v1  ;;  %v1719_v53 = vmax.f32 %v5417_v49, %v5420_v0  ;;  %v1716_v13 = vmax.f32 %v5423_v1, %v5426_v51  ;;  %vm1656_vm7 = vcmp.ge.f32.partialorder %v7264_v58, %v5276_v42 }
 0x493   : > { %7265 = vst [vmem:[#allocation17_spill] sm:$0xff] %v5437_v23  ;;  %v5440_v57 = vsel %vm1656_vm7, -inf, %v7264_v58 }
 0x494   : > { %7266 = vst [vmem:[#allocation18_spill] sm:$0xff] %v5440_v57 }
 0x495   : > { %1714 = vmax.xlane.f32.xlu1 %v1713_v26  ;;  %1711 = vmax.xlane.f32.xlu0 %v1710_v45 }
 0x499   : > { %1720 = vmax.xlane.f32.xlu1 %v1719_v53  ;;  %1717 = vmax.xlane.f32.xlu0 %v1716_v13 }
 0x49d   : > { %1752 = vmax.xlane.f32.xlu1 %v5437_v23  ;;  %1750 = vmax.xlane.f32.xlu0 %v5440_v57 }
 0x4ee   : > { %v1725_v26 = vpop.xlane.xlu1 %1724  ;;  %v1723_v45 = vpop.xlane.xlu0 %1722 }
 0x4f2   : > { %v1729_v53 = vpop.xlane.xlu1 %1728  ;;  %v1727_v13 = vpop.xlane.xlu0 %1726 }
 0x4f6   : > { %v1733_v51 = vpop.xlane.xlu1 %1732  ;;  %v1731_v1 = vpop.xlane.xlu0 %1730 }
 0x4fa   : > { %v1737_v59 = vpop.xlane.xlu1 %1736  ;;  %v1735_v0 = vpop.xlane.xlu0 %1734 }
 0x4fe   : > { %v1741_v49 = vpop.xlane.xlu1 %1740  ;;  %v1739_v42 = vpop.xlane.xlu0 %1738 }
 0x502   : > { %v5444_v52 = vpop.xlane.xlu1 %1744  ;;  %v5446_v10 = vpop.xlane.xlu0 %1742 }
 0x506   : > { %v5448_v58 = vpop.xlane.xlu1 %1748  ;;  %v5450_v9 = vpop.xlane.xlu0 %1746 }
 0x50a   : > { %v1679_v57 = vpop.xlane.xlu1 %1678  ;;  %v1676_v23 = vpop.xlane.xlu0 %1675 }
 0x50b   : > { %v5453_v62 = vmax.f32 %v1679_v57, %v1725_v26  ;;  %v5455_v17 = vmax.f32 %v1676_v23, %v1723_v45 }
 0x50d   : > { %v5461_v2 = vsel %vm1770_vm8, %v5453_v62, %v7267_v48  ;;  %v5467_v19 = vsel %vm1770_vm8, %v5455_v17, %v5023_v12  ;;  %vm1852_vm9 = vcmp.ge.f32.partialorder %v5030_v33, %v5453_v62  ;;  %vm1851_vm10 = vcmp.ge.f32.partialorder %v5033_v28, %v5455_v17 }
 0x50e   : > { %7268 = vst [vmem:[#allocation19_spill] sm:$0xff] %v5461_v2  ;;  %v1685_v23 = vpop.xlane.xlu1 %1684  ;;  %v1682_v57 = vpop.xlane.xlu0 %1681  ;;  %v5474_v26 = vsel %vm1852_vm9, -inf, %v5030_v33  ;;  %v5477_v48 = vsel %vm1851_vm10, -inf, %v5033_v28  ;;  %vm1789_vm6 = vcmp.ge.f32.partialorder %v5197_v39, %v5453_v62  ;;  %vm1790_vm2 = vcmp.ge.f32.partialorder %v5203_v21, %v5453_v62 }
 0x50f   : > { %v5479_v45 = vmax.f32 %v1685_v23, %v1729_v53  ;;  %v5481_v2 = vmax.f32 %v1682_v57, %v1727_v13  ;;  %1933 = vmax.xlane.f32.xlu1 %v5474_v26  ;;  %1931 = vmax.xlane.f32.xlu0 %v5477_v48  ;;  %vm1787_vm3 = vcmp.ge.f32.partialorder %v5209_v16, %v5455_v17 }
 0x510   : > { %vm1788_vm5 = vcmp.ge.f32.partialorder %v5215_v36, %v5455_v17 }
 0x511   : > { %v5489_v12 = vsel %vm1770_vm8, %v5479_v45, %v5045_v37  ;;  %v5495_v33 = vsel %vm1770_vm8, %v5481_v2, %v5051_v14  ;;  %vm1854_vm11 = vcmp.ge.f32.partialorder %v5058_v44, %v5479_v45  ;;  %vm1853_vm12 = vcmp.ge.f32.partialorder %v5061_v11, %v5481_v2 }
 0x512   : > { %7269 = vst [vmem:[#allocation20_spill] sm:$0xff] %v5495_v33  ;;  %v1691_v28 = vpop.xlane.xlu1 %1690  ;;  %v1688_v53 = vpop.xlane.xlu0 %1687  ;;  %v5502_v13 = vsel %vm1854_vm11, -inf, %v5058_v44  ;;  %v5505_v37 = vsel %vm1853_vm12, -inf, %v5061_v11  ;;  %v7270_v33 = vld [vmem:[#allocation21_spill] sm:$0xff]  ;;  %vm1793_vm10 = vcmp.ge.f32.partialorder %v5257_v60, %v5479_v45 }
 0x513   : > { %v5507_v23 = vmax.f32 %v1691_v28, %v1733_v51  ;;  %v5509_v57 = vmax.f32 %v1688_v53, %v1731_v1  ;;  %1937 = vmax.xlane.f32.xlu1 %v5502_v13  ;;  %1935 = vmax.xlane.f32.xlu0 %v5505_v37 }
 0x515   : > { %v5517_v14 = vsel %vm1770_vm8, %v5507_v23, %v5073_v34  ;;  %v5523_v44 = vsel %vm1770_vm8, %v5509_v57, %v7270_v33  ;;  %vm1856_vm13 = vcmp.ge.f32.partialorder %v5086_v20, %v5507_v23  ;;  %vm1855_vm0 = vcmp.ge.f32.partialorder %v5089_v5, %v5509_v57 }
 0x516   : > { %v1697_v11 = vpop.xlane.xlu1 %1696  ;;  %v1694_v51 = vpop.xlane.xlu0 %1693  ;;  %v5530_v1 = vsel %vm1856_vm13, -inf, %v5086_v20  ;;  %v5533_v34 = vsel %vm1855_vm0, -inf, %v5089_v5  ;;  %vm1794_vm13 = vcmp.ge.f32.partialorder %v5260_v40, %v5479_v45  ;;  %vm1791_vm0 = vcmp.ge.f32.partialorder %v5263_v7, %v5481_v2 }
 0x517   : > { %v5535_v28 = vmax.f32 %v1697_v11, %v1737_v59  ;;  %v5537_v53 = vmax.f32 %v1694_v51, %v1735_v0  ;;  %1941 = vmax.xlane.f32.xlu1 %v5530_v1  ;;  %1939 = vmax.xlane.f32.xlu0 %v5533_v34  ;;  %v5704_v62 = vsel %vm1794_vm13, -inf, %v5260_v40 }
 0x519   : > { %v5545_v33 = vsel %vm1770_vm8, %v5535_v28, %v5101_v41  ;;  %v5551_v20 = vsel %vm1770_vm8, %v5537_v53, %v5107_v55  ;;  %vm1858_vm1 = vcmp.ge.f32.partialorder %v5114_v61, %v5535_v28  ;;  %vm1857_vm14 = vcmp.ge.f32.partialorder %v5117_v27, %v5537_v53 }
 0x51a   : > { %v1703_v5 = vpop.xlane.xlu1 %1702  ;;  %v1700_v0 = vpop.xlane.xlu0 %1699  ;;  %v5558_v59 = vsel %vm1858_vm1, -inf, %v5114_v61  ;;  %v5561_v41 = vsel %vm1857_vm14, -inf, %v5117_v27  ;;  %vm1792_vm1 = vcmp.ge.f32.partialorder %v5266_v22, %v5481_v2  ;;  %vm1797_vm14 = vcmp.ge.f32.partialorder %v5297_v4, %v5507_v23 }
 0x51b   : > { %v5563_v11 = vmax.f32 %v1703_v5, %v1741_v49  ;;  %v5565_v51 = vmax.f32 %v1700_v0, %v1739_v42  ;;  %1945 = vmax.xlane.f32.xlu1 %v5558_v59  ;;  %1943 = vmax.xlane.f32.xlu0 %v5561_v41 }
 0x51d   : > { %v5573_v55 = vsel %vm1770_vm8, %v5563_v11, %v5129_v31  ;;  %v5579_v61 = vsel %vm1770_vm8, %v5565_v51, %v5135_v15  ;;  %vm1860_vm4 = vcmp.ge.f32.partialorder %v5142_v24, %v5563_v11  ;;  %vm1859_vm15 = vcmp.ge.f32.partialorder %v5145_v50, %v5565_v51 }
 0x51e   : > { %v1709_v27 = vpop.xlane.xlu1 %1708  ;;  %v1706_v49 = vpop.xlane.xlu0 %1705  ;;  %v5586_v42 = vsel %vm1860_vm4, -inf, %v5142_v24  ;;  %v5589_v31 = vsel %vm1859_vm15, -inf, %v5145_v50  ;;  %vm1798_vm4 = vcmp.ge.f32.partialorder %v5300_v35, %v5507_v23  ;;  %vm1795_vm15 = vcmp.ge.f32.partialorder %v5303_v46, %v5509_v57 }
 0x51f   : > { %v5592_v5 = vmax.f32 %v1709_v27, %v5444_v52  ;;  %v5595_v15 = vmax.f32 %v1706_v49, %v5446_v10  ;;  %1949 = vmax.xlane.f32.xlu1 %v5586_v42  ;;  %1947 = vmax.xlane.f32.xlu0 %v5589_v31  ;;  %v5641_v49 = vsel %vm1789_vm6, -inf, %v5197_v39  ;;  %vm1796_vm6 = vcmp.ge.f32.partialorder %v5306_v3, %v5509_v57 }
 0x520   : > { %v5741_v57 = vsel %vm1797_vm14, -inf, %v5297_v4  ;;  %v7272_v4 = vld [vmem:[#allocation35_spill] sm:$0xff] }
 0x521   : > { %v5611_v24 = vsel %vm1770_vm8, %v5592_v5, %v5167_v63  ;;  %v5617_v50 = vsel %vm1770_vm8, %v5595_v15, %v5173_v56  ;;  %vm1862_vm7 = vcmp.ge.f32.partialorder %v5180_v47, %v5592_v5  ;;  %vm1861_vm9 = vcmp.ge.f32.partialorder %v5183_v6, %v5595_v15 }
 0x522   : > { %v1715_v52 = vpop.xlane.xlu1 %1714  ;;  %v1712_v10 = vpop.xlane.xlu0 %1711  ;;  %v5624_v0 = vsel %vm1862_vm7, -inf, %v5180_v47  ;;  %v5627_v63 = vsel %vm1861_vm9, -inf, %v5183_v6  ;;  %v5647_v47 = vsel %vm1790_vm2, -inf, %v5203_v21  ;;  %v5653_v6 = vsel %vm1787_vm3, -inf, %v5209_v16 }
 0x523   : > { %v5630_v27 = vmax.f32 %v1715_v52, %v5448_v58  ;;  %v5633_v56 = vmax.f32 %v1712_v10, %v5450_v9  ;;  %1953 = vmax.xlane.f32.xlu1 %v5624_v0  ;;  %1951 = vmax.xlane.f32.xlu0 %v5627_v63  ;;  %v5659_v9 = vsel %vm1788_vm5, -inf, %v5215_v36  ;;  %v5707_v58 = vsel %vm1791_vm0, -inf, %v5263_v7 }
 0x524   : > { %v5710_v10 = vsel %vm1792_vm1, -inf, %v5266_v22  ;;  %vm1801_vm2 = vcmp.ge.f32.partialorder %v5321_v29, %v5535_v28  ;;  %vm1800_vm5 = vcmp.ge.f32.partialorder %v7272_v4, %v5537_v53 }
 0x525   : > { %v5667_v39 = vsel %vm1770_vm8, %v5630_v27, %v5223_v25  ;;  %v5673_v21 = vsel %vm1770_vm8, %v5633_v56, %v5229_v18  ;;  %vm1864_vm11 = vcmp.ge.f32.partialorder %v5236_v38, %v5630_v27  ;;  %vm1863_vm12 = vcmp.ge.f32.partialorder %v5239_v30, %v5633_v56 }
 0x526   : > { %v1721_v16 = vpop.xlane.xlu1 %1720  ;;  %v1718_v36 = vpop.xlane.xlu0 %1717  ;;  %v5680_v17 = vsel %vm1864_vm11, -inf, %v5236_v38  ;;  %v5683_v25 = vsel %vm1863_vm12, -inf, %v5239_v30  ;;  %v1886_v18 = vmax.f32 %v5641_v49, %v5647_v47  ;;  %v1883_v38 = vmax.f32 %v5653_v6, %v5659_v9 }
 0x527   : > { %1957 = vmax.xlane.f32.xlu1 %v5680_v17  ;;  %1955 = vmax.xlane.f32.xlu0 %v5683_v25  ;;  %v5701_v30 = vsel %vm1793_vm10, -inf, %v5257_v60  ;;  %v1889_v23 = vmax.f32 %v5707_v58, %v5710_v10 }
 0x528   : > { %v1892_v7 = vmax.f32 %v5701_v30, %v5704_v62 }
 0x52a   : > { %v1753_v52 = vpop.xlane.xlu1 %1752  ;;  %v1751_v2 = vpop.xlane.xlu0 %1750 }
 0x52b   : > { %v5718_v60 = vmax.f32 %v1721_v16, %v1753_v52  ;;  %v5720_v40 = vmax.f32 %v1718_v36, %v1751_v2  ;;  %1887 = vmax.xlane.f32.xlu1 %v1886_v18  ;;  %1884 = vmax.xlane.f32.xlu0 %v1883_v38  ;;  %v5744_v16 = vsel %vm1798_vm4, -inf, %v5300_v35  ;;  %v5747_v36 = vsel %vm1795_vm15, -inf, %v5303_v46  ;;  %v7276_v52 = vld [vmem:[#allocation24_spill] sm:$0xff] }
 0x52c   : > { %v1898_v35 = vmax.f32 %v5741_v57, %v5744_v16  ;;  %v5774_v38 = vsel %vm1800_vm5, -inf, %v7272_v4  ;;  %vm1806_vm9 = vcmp.ge.f32.partialorder %v7276_v52, %v5563_v11 }
 0x52d   : > { %v5730_v22 = vsel %vm1770_vm8, %v5718_v60, %v5286_v54  ;;  %v5736_v45 = vsel %vm1770_vm8, %v5720_v40, %v5292_v32  ;;  %v5750_v54 = vsel %vm1796_vm6, -inf, %v5306_v3  ;;  %vm1802_vm8 = vcmp.ge.f32.partialorder %v5324_v43, %v5535_v28  ;;  %v7271_v32 = vld [vmem:[#allocation22_spill] sm:$0xff] }
 0x52e   : > { %vm1799_vm3 = vcmp.ge.f32.partialorder %v7271_v32, %v5537_v53  ;;  %v1895_v46 = vmax.f32 %v5747_v36, %v5750_v54  ;;  %v5765_v3 = vsel %vm1801_vm2, -inf, %v5321_v29  ;;  %v5768_v18 = vsel %vm1802_vm8, -inf, %v5324_v43  ;;  %7274 = vst [vmem:[#allocation22_spill] sm:$0xff] %v5774_v38  ;;  %v7275_v53 = vld [vmem:[#allocation23_spill] sm:$0xff]  ;;  %v7277_v29 = vld [vmem:[#allocation25_spill] sm:$0xff]  ;;  %v7278_v43 = vld [vmem:[#allocation26_spill] sm:$0xff] }
 0x52f   : > { %1893 = vmax.xlane.f32.xlu1 %v1892_v7  ;;  %1890 = vmax.xlane.f32.xlu0 %v1889_v23  ;;  %v5771_v28 = vsel %vm1799_vm3, -inf, %v7271_v32  ;;  %vm1805_vm7 = vcmp.ge.f32.partialorder %v7275_v53, %v5563_v11  ;;  %vm1803_vm10 = vcmp.ge.f32.partialorder %v7277_v29, %v5565_v51  ;;  %vm1804_vm11 = vcmp.ge.f32.partialorder %v7278_v43, %v5565_v51  ;;  %v7283_v51 = vld [vmem:[#allocation27_spill] sm:$0xff] }
 0x530   : > { %7273 = vst [vmem:[#allocation21_spill] sm:$0xff] %v5771_v28  ;;  %v1904_v2 = vmax.f32 %v5765_v3, %v5768_v18  ;;  %v1901_v7 = vmax.f32 %v5771_v28, %v5774_v38  ;;  %v5789_v23 = vsel %vm1805_vm7, -inf, %v7275_v53  ;;  %v5792_v32 = vsel %vm1806_vm9, -inf, %v7276_v52  ;;  %v7286_v53 = vld [vmem:[#allocation30_spill] sm:$0xff] }
 0x531   : > { %7279 = vst [vmem:[#allocation35_spill] sm:$0xff] %v5789_v23  ;;  %7280 = vst [vmem:[#allocation23_spill] sm:$0xff] %v5792_v32  ;;  %v5795_v11 = vsel %vm1803_vm10, -inf, %v7277_v29  ;;  %v5798_v4 = vsel %vm1804_vm11, -inf, %v7278_v43  ;;  %vm1809_vm12 = vcmp.ge.f32.partialorder %v7283_v51, %v5592_v5  ;;  %vm1808_vm1 = vcmp.ge.f32.partialorder %v7286_v53, %v5595_v15 }
 0x532   : > { %7281 = vst [vmem:[#allocation24_spill] sm:$0xff] %v5795_v11  ;;  %7282 = vst [vmem:[#allocation25_spill] sm:$0xff] %v5798_v4  ;;  %v1910_v52 = vmax.f32 %v5789_v23, %v5792_v32  ;;  %v1907_v29 = vmax.f32 %v5795_v11, %v5798_v4  ;;  %v5813_v43 = vsel %vm1809_vm12, -inf, %v7283_v51  ;;  %v7292_v32 = vld [vmem:[#allocation32_spill] sm:$0xff]  ;;  %v7293_v51 = vld [vmem:[#allocation33_spill] sm:$0xff]  ;;  %vm1979_vm10 = vcmp.eq.s32.totalorder %v4079_v8, 5 }
 0x533   : > { %1899 = vmax.xlane.f32.xlu1 %v1898_v35  ;;  %1896 = vmax.xlane.f32.xlu0 %v1895_v46  ;;  %v7284_v35 = vld [vmem:[#allocation28_spill] sm:$0xff]  ;;  %v7285_v46 = vld [vmem:[#allocation29_spill] sm:$0xff]  ;;  %7287 = vst [vmem:[#allocation26_spill] sm:$0xff] %v5813_v43  ;;  %vm1814_vm4 = vcmp.ge.f32.partialorder %v7292_v32, %v5630_v27  ;;  %vm1811_vm15 = vcmp.ge.f32.partialorder %v7293_v51, %v5633_v56  ;;  %v7311_v23 = vld [vmem:[#allocation19_spill] sm:$0xff] }
 0x534   : > { %vm1810_vm13 = vcmp.ge.f32.partialorder %v7284_v35, %v5592_v5  ;;  %vm1807_vm0 = vcmp.ge.f32.partialorder %v7285_v46, %v5595_v15  ;;  %v7291_v15 = vld [vmem:[#allocation31_spill] sm:$0xff] }
 0x535   : > { %v5819_v5 = vsel %vm1807_vm0, -inf, %v7285_v46  ;;  %vm1813_vm14 = vcmp.ge.f32.partialorder %v7291_v15, %v5630_v27  ;;  %v5843_v27 = vsel %vm1811_vm15, -inf, %v7293_v51 }
 0x536   : > { %7289 = vst [vmem:[#allocation28_spill] sm:$0xff] %v5819_v5  ;;  %v5837_v4 = vsel %vm1813_vm14, -inf, %v7291_v15  ;;  %7297 = vst [vmem:[#allocation32_spill] sm:$0xff] %v5843_v27  ;;  %v7301_v15 = vld [vmem:[#allocation15_spill] sm:$0xff] }
 0x537   : > { %1905 = vmax.xlane.f32.xlu1 %v1904_v2  ;;  %1902 = vmax.xlane.f32.xlu0 %v1901_v7  ;;  %v5816_v2 = vsel %vm1810_vm13, -inf, %v7284_v35  ;;  %v5822_v7 = vsel %vm1808_vm1, -inf, %v7286_v53  ;;  %v7294_v35 = vld [vmem:[#allocation34_spill] sm:$0xff]  ;;  %7295 = vst [vmem:[#allocation30_spill] sm:$0xff] %v5837_v4  ;;  %vm1815_vm3 = vcmp.ge.f32.partialorder %v7301_v15, %v5720_v40 }
 0x538   : > { %7288 = vst [vmem:[#allocation27_spill] sm:$0xff] %v5816_v2  ;;  %7290 = vst [vmem:[#allocation29_spill] sm:$0xff] %v5822_v7  ;;  %vm1812_vm6 = vcmp.ge.f32.partialorder %v7294_v35, %v5633_v56  ;;  %v1916_v46 = vmax.f32 %v5813_v43, %v5816_v2  ;;  %v1913_v53 = vmax.f32 %v5819_v5, %v5822_v7  ;;  %v7299_v56 = vld [vmem:[#allocation13_spill] sm:$0xff]  ;;  %v7300_v2 = vld [vmem:[#allocation14_spill] sm:$0xff] }
 0x539   : > { %vm1817_vm2 = vcmp.ge.f32.partialorder %v7299_v56, %v5718_v60  ;;  %vm1818_vm8 = vcmp.ge.f32.partialorder %v7300_v2, %v5718_v60 }
 0x53a   : > { %v5861_v7 = vsel %vm1817_vm2, -inf, %v7299_v56  ;;  %v7307_v56 = vld [vmem:[#allocation17_spill] sm:$0xff] }
 0x53b   : > { %1911 = vmax.xlane.f32.xlu1 %v1910_v52  ;;  %1908 = vmax.xlane.f32.xlu0 %v1907_v29  ;;  %v5840_v52 = vsel %vm1814_vm4, -inf, %v7292_v32  ;;  %v5846_v29 = vsel %vm1812_vm6, -inf, %v7294_v35  ;;  %v7302_v32 = vld [vmem:[#allocation16_spill] sm:$0xff]  ;;  %7303 = vst [vmem:[#allocation34_spill] sm:$0xff] %v5861_v7  ;;  %vm1866_vm7 = vcmp.ge.f32.partialorder %v7307_v56, %v5718_v60 }
 0x53c   : > { %7296 = vst [vmem:[#allocation31_spill] sm:$0xff] %v5840_v52  ;;  %7298 = vst [vmem:[#allocation33_spill] sm:$0xff] %v5846_v29  ;;  %vm1816_vm5 = vcmp.ge.f32.partialorder %v7302_v32, %v5720_v40  ;;  %v1922_v51 = vmax.f32 %v5837_v4, %v5840_v52  ;;  %v1919_v35 = vmax.f32 %v5843_v27, %v5846_v29 }
 0x53d   : > { %v5870_v5 = vsel %vm1816_vm5, -inf, %v7302_v32 }
 0x53e   : > { %7306 = vst [vmem:[#allocation15_spill] sm:$0xff] %v5870_v5 }
 0x53f   : > { %1917 = vmax.xlane.f32.xlu1 %v1916_v46  ;;  %1914 = vmax.xlane.f32.xlu0 %v1913_v53  ;;  %v5864_v46 = vsel %vm1818_vm8, -inf, %v7300_v2  ;;  %v5867_v53 = vsel %vm1815_vm3, -inf, %v7301_v15  ;;  %v7308_v2 = vld [vmem:[#allocation18_spill] sm:$0xff]  ;;  %v5881_v15 = vsel %vm1866_vm7, -inf, %v7307_v56 }
 0x540   : > { %7304 = vst [vmem:[#allocation13_spill] sm:$0xff] %v5864_v46  ;;  %7305 = vst [vmem:[#allocation14_spill] sm:$0xff] %v5867_v53  ;;  %v1928_v52 = vmax.f32 %v5861_v7, %v5864_v46  ;;  %v1925_v29 = vmax.f32 %v5867_v53, %v5870_v5  ;;  %vm1865_vm9 = vcmp.ge.f32.partialorder %v7308_v2, %v5720_v40 }
 0x541   : > { %7309 = vst [vmem:[#allocation16_spill] sm:$0xff] %v5881_v15  ;;  %v5884_v32 = vsel %vm1865_vm9, -inf, %v7308_v2 }
 0x542   : > { %7310 = vst [vmem:[#allocation17_spill] sm:$0xff] %v5884_v32 }
 0x543   : > { %1923 = vmax.xlane.f32.xlu1 %v1922_v51  ;;  %1920 = vmax.xlane.f32.xlu0 %v1919_v35 }
 0x547   : > { %1929 = vmax.xlane.f32.xlu1 %v1928_v52  ;;  %1926 = vmax.xlane.f32.xlu0 %v1925_v29 }
 0x54b   : > { %1961 = vmax.xlane.f32.xlu1 %v5881_v15  ;;  %1959 = vmax.xlane.f32.xlu0 %v5884_v32 }
 0x59c   : > { %v1934_v51 = vpop.xlane.xlu1 %1933  ;;  %v1932_v35 = vpop.xlane.xlu0 %1931 }
 0x5a0   : > { %v1938_v52 = vpop.xlane.xlu1 %1937  ;;  %v1936_v29 = vpop.xlane.xlu0 %1935 }
 0x5a4   : > { %v1942_v5 = vpop.xlane.xlu1 %1941  ;;  %v1940_v53 = vpop.xlane.xlu0 %1939 }
 0x5a8   : > { %v1946_v60 = vpop.xlane.xlu1 %1945  ;;  %v1944_v46 = vpop.xlane.xlu0 %1943 }
 0x5ac   : > { %v1950_v7 = vpop.xlane.xlu1 %1949  ;;  %v1948_v40 = vpop.xlane.xlu0 %1947 }
 0x5b0   : > { %v5888_v27 = vpop.xlane.xlu1 %1953  ;;  %v5890_v56 = vpop.xlane.xlu0 %1951 }
 0x5b4   : > { %v5892_v2 = vpop.xlane.xlu1 %1957  ;;  %v5894_v4 = vpop.xlane.xlu0 %1955 }
 0x5b8   : > { %v1888_v32 = vpop.xlane.xlu1 %1887  ;;  %v1885_v15 = vpop.xlane.xlu0 %1884 }
 0x5b9   : > { %v5897_v43 = vmax.f32 %v1888_v32, %v1934_v51  ;;  %v5899_v11 = vmax.f32 %v1885_v15, %v1932_v35 }
 0x5bb   : > { %v5905_v38 = vsel %vm1979_vm10, %v5897_v43, %v7311_v23  ;;  %v5911_v28 = vsel %vm1979_vm10, %v5899_v11, %v5467_v19  ;;  %vm2061_vm11 = vcmp.ge.f32.partialorder %v5474_v26, %v5897_v43  ;;  %vm2060_vm12 = vcmp.ge.f32.partialorder %v5477_v48, %v5899_v11 }
 0x5bc   : > { %7312 = vst [vmem:[#allocation18_spill] sm:$0xff] %v5905_v38  ;;  %7313 = vst [vmem:[#allocation19_spill] sm:$0xff] %v5911_v28  ;;  %v1894_v15 = vpop.xlane.xlu1 %1893  ;;  %v1891_v32 = vpop.xlane.xlu0 %1890  ;;  %v5918_v51 = vsel %vm2061_vm11, -inf, %v5474_v26  ;;  %v5921_v23 = vsel %vm2060_vm12, -inf, %v5477_v48  ;;  %v7314_v28 = vld [vmem:[#allocation20_spill] sm:$0xff]  ;;  %vm1998_vm8 = vcmp.ge.f32.partialorder %v5641_v49, %v5897_v43  ;;  %vm1999_vm3 = vcmp.ge.f32.partialorder %v5647_v47, %v5897_v43 }
 0x5bd   : > { %v5923_v35 = vmax.f32 %v1894_v15, %v1938_v52  ;;  %v5925_v38 = vmax.f32 %v1891_v32, %v1936_v29  ;;  %2142 = vmax.xlane.f32.xlu1 %v5918_v51  ;;  %2140 = vmax.xlane.f32.xlu0 %v5921_v23  ;;  %vm1996_vm5 = vcmp.ge.f32.partialorder %v5653_v6, %v5899_v11 }
 0x5be   : > { %vm1997_vm7 = vcmp.ge.f32.partialorder %v5659_v9, %v5899_v11 }
 0x5bf   : > { %v5933_v19 = vsel %vm1979_vm10, %v5923_v35, %v5489_v12  ;;  %v5939_v26 = vsel %vm1979_vm10, %v5925_v38, %v7314_v28  ;;  %vm2063_vm13 = vcmp.ge.f32.partialorder %v5502_v13, %v5923_v35  ;;  %vm2062_vm0 = vcmp.ge.f32.partialorder %v5505_v37, %v5925_v38 }
 0x5c0   : > { %v1900_v48 = vpop.xlane.xlu1 %1899  ;;  %v1897_v52 = vpop.xlane.xlu0 %1896  ;;  %v5946_v29 = vsel %vm2063_vm13, -inf, %v5502_v13  ;;  %v5949_v12 = vsel %vm2062_vm0, -inf, %v5505_v37  ;;  %vm2002_vm12 = vcmp.ge.f32.partialorder %v5701_v30, %v5923_v35 }
 0x5c1   : > { %v5951_v15 = vmax.f32 %v1900_v48, %v1942_v5  ;;  %v5953_v32 = vmax.f32 %v1897_v52, %v1940_v53  ;;  %2146 = vmax.xlane.f32.xlu1 %v5946_v29  ;;  %2144 = vmax.xlane.f32.xlu0 %v5949_v12 }
 0x5c3   : > { %v5961_v28 = vsel %vm1979_vm10, %v5951_v15, %v5517_v14  ;;  %v5967_v13 = vsel %vm1979_vm10, %v5953_v32, %v5523_v44  ;;  %vm2065_vm1 = vcmp.ge.f32.partialorder %v5530_v1, %v5951_v15  ;;  %vm2064_vm14 = vcmp.ge.f32.partialorder %v5533_v34, %v5953_v32 }
 0x5c4   : > { %v1906_v37 = vpop.xlane.xlu1 %1905  ;;  %v1903_v5 = vpop.xlane.xlu0 %1902  ;;  %v5974_v53 = vsel %vm2065_vm1, -inf, %v5530_v1  ;;  %v5977_v14 = vsel %vm2064_vm14, -inf, %v5533_v34  ;;  %vm2003_vm1 = vcmp.ge.f32.partialorder %v5704_v62, %v5923_v35  ;;  %vm2000_vm14 = vcmp.ge.f32.partialorder %v5707_v58, %v5925_v38 }
 0x5c5   : > { %v5979_v48 = vmax.f32 %v1906_v37, %v1946_v60  ;;  %v5981_v52 = vmax.f32 %v1903_v5, %v1944_v46  ;;  %2150 = vmax.xlane.f32.xlu1 %v5974_v53  ;;  %2148 = vmax.xlane.f32.xlu0 %v5977_v14  ;;  %v6148_v43 = vsel %vm2003_vm1, -inf, %v5704_v62 }
 0x5c7   : > { %v5989_v44 = vsel %vm1979_vm10, %v5979_v48, %v5545_v33  ;;  %v5995_v1 = vsel %vm1979_vm10, %v5981_v52, %v5551_v20  ;;  %vm2067_vm4 = vcmp.ge.f32.partialorder %v5558_v59, %v5979_v48  ;;  %vm2066_vm15 = vcmp.ge.f32.partialorder %v5561_v41, %v5981_v52 }
 0x5c8   : > { %v1912_v34 = vpop.xlane.xlu1 %1911  ;;  %v1909_v46 = vpop.xlane.xlu0 %1908  ;;  %v6002_v60 = vsel %vm2067_vm4, -inf, %v5558_v59  ;;  %v6005_v33 = vsel %vm2066_vm15, -inf, %v5561_v41  ;;  %vm2001_vm4 = vcmp.ge.f32.partialorder %v5710_v10, %v5925_v38  ;;  %vm2006_vm15 = vcmp.ge.f32.partialorder %v5741_v57, %v5951_v15 }
 0x5c9   : > { %v6007_v37 = vmax.f32 %v1912_v34, %v1950_v7  ;;  %v6009_v5 = vmax.f32 %v1909_v46, %v1948_v40  ;;  %2154 = vmax.xlane.f32.xlu1 %v6002_v60  ;;  %2152 = vmax.xlane.f32.xlu0 %v6005_v33 }
 0x5cb   : > { %v6017_v20 = vsel %vm1979_vm10, %v6007_v37, %v5573_v55  ;;  %v6023_v59 = vsel %vm1979_vm10, %v6009_v5, %v5579_v61  ;;  %vm2069_vm6 = vcmp.ge.f32.partialorder %v5586_v42, %v6007_v37  ;;  %vm2068_vm2 = vcmp.ge.f32.partialorder %v5589_v31, %v6009_v5 }
 0x5cc   : > { %v1918_v41 = vpop.xlane.xlu1 %1917  ;;  %v1915_v7 = vpop.xlane.xlu0 %1914  ;;  %v6030_v40 = vsel %vm2069_vm6, -inf, %v5586_v42  ;;  %v6033_v55 = vsel %vm2068_vm2, -inf, %v5589_v31  ;;  %vm2007_vm6 = vcmp.ge.f32.partialorder %v5744_v16, %v5951_v15  ;;  %vm2004_vm2 = vcmp.ge.f32.partialorder %v5747_v36, %v5953_v32 }
 0x5cd   : > { %v6036_v34 = vmax.f32 %v1918_v41, %v5888_v27  ;;  %v6039_v61 = vmax.f32 %v1915_v7, %v5890_v56  ;;  %2158 = vmax.xlane.f32.xlu1 %v6030_v40  ;;  %2156 = vmax.xlane.f32.xlu0 %v6033_v55  ;;  %v6085_v7 = vsel %vm1998_vm8, -inf, %v5641_v49  ;;  %vm2005_vm8 = vcmp.ge.f32.partialorder %v5750_v54, %v5953_v32 }
 0x5ce   : > { %v6185_v32 = vsel %vm2006_vm15, -inf, %v5741_v57  ;;  %v7319_v57 = vld [vmem:[#allocation22_spill] sm:$0xff] }
 0x5cf   : > { %v6055_v42 = vsel %vm1979_vm10, %v6036_v34, %v5611_v24  ;;  %v6061_v31 = vsel %vm1979_vm10, %v6039_v61, %v5617_v50  ;;  %vm2071_vm9 = vcmp.ge.f32.partialorder %v5624_v0, %v6036_v34  ;;  %vm2070_vm11 = vcmp.ge.f32.partialorder %v5627_v63, %v6039_v61 }
 0x5d0   : > { %v1924_v27 = vpop.xlane.xlu1 %1923  ;;  %v1921_v56 = vpop.xlane.xlu0 %1920  ;;  %v6068_v46 = vsel %vm2071_vm9, -inf, %v5624_v0  ;;  %v6071_v24 = vsel %vm2070_vm11, -inf, %v5627_v63  ;;  %v6091_v0 = vsel %vm1999_vm3, -inf, %v5647_v47  ;;  %v6097_v63 = vsel %vm1996_vm5, -inf, %v5653_v6 }
 0x5d1   : > { %v6074_v41 = vmax.f32 %v1924_v27, %v5892_v2  ;;  %v6077_v50 = vmax.f32 %v1921_v56, %v5894_v4  ;;  %2162 = vmax.xlane.f32.xlu1 %v6068_v46  ;;  %2160 = vmax.xlane.f32.xlu0 %v6071_v24  ;;  %v6103_v4 = vsel %vm1997_vm7, -inf, %v5659_v9  ;;  %v6151_v2 = vsel %vm2000_vm14, -inf, %v5707_v58 }
 0x5d2   : > { %v6154_v56 = vsel %vm2001_vm4, -inf, %v5710_v10  ;;  %vm2010_vm3 = vcmp.ge.f32.partialorder %v5765_v3, %v5979_v48  ;;  %vm2009_vm7 = vcmp.ge.f32.partialorder %v7319_v57, %v5981_v52 }
 0x5d3   : > { %v6111_v49 = vsel %vm1979_vm10, %v6074_v41, %v5667_v39  ;;  %v6117_v47 = vsel %vm1979_vm10, %v6077_v50, %v5673_v21  ;;  %vm2073_vm13 = vcmp.ge.f32.partialorder %v5680_v17, %v6074_v41  ;;  %vm2072_vm0 = vcmp.ge.f32.partialorder %v5683_v25, %v6077_v50 }
 0x5d4   : > { %7315 = vst [vmem:[#allocation20_spill] sm:$0xff] %v6117_v47  ;;  %v1930_v6 = vpop.xlane.xlu1 %1929  ;;  %v1927_v9 = vpop.xlane.xlu0 %1926  ;;  %v6124_v11 = vsel %vm2073_vm13, -inf, %v5680_v17  ;;  %v6127_v39 = vsel %vm2072_vm0, -inf, %v5683_v25  ;;  %v2095_v21 = vmax.f32 %v6085_v7, %v6091_v0  ;;  %v2092_v17 = vmax.f32 %v6097_v63, %v6103_v4 }
 0x5d5   : > { %2166 = vmax.xlane.f32.xlu1 %v6124_v11  ;;  %2164 = vmax.xlane.f32.xlu0 %v6127_v39  ;;  %v6145_v25 = vsel %vm2002_vm12, -inf, %v5701_v30  ;;  %v2098_v15 = vmax.f32 %v6151_v2, %v6154_v56 }
 0x5d6   : > { %v2101_v58 = vmax.f32 %v6145_v25, %v6148_v43 }
 0x5d8   : > { %v1962_v27 = vpop.xlane.xlu1 %1961  ;;  %v1960_v38 = vpop.xlane.xlu0 %1959 }
 0x5d9   : > { %v6162_v30 = vmax.f32 %v1930_v6, %v1962_v27  ;;  %v6164_v62 = vmax.f32 %v1927_v9, %v1960_v38  ;;  %2096 = vmax.xlane.f32.xlu1 %v2095_v21  ;;  %2093 = vmax.xlane.f32.xlu0 %v2092_v17  ;;  %v6188_v6 = vsel %vm2007_vm6, -inf, %v5744_v16  ;;  %v6191_v9 = vsel %vm2004_vm2, -inf, %v5747_v36  ;;  %v7323_v27 = vld [vmem:[#allocation23_spill] sm:$0xff] }
 0x5da   : > { %v2107_v16 = vmax.f32 %v6185_v32, %v6188_v6  ;;  %v6218_v17 = vsel %vm2009_vm7, -inf, %v7319_v57  ;;  %vm2015_vm11 = vcmp.ge.f32.partialorder %v7323_v27, %v6007_v37 }
 0x5db   : > { %v6174_v10 = vsel %vm1979_vm10, %v6162_v30, %v5730_v22  ;;  %v6180_v35 = vsel %vm1979_vm10, %v6164_v62, %v5736_v45  ;;  %v6194_v22 = vsel %vm2005_vm8, -inf, %v5750_v54  ;;  %vm2011_vm10 = vcmp.ge.f32.partialorder %v5768_v18, %v5979_v48  ;;  %v7318_v45 = vld [vmem:[#allocation21_spill] sm:$0xff]  ;;  %7321 = vst [vmem:[#allocation22_spill] sm:$0xff] %v6218_v17 }
 0x5dc   : > { %7316 = vst [vmem:[#allocation36_spill] sm:$0xff] %v6174_v10  ;;  %7317 = vst [vmem:[#allocation37_spill] sm:$0xff] %v6180_v35  ;;  %vm2008_vm5 = vcmp.ge.f32.partialorder %v7318_v45, %v5981_v52  ;;  %v2104_v36 = vmax.f32 %v6191_v9, %v6194_v22  ;;  %v6209_v54 = vsel %vm2010_vm3, -inf, %v5765_v3  ;;  %v6212_v21 = vsel %vm2011_vm10, -inf, %v5768_v18  ;;  %v7322_v52 = vld [vmem:[#allocation35_spill] sm:$0xff]  ;;  %v7324_v3 = vld [vmem:[#allocation24_spill] sm:$0xff] }
 0x5dd   : > { %2102 = vmax.xlane.f32.xlu1 %v2101_v58  ;;  %2099 = vmax.xlane.f32.xlu0 %v2098_v15  ;;  %v6215_v48 = vsel %vm2008_vm5, -inf, %v7318_v45  ;;  %vm2014_vm9 = vcmp.ge.f32.partialorder %v7322_v52, %v6007_v37  ;;  %vm2012_vm12 = vcmp.ge.f32.partialorder %v7324_v3, %v6009_v5  ;;  %v7325_v18 = vld [vmem:[#allocation25_spill] sm:$0xff]  ;;  %v2113_v38 = vmax.f32 %v6209_v54, %v6212_v21 }
 0x5de   : > { %7320 = vst [vmem:[#allocation21_spill] sm:$0xff] %v6215_v48  ;;  %vm2013_vm13 = vcmp.ge.f32.partialorder %v7325_v18, %v6009_v5  ;;  %v2110_v58 = vmax.f32 %v6215_v48, %v6218_v17  ;;  %v6233_v15 = vsel %vm2014_vm9, -inf, %v7322_v52  ;;  %v6236_v45 = vsel %vm2015_vm11, -inf, %v7323_v27  ;;  %v7330_v5 = vld [vmem:[#allocation26_spill] sm:$0xff]  ;;  %v7333_v52 = vld [vmem:[#allocation29_spill] sm:$0xff] }
 0x5df   : > { %7326 = vst [vmem:[#allocation35_spill] sm:$0xff] %v6233_v15  ;;  %7327 = vst [vmem:[#allocation23_spill] sm:$0xff] %v6236_v45  ;;  %v6239_v37 = vsel %vm2012_vm12, -inf, %v7324_v3  ;;  %v6242_v57 = vsel %vm2013_vm13, -inf, %v7325_v18  ;;  %vm2018_vm0 = vcmp.ge.f32.partialorder %v7330_v5, %v6036_v34  ;;  %vm2017_vm4 = vcmp.ge.f32.partialorder %v7333_v52, %v6039_v61 }
 0x5e0   : > { %7328 = vst [vmem:[#allocation24_spill] sm:$0xff] %v6239_v37  ;;  %7329 = vst [vmem:[#allocation25_spill] sm:$0xff] %v6242_v57  ;;  %v2119_v27 = vmax.f32 %v6233_v15, %v6236_v45  ;;  %v2116_v3 = vmax.f32 %v6239_v37, %v6242_v57  ;;  %v6257_v18 = vsel %vm2018_vm0, -inf, %v7330_v5  ;;  %v7339_v45 = vld [vmem:[#allocation31_spill] sm:$0xff]  ;;  %v7340_v5 = vld [vmem:[#allocation32_spill] sm:$0xff]  ;;  %vm2188_vm0 = vcmp.eq.s32.totalorder %v4079_v8, 6 }
 0x5e1   : > { %2108 = vmax.xlane.f32.xlu1 %v2107_v16  ;;  %2105 = vmax.xlane.f32.xlu0 %v2104_v36  ;;  %v7331_v16 = vld [vmem:[#allocation27_spill] sm:$0xff]  ;;  %v7332_v36 = vld [vmem:[#allocation28_spill] sm:$0xff]  ;;  %7334 = vst [vmem:[#allocation26_spill] sm:$0xff] %v6257_v18  ;;  %vm2023_vm6 = vcmp.ge.f32.partialorder %v7339_v45, %v6074_v41  ;;  %vm2020_vm2 = vcmp.ge.f32.partialorder %v7340_v5, %v6077_v50 }
 0x5e2   : > { %vm2019_vm1 = vcmp.ge.f32.partialorder %v7331_v16, %v6036_v34  ;;  %vm2016_vm14 = vcmp.ge.f32.partialorder %v7332_v36, %v6039_v61  ;;  %v7338_v61 = vld [vmem:[#allocation30_spill] sm:$0xff] }
 0x5e3   : > { %v6263_v34 = vsel %vm2016_vm14, -inf, %v7332_v36  ;;  %vm2022_vm15 = vcmp.ge.f32.partialorder %v7338_v61, %v6074_v41  ;;  %v6287_v41 = vsel %vm2020_vm2, -inf, %v7340_v5 }
 0x5e4   : > { %7336 = vst [vmem:[#allocation28_spill] sm:$0xff] %v6263_v34  ;;  %v6281_v57 = vsel %vm2022_vm15, -inf, %v7338_v61  ;;  %7344 = vst [vmem:[#allocation32_spill] sm:$0xff] %v6287_v41  ;;  %v7348_v61 = vld [vmem:[#allocation14_spill] sm:$0xff] }
 0x5e5   : > { %2114 = vmax.xlane.f32.xlu1 %v2113_v38  ;;  %2111 = vmax.xlane.f32.xlu0 %v2110_v58  ;;  %v6260_v38 = vsel %vm2019_vm1, -inf, %v7331_v16  ;;  %v6266_v58 = vsel %vm2017_vm4, -inf, %v7333_v52  ;;  %v7341_v16 = vld [vmem:[#allocation33_spill] sm:$0xff]  ;;  %7342 = vst [vmem:[#allocation30_spill] sm:$0xff] %v6281_v57  ;;  %vm2024_vm5 = vcmp.ge.f32.partialorder %v7348_v61, %v6164_v62 }
 0x5e6   : > { %7335 = vst [vmem:[#allocation27_spill] sm:$0xff] %v6260_v38  ;;  %7337 = vst [vmem:[#allocation29_spill] sm:$0xff] %v6266_v58  ;;  %vm2021_vm8 = vcmp.ge.f32.partialorder %v7341_v16, %v6077_v50  ;;  %v2125_v36 = vmax.f32 %v6257_v18, %v6260_v38  ;;  %v2122_v52 = vmax.f32 %v6263_v34, %v6266_v58  ;;  %v7346_v50 = vld [vmem:[#allocation34_spill] sm:$0xff]  ;;  %v7347_v38 = vld [vmem:[#allocation13_spill] sm:$0xff] }
 0x5e7   : > { %vm2026_vm3 = vcmp.ge.f32.partialorder %v7346_v50, %v6162_v30  ;;  %vm2027_vm10 = vcmp.ge.f32.partialorder %v7347_v38, %v6162_v30 }
 0x5e8   : > { %v6305_v58 = vsel %vm2026_vm3, -inf, %v7346_v50  ;;  %v7354_v50 = vld [vmem:[#allocation16_spill] sm:$0xff] }
 0x5e9   : > { %2120 = vmax.xlane.f32.xlu1 %v2119_v27  ;;  %2117 = vmax.xlane.f32.xlu0 %v2116_v3  ;;  %v6284_v27 = vsel %vm2023_vm6, -inf, %v7339_v45  ;;  %v6290_v3 = vsel %vm2021_vm8, -inf, %v7341_v16  ;;  %v7349_v45 = vld [vmem:[#allocation15_spill] sm:$0xff]  ;;  %7350 = vst [vmem:[#allocation34_spill] sm:$0xff] %v6305_v58  ;;  %vm2075_vm9 = vcmp.ge.f32.partialorder %v7354_v50, %v6162_v30 }
 0x5ea   : > { %7343 = vst [vmem:[#allocation31_spill] sm:$0xff] %v6284_v27  ;;  %7345 = vst [vmem:[#allocation33_spill] sm:$0xff] %v6290_v3  ;;  %vm2025_vm7 = vcmp.ge.f32.partialorder %v7349_v45, %v6164_v62  ;;  %v2131_v5 = vmax.f32 %v6281_v57, %v6284_v27  ;;  %v2128_v16 = vmax.f32 %v6287_v41, %v6290_v3 }
 0x5eb   : > { %v6314_v34 = vsel %vm2025_vm7, -inf, %v7349_v45 }
 0x5ec   : > { %7353 = vst [vmem:[#allocation15_spill] sm:$0xff] %v6314_v34 }
 0x5ed   : > { %2126 = vmax.xlane.f32.xlu1 %v2125_v36  ;;  %2123 = vmax.xlane.f32.xlu0 %v2122_v52  ;;  %v6308_v36 = vsel %vm2027_vm10, -inf, %v7347_v38  ;;  %v6311_v52 = vsel %vm2024_vm5, -inf, %v7348_v61  ;;  %v7355_v38 = vld [vmem:[#allocation17_spill] sm:$0xff]  ;;  %v6325_v61 = vsel %vm2075_vm9, -inf, %v7354_v50 }
 0x5ee   : > { %7351 = vst [vmem:[#allocation13_spill] sm:$0xff] %v6308_v36  ;;  %7352 = vst [vmem:[#allocation14_spill] sm:$0xff] %v6311_v52  ;;  %v2137_v27 = vmax.f32 %v6305_v58, %v6308_v36  ;;  %v2134_v3 = vmax.f32 %v6311_v52, %v6314_v34  ;;  %vm2074_vm11 = vcmp.ge.f32.partialorder %v7355_v38, %v6164_v62 }
 0x5ef   : > { %7356 = vst [vmem:[#allocation16_spill] sm:$0xff] %v6325_v61  ;;  %v6328_v45 = vsel %vm2074_vm11, -inf, %v7355_v38 }
 0x5f0   : > { %7357 = vst [vmem:[#allocation17_spill] sm:$0xff] %v6328_v45 }
 0x5f1   : > { %2132 = vmax.xlane.f32.xlu1 %v2131_v5  ;;  %2129 = vmax.xlane.f32.xlu0 %v2128_v16 }
 0x5f5   : > { %2138 = vmax.xlane.f32.xlu1 %v2137_v27  ;;  %2135 = vmax.xlane.f32.xlu0 %v2134_v3 }
 0x5f9   : > { %2170 = vmax.xlane.f32.xlu1 %v6325_v61  ;;  %2168 = vmax.xlane.f32.xlu0 %v6328_v45 }
 0x64a   : > { %v2143_v5 = vpop.xlane.xlu1 %2142  ;;  %v2141_v16 = vpop.xlane.xlu0 %2140 }
 0x64e   : > { %v2147_v27 = vpop.xlane.xlu1 %2146  ;;  %v2145_v3 = vpop.xlane.xlu0 %2144 }
 0x652   : > { %v2151_v34 = vpop.xlane.xlu1 %2150  ;;  %v2149_v52 = vpop.xlane.xlu0 %2148 }
 0x656   : > { %v2155_v30 = vpop.xlane.xlu1 %2154  ;;  %v2153_v36 = vpop.xlane.xlu0 %2152 }
 0x65a   : > { %v2159_v58 = vpop.xlane.xlu1 %2158  ;;  %v2157_v62 = vpop.xlane.xlu0 %2156 }
 0x65e   : > { %v2163_v41 = vpop.xlane.xlu1 %2162  ;;  %v2161_v50 = vpop.xlane.xlu0 %2160 }
 0x662   : > { %v6332_v57 = vpop.xlane.xlu1 %2166  ;;  %v6334_v38 = vpop.xlane.xlu0 %2164 }
 0x666   : > { %v2097_v18 = vpop.xlane.xlu1 %2096  ;;  %v2094_v61 = vpop.xlane.xlu0 %2093 }
 0x667   : > { %v6336_v37 = vmax.f32 %v2097_v18, %v2143_v5  ;;  %v6338_v45 = vmax.f32 %v2094_v61, %v2141_v16  ;;  %v7358_v61 = vld [vmem:[#allocation18_spill] sm:$0xff]  ;;  %v7359_v16 = vld [vmem:[#allocation19_spill] sm:$0xff] }
 0x669   : > { %vm2270_vm12 = vcmp.ge.f32.partialorder %v5918_v51, %v6336_v37  ;;  %vm2269_vm13 = vcmp.ge.f32.partialorder %v5921_v23, %v6338_v45  ;;  %v6355_v5 = vsel %vm2188_vm0, %v6336_v37, %v7358_v61  ;;  %v6361_v48 = vsel %vm2188_vm0, %v6338_v45, %v7359_v16 }
 0x66a   : > { %v2103_v15 = vpop.xlane.xlu1 %2102  ;;  %v2100_v35 = vpop.xlane.xlu0 %2099  ;;  %v2286_v10 = vsel %vm2270_vm12, -inf, %v5918_v51  ;;  %v2285_v47 = vsel %vm2269_vm13, -inf, %v5921_v23  ;;  %vm2207_vm10 = vcmp.ge.f32.partialorder %v6085_v7, %v6336_v37  ;;  %vm2208_vm5 = vcmp.ge.f32.partialorder %v6091_v0, %v6336_v37 }
 0x66b   : > { %v6347_v17 = vmax.f32 %v2103_v15, %v2147_v27  ;;  %v6349_v18 = vmax.f32 %v2100_v35, %v2145_v3  ;;  %2351 = vmax.xlane.f32.xlu1 %v2286_v10  ;;  %2349 = vmax.xlane.f32.xlu0 %v2285_v47  ;;  %vm2205_vm11 = vcmp.ge.f32.partialorder %v6097_v63, %v6338_v45 }
 0x66c   : > { %vm2206_vm12 = vcmp.ge.f32.partialorder %v6103_v4, %v6338_v45  ;;  %v2237_v45 = vsel %vm2205_vm11, -inf, %v6097_v63 }
 0x66d   : > { %vm2272_vm1 = vcmp.ge.f32.partialorder %v5946_v29, %v6347_v17  ;;  %vm2271_vm14 = vcmp.ge.f32.partialorder %v5949_v12, %v6349_v18  ;;  %v6377_v27 = vsel %vm2188_vm0, %v6347_v17, %v5933_v19  ;;  %v6393_v19 = vsel %vm2188_vm0, %v6349_v18, %v5939_v26 }
 0x66e   : > { %v2109_v51 = vpop.xlane.xlu1 %2108  ;;  %v2106_v23 = vpop.xlane.xlu0 %2105  ;;  %v2288_v47 = vsel %vm2272_vm1, -inf, %v5946_v29  ;;  %v2287_v10 = vsel %vm2271_vm14, -inf, %v5949_v12  ;;  %vm2211_vm13 = vcmp.ge.f32.partialorder %v6145_v25, %v6347_v17 }
 0x66f   : > { %v6369_v35 = vmax.f32 %v2109_v51, %v2151_v34  ;;  %v6371_v15 = vmax.f32 %v2106_v23, %v2149_v52  ;;  %2355 = vmax.xlane.f32.xlu1 %v2288_v47  ;;  %2353 = vmax.xlane.f32.xlu0 %v2287_v10 }
 0x671   : > { %vm2274_vm4 = vcmp.ge.f32.partialorder %v5974_v53, %v6369_v35  ;;  %vm2273_vm15 = vcmp.ge.f32.partialorder %v5977_v14, %v6371_v15 }
 0x672   : > { %v2115_v29 = vpop.xlane.xlu1 %2114  ;;  %v2112_v12 = vpop.xlane.xlu0 %2111  ;;  %v2290_v34 = vsel %vm2274_vm4, -inf, %v5974_v53  ;;  %v2289_v52 = vsel %vm2273_vm15, -inf, %v5977_v14  ;;  %vm2212_vm4 = vcmp.ge.f32.partialorder %v6148_v43, %v6347_v17  ;;  %vm2209_vm15 = vcmp.ge.f32.partialorder %v6151_v2, %v6349_v18 }
 0x673   : > { %v6385_v3 = vmax.f32 %v2115_v29, %v2155_v30  ;;  %v6387_v61 = vmax.f32 %v2112_v12, %v2153_v36  ;;  %2359 = vmax.xlane.f32.xlu1 %v2290_v34  ;;  %2357 = vmax.xlane.f32.xlu0 %v2289_v52  ;;  %v2240_v29 = vsel %vm2208_vm5, -inf, %v6091_v0  ;;  %v2238_v12 = vsel %vm2206_vm12, -inf, %v6103_v4 }
 0x674   : > { %v2301_v4 = vmax.f32 %v2237_v45, %v2238_v12  ;;  %v2244_v17 = vsel %vm2212_vm4, -inf, %v6148_v43  ;;  %v6473_v43 = vsel %vm2188_vm0, %v6371_v15, %v5967_v13 }
 0x675   : > { %vm2276_vm6 = vcmp.ge.f32.partialorder %v6002_v60, %v6385_v3  ;;  %vm2275_vm2 = vcmp.ge.f32.partialorder %v6005_v33, %v6387_v61  ;;  %vm2219_vm5 = vcmp.ge.f32.partialorder %v6209_v54, %v6385_v3 }
 0x676   : > { %v2121_v53 = vpop.xlane.xlu1 %2120  ;;  %v2118_v14 = vpop.xlane.xlu0 %2117  ;;  %v2292_v30 = vsel %vm2276_vm6, -inf, %v6002_v60  ;;  %v2291_v36 = vsel %vm2275_vm2, -inf, %v6005_v33  ;;  %vm2210_vm6 = vcmp.ge.f32.partialorder %v6154_v56, %v6349_v18  ;;  %vm2215_vm2 = vcmp.ge.f32.partialorder %v6185_v32, %v6369_v35 }
 0x677   : > { %v6401_v16 = vmax.f32 %v2121_v53, %v2159_v58  ;;  %v6403_v51 = vmax.f32 %v2118_v14, %v2157_v62  ;;  %2363 = vmax.xlane.f32.xlu1 %v2292_v30  ;;  %2361 = vmax.xlane.f32.xlu0 %v2291_v36  ;;  %v2242_v34 = vsel %vm2210_vm6, -inf, %v6154_v56  ;;  %v2251_v36 = vsel %vm2219_vm5, -inf, %v6209_v54  ;;  %v7367_v54 = vld [vmem:[#allocation24_spill] sm:$0xff] }
 0x679   : > { %vm2278_vm8 = vcmp.ge.f32.partialorder %v6030_v40, %v6401_v16  ;;  %vm2277_vm3 = vcmp.ge.f32.partialorder %v6033_v55, %v6403_v51  ;;  %v6495_v13 = vsel %vm2188_vm0, %v6401_v16, %v6017_v20 }
 0x67a   : > { %v2127_v26 = vpop.xlane.xlu1 %2126  ;;  %v2124_v23 = vpop.xlane.xlu0 %2123  ;;  %v2294_v47 = vsel %vm2278_vm8, -inf, %v6030_v40  ;;  %v2293_v60 = vsel %vm2277_vm3, -inf, %v6033_v55  ;;  %vm2216_vm8 = vcmp.ge.f32.partialorder %v6188_v6, %v6369_v35  ;;  %vm2213_vm3 = vcmp.ge.f32.partialorder %v6191_v9, %v6371_v15 }
 0x67b   : > { %v6411_v10 = vmax.f32 %v2127_v26, %v2163_v41  ;;  %v6413_v33 = vmax.f32 %v2124_v23, %v2161_v50  ;;  %2367 = vmax.xlane.f32.xlu1 %v2294_v47  ;;  %2365 = vmax.xlane.f32.xlu0 %v2293_v60  ;;  %v2239_v50 = vsel %vm2207_vm10, -inf, %v6085_v7  ;;  %vm2214_vm10 = vcmp.ge.f32.partialorder %v6194_v22, %v6371_v15  ;;  %v7364_v26 = vld [vmem:[#allocation37_spill] sm:$0xff] }
 0x67c   : > { %v2304_v63 = vmax.f32 %v2239_v50, %v2240_v29  ;;  %v2246_v14 = vsel %vm2214_vm10, -inf, %v6194_v22  ;;  %v7363_v22 = vld [vmem:[#allocation36_spill] sm:$0xff] }
 0x67d   : > { %vm2280_vm7 = vcmp.ge.f32.partialorder %v6068_v46, %v6411_v10  ;;  %vm2279_vm9 = vcmp.ge.f32.partialorder %v6071_v24, %v6413_v33  ;;  %v6513_v18 = vsel %vm2188_vm0, %v6413_v33, %v6061_v31  ;;  %v2248_v31 = vsel %vm2216_vm8, -inf, %v6188_v6  ;;  %v7361_v6 = vld [vmem:[#allocation22_spill] sm:$0xff] }
 0x67e   : > { %v2133_v40 = vpop.xlane.xlu1 %2132  ;;  %v2130_v55 = vpop.xlane.xlu0 %2129  ;;  %v2296_v58 = vsel %vm2280_vm7, -inf, %v6068_v46  ;;  %v2295_v41 = vsel %vm2279_vm9, -inf, %v6071_v24  ;;  %vm2220_vm7 = vcmp.ge.f32.partialorder %v6212_v21, %v6385_v3  ;;  %vm2218_vm11 = vcmp.ge.f32.partialorder %v7361_v6, %v6387_v61 }
 0x67f   : > { %v6430_v37 = vmax.f32 %v2133_v40, %v6332_v57  ;;  %v6433_v62 = vmax.f32 %v2130_v55, %v6334_v38  ;;  %2371 = vmax.xlane.f32.xlu1 %v2296_v58  ;;  %2369 = vmax.xlane.f32.xlu0 %v2295_v41  ;;  %v2243_v57 = vsel %vm2211_vm13, -inf, %v6145_v25  ;;  %v2241_v38 = vsel %vm2209_vm15, -inf, %v6151_v2  ;;  %v7365_v40 = vld [vmem:[#allocation35_spill] sm:$0xff]  ;;  %v7368_v58 = vld [vmem:[#allocation25_spill] sm:$0xff] }
 0x680   : > { %v6479_v2 = vsel %vm2188_vm0, %v6385_v3, %v5989_v44  ;;  %v6501_v44 = vsel %vm2188_vm0, %v6403_v51, %v6023_v59  ;;  %v2310_v52 = vmax.f32 %v2243_v57, %v2244_v17  ;;  %v2307_v53 = vmax.f32 %v2241_v38, %v2242_v34  ;;  %v7366_v55 = vld [vmem:[#allocation23_spill] sm:$0xff]  ;;  %v7373_v38 = vld [vmem:[#allocation30_spill] sm:$0xff]  ;;  %v7376_v34 = vld [vmem:[#allocation33_spill] sm:$0xff] }
 0x681   : > { %vm2282_vm1 = vcmp.ge.f32.partialorder %v6124_v11, %v6430_v37  ;;  %vm2281_vm14 = vcmp.ge.f32.partialorder %v6127_v39, %v6433_v62  ;;  %v6519_v20 = vsel %vm2188_vm0, %v6430_v37, %v6111_v49  ;;  %v2245_v49 = vsel %vm2213_vm3, -inf, %v6191_v9 }
 0x682   : > { %v2139_v46 = vpop.xlane.xlu1 %2138  ;;  %v2136_v24 = vpop.xlane.xlu0 %2135  ;;  %v2298_v7 = vsel %vm2282_vm1, -inf, %v6124_v11  ;;  %v2297_v0 = vsel %vm2281_vm14, -inf, %v6127_v39  ;;  %v6465_v11 = vsel %vm2188_vm0, %v6369_v35, %v5961_v28  ;;  %v6485_v28 = vsel %vm2188_vm0, %v6387_v61, %v5995_v1  ;;  %v7362_v35 = vld [vmem:[#allocation20_spill] sm:$0xff] }
 0x683   : > { %2375 = vmax.xlane.f32.xlu1 %v2298_v7  ;;  %2373 = vmax.xlane.f32.xlu0 %v2297_v0  ;;  %v6507_v1 = vsel %vm2188_vm0, %v6411_v10, %v6055_v42  ;;  %v2247_v42 = vsel %vm2215_vm2, -inf, %v6185_v32  ;;  %v7360_v32 = vld [vmem:[#allocation21_spill] sm:$0xff]  ;;  %v6548_v9 = vsel %vm2188_vm0, %v6433_v62, %v7362_v35  ;;  %v2313_v3 = vmax.f32 %v2245_v49, %v2246_v14  ;;  %v7377_v49 = vld [vmem:[#allocation34_spill] sm:$0xff]  ;;  %v7380_v14 = vld [vmem:[#allocation15_spill] sm:$0xff] }
 0x684   : > { %vm2217_vm9 = vcmp.ge.f32.partialorder %v7360_v32, %v6387_v61  ;;  %v2316_v30 = vmax.f32 %v2247_v42, %v2248_v31  ;;  %v2252_v23 = vsel %vm2220_vm7, -inf, %v6212_v21  ;;  %v2250_v60 = vsel %vm2218_vm11, -inf, %v7361_v6 }
 0x685   : > { %v2249_v47 = vsel %vm2217_vm9, -inf, %v7360_v32  ;;  %vm2223_vm12 = vcmp.ge.f32.partialorder %v7365_v40, %v6401_v16  ;;  %vm2224_vm13 = vcmp.ge.f32.partialorder %v7366_v55, %v6401_v16  ;;  %vm2221_vm1 = vcmp.ge.f32.partialorder %v7367_v54, %v6403_v51  ;;  %v7370_v16 = vld [vmem:[#allocation27_spill] sm:$0xff] }
 0x686   : > { %v2171_v39 = vpop.xlane.xlu1 %2170  ;;  %v2169_v25 = vpop.xlane.xlu0 %2168  ;;  %v2322_v41 = vmax.f32 %v2251_v36, %v2252_v23  ;;  %v2319_v21 = vmax.f32 %v2249_v47, %v2250_v60  ;;  %v2255_v50 = vsel %vm2223_vm12, -inf, %v7365_v40  ;;  %v2256_v29 = vsel %vm2224_vm13, -inf, %v7366_v55  ;;  %v7381_v23 = vld [vmem:[#allocation16_spill] sm:$0xff]  ;;  %v7382_v47 = vld [vmem:[#allocation17_spill] sm:$0xff] }
 0x687   : > { %v6487_v56 = vmax.f32 %v2139_v46, %v2171_v39  ;;  %2305 = vmax.xlane.f32.xlu1 %v2304_v63  ;;  %2302 = vmax.xlane.f32.xlu0 %v2301_v4  ;;  %v6521_v59 = vmax.f32 %v2136_v24, %v2169_v25  ;;  %v2253_v45 = vsel %vm2221_vm1, -inf, %v7367_v54  ;;  %v7369_v46 = vld [vmem:[#allocation26_spill] sm:$0xff]  ;;  %vm2228_vm4 = vcmp.ge.f32.partialorder %v7370_v16, %v6411_v10  ;;  %v7372_v24 = vld [vmem:[#allocation29_spill] sm:$0xff] }
 0x688   : > { %vm2227_vm14 = vcmp.ge.f32.partialorder %v7369_v46, %v6411_v10  ;;  %vm2226_vm6 = vcmp.ge.f32.partialorder %v7372_v24, %v6413_v33  ;;  %v2328_v7 = vmax.f32 %v2255_v50, %v2256_v29  ;;  %v2260_v4 = vsel %vm2228_vm4, -inf, %v7370_v16  ;;  %v7374_v10 = vld [vmem:[#allocation31_spill] sm:$0xff] }
 0x689   : > { %v6554_v15 = vsel %vm2188_vm0, %v6487_v56, %v7363_v22  ;;  %v6561_v61 = vsel %vm2188_vm0, %v6521_v59, %v7364_v26  ;;  %vm2222_vm0 = vcmp.ge.f32.partialorder %v7368_v58, %v6403_v51  ;;  %v7371_v51 = vld [vmem:[#allocation28_spill] sm:$0xff]  ;;  %v2259_v63 = vsel %vm2227_vm14, -inf, %v7369_v46 }
 0x68a   : > { %v2254_v12 = vsel %vm2222_vm0, -inf, %v7368_v58  ;;  %vm2225_vm15 = vcmp.ge.f32.partialorder %v7371_v51, %v6413_v33  ;;  %v2258_v17 = vsel %vm2226_vm6, -inf, %v7372_v24  ;;  %vm2231_vm2 = vcmp.ge.f32.partialorder %v7373_v38, %v6430_v37  ;;  %v7375_v33 = vld [vmem:[#allocation32_spill] sm:$0xff] }
 0x68b   : > { %2311 = vmax.xlane.f32.xlu1 %v2310_v52  ;;  %2308 = vmax.xlane.f32.xlu0 %v2307_v53  ;;  %v2325_v0 = vmax.f32 %v2253_v45, %v2254_v12  ;;  %v2257_v57 = vsel %vm2225_vm15, -inf, %v7371_v51  ;;  %vm2232_vm8 = vcmp.ge.f32.partialorder %v7374_v10, %v6430_v37  ;;  %vm2229_vm3 = vcmp.ge.f32.partialorder %v7375_v33, %v6433_v62  ;;  %v7378_v37 = vld [vmem:[#allocation13_spill] sm:$0xff] }
 0x68c   : > { %vm2230_vm10 = vcmp.ge.f32.partialorder %v7376_v34, %v6433_v62  ;;  %v2334_v39 = vmax.f32 %v2259_v63, %v2260_v4  ;;  %v2331_v25 = vmax.f32 %v2257_v57, %v2258_v17  ;;  %v2263_v52 = vsel %vm2231_vm2, -inf, %v7373_v38  ;;  %v7379_v62 = vld [vmem:[#allocation14_spill] sm:$0xff] }
 0x68d   : > { %v2264_v53 = vsel %vm2232_vm8, -inf, %v7374_v10  ;;  %v2261_v42 = vsel %vm2229_vm3, -inf, %v7375_v33  ;;  %v2262_v31 = vsel %vm2230_vm10, -inf, %v7376_v34  ;;  %vm2235_vm5 = vcmp.ge.f32.partialorder %v7377_v49, %v6487_v56 }
 0x68e   : > { %vm2236_vm7 = vcmp.ge.f32.partialorder %v7378_v37, %v6487_v56  ;;  %vm2233_vm9 = vcmp.ge.f32.partialorder %v7379_v62, %v6521_v59  ;;  %vm2234_vm11 = vcmp.ge.f32.partialorder %v7380_v14, %v6521_v59  ;;  %v2340_v32 = vmax.f32 %v2263_v52, %v2264_v53 }
 0x68f   : > { %2317 = vmax.xlane.f32.xlu1 %v2316_v30  ;;  %2314 = vmax.xlane.f32.xlu0 %v2313_v3  ;;  %v2337_v6 = vmax.f32 %v2261_v42, %v2262_v31  ;;  %v2267_v35 = vsel %vm2235_vm5, -inf, %v7377_v49  ;;  %v2268_v22 = vsel %vm2236_vm7, -inf, %v7378_v37  ;;  %v2265_v30 = vsel %vm2233_vm9, -inf, %v7379_v62 }
 0x690   : > { %v2266_v3 = vsel %vm2234_vm11, -inf, %v7380_v14  ;;  %v2346_v36 = vmax.f32 %v2267_v35, %v2268_v22  ;;  %vm2284_vm12 = vcmp.ge.f32.partialorder %v7381_v23, %v6487_v56  ;;  %vm2283_vm13 = vcmp.ge.f32.partialorder %v7382_v47, %v6521_v59 }
 0x691   : > { %v2343_v26 = vmax.f32 %v2265_v30, %v2266_v3  ;;  %v2300_v60 = vsel %vm2284_vm12, -inf, %v7381_v23  ;;  %v2299_v40 = vsel %vm2283_vm13, -inf, %v7382_v47  ;;  %vm2397_vm1 = vcmp.eq.s32.totalorder %v4079_v8, 7 }
 0x693   : > { %2323 = vmax.xlane.f32.xlu1 %v2322_v41  ;;  %2320 = vmax.xlane.f32.xlu0 %v2319_v21 }
 0x697   : > { %2329 = vmax.xlane.f32.xlu1 %v2328_v7  ;;  %2326 = vmax.xlane.f32.xlu0 %v2325_v0 }
 0x69b   : > { %2335 = vmax.xlane.f32.xlu1 %v2334_v39  ;;  %2332 = vmax.xlane.f32.xlu0 %v2331_v25 }
 0x69f   : > { %2341 = vmax.xlane.f32.xlu1 %v2340_v32  ;;  %2338 = vmax.xlane.f32.xlu0 %v2337_v6 }
 0x6a3   : > { %2347 = vmax.xlane.f32.xlu1 %v2346_v36  ;;  %2344 = vmax.xlane.f32.xlu0 %v2343_v26 }
 0x6a7   : > { %2379 = vmax.xlane.f32.xlu1 %v2300_v60  ;;  %2377 = vmax.xlane.f32.xlu0 %v2299_v40 }
 0x6f8   : > { %v2352_v55 = vpop.xlane.xlu1 %2351  ;;  %v2350_v54 = vpop.xlane.xlu0 %2349 }
 0x6fc   : > { %v2356_v58 = vpop.xlane.xlu1 %2355  ;;  %v2354_v41 = vpop.xlane.xlu0 %2353 }
 0x700   : > { %v2360_v21 = vpop.xlane.xlu1 %2359  ;;  %v2358_v50 = vpop.xlane.xlu0 %2357 }
 0x704   : > { %v2364_v29 = vpop.xlane.xlu1 %2363  ;;  %v2362_v45 = vpop.xlane.xlu0 %2361 }
 0x708   : > { %v2368_v12 = vpop.xlane.xlu1 %2367  ;;  %v2366_v46 = vpop.xlane.xlu0 %2365 }
 0x70c   : > { %v2372_v56 = vpop.xlane.xlu1 %2371  ;;  %v2370_v16 = vpop.xlane.xlu0 %2369 }
 0x710   : > { %v2376_v51 = vpop.xlane.xlu1 %2375  ;;  %v2374_v59 = vpop.xlane.xlu0 %2373 }
 0x714   : > { %v2306_v24 = vpop.xlane.xlu1 %2305  ;;  %v2303_v7 = vpop.xlane.xlu0 %2302 }
 0x715   : > { %v6621_v0 = vmax.f32 %v2306_v24, %v2352_v55  ;;  %v6623_v63 = vmax.f32 %v2303_v7, %v2350_v54 }
 0x717   : > { %v2399_v4 = vsel %vm2397_vm1, %v6621_v0, %v6355_v5  ;;  %v2398_v57 = vsel %vm2397_vm1, %v6623_v63, %v6361_v48  ;;  %2434 = vst [vmem:[%s3301_s14] sm:$0xff] (!%p2736_p3), %v6623_v63  ;;  %2435 = vst [vmem:[%s3301_s14 + $0x8] sm:$0xff] (!%p2736_p3), %v6621_v0 }
 0x718   : > { %2415 = vst [vmem:[#allocation2 + $0x8] sm:$0xff] %v2399_v4  ;;  %2414 = vst [vmem:[#allocation2] sm:$0xff] %v2398_v57  ;;  %v2312_v17 = vpop.xlane.xlu1 %2311  ;;  %v2309_v38 = vpop.xlane.xlu0 %2308 }
 0x719   : > { %v2384_v10 = vmax.f32 %v2312_v17, %v2356_v58  ;;  %v2383_v33 = vmax.f32 %v2309_v38, %v2354_v41 }
 0x71b   : > { %v2401_v34 = vsel %vm2397_vm1, %v2384_v10, %v6377_v27  ;;  %v2400_v39 = vsel %vm2397_vm1, %v2383_v33, %v6393_v19  ;;  %2436 = vst [vmem:[%s3301_s14 + $0x10] sm:$0xff] (!%p2736_p3), %v2383_v33  ;;  %2437 = vst [vmem:[%s3301_s14 + $0x18] sm:$0xff] (!%p2736_p3), %v2384_v10 }
 0x71c   : > { %2417 = vst [vmem:[#allocation2 + $0x18] sm:$0xff] %v2401_v34  ;;  %2416 = vst [vmem:[#allocation2 + $0x10] sm:$0xff] %v2400_v39  ;;  %v2318_v5 = vpop.xlane.xlu1 %2317  ;;  %v2315_v25 = vpop.xlane.xlu0 %2314 }
 0x71d   : > { %v2386_v52 = vmax.f32 %v2318_v5, %v2360_v21  ;;  %v2385_v48 = vmax.f32 %v2315_v25, %v2358_v50 }
 0x71f   : > { %v2403_v53 = vsel %vm2397_vm1, %v2386_v52, %v6465_v11  ;;  %v2402_v42 = vsel %vm2397_vm1, %v2385_v48, %v6473_v43  ;;  %2438 = vst [vmem:[%s3301_s14 + $0x20] sm:$0xff] (!%p2736_p3), %v2385_v48  ;;  %2439 = vst [vmem:[%s3301_s14 + $0x28] sm:$0xff] (!%p2736_p3), %v2386_v52 }
 0x720   : > { %2419 = vst [vmem:[#allocation2 + $0x28] sm:$0xff] %v2403_v53  ;;  %2418 = vst [vmem:[#allocation2 + $0x20] sm:$0xff] %v2402_v42  ;;  %v2324_v27 = vpop.xlane.xlu1 %2323  ;;  %v2321_v31 = vpop.xlane.xlu0 %2320 }
 0x721   : > { %v2388_v49 = vmax.f32 %v2324_v27, %v2364_v29  ;;  %v2387_v19 = vmax.f32 %v2321_v31, %v2362_v45 }
 0x723   : > { %v2405_v37 = vsel %vm2397_vm1, %v2388_v49, %v6479_v2  ;;  %v2404_v62 = vsel %vm2397_vm1, %v2387_v19, %v6485_v28  ;;  %2440 = vst [vmem:[%s3301_s14 + $0x30] sm:$0xff] (!%p2736_p3), %v2387_v19  ;;  %2441 = vst [vmem:[%s3301_s14 + $0x38] sm:$0xff] (!%p2736_p3), %v2388_v49 }
 0x724   : > { %2421 = vst [vmem:[#allocation2 + $0x38] sm:$0xff] %v2405_v37  ;;  %2420 = vst [vmem:[#allocation2 + $0x30] sm:$0xff] %v2404_v62  ;;  %v2330_v11 = vpop.xlane.xlu1 %2329  ;;  %v2327_v14 = vpop.xlane.xlu0 %2326 }
 0x725   : > { %v2390_v32 = vmax.f32 %v2330_v11, %v2368_v12  ;;  %v2389_v43 = vmax.f32 %v2327_v14, %v2366_v46 }
 0x727   : > { %v2407_v6 = vsel %vm2397_vm1, %v2390_v32, %v6495_v13  ;;  %v2406_v35 = vsel %vm2397_vm1, %v2389_v43, %v6501_v44  ;;  %2442 = vst [vmem:[%s3301_s14 + $0x40] sm:$0xff] (!%p2736_p3), %v2389_v43  ;;  %2443 = vst [vmem:[%s3301_s14 + $0x48] sm:$0xff] (!%p2736_p3), %v2390_v32 }
 0x728   : > { %2423 = vst [vmem:[#allocation2 + $0x48] sm:$0xff] %v2407_v6  ;;  %2422 = vst [vmem:[#allocation2 + $0x40] sm:$0xff] %v2406_v35  ;;  %v2336_v2 = vpop.xlane.xlu1 %2335  ;;  %v2333_v22 = vpop.xlane.xlu0 %2332 }
 0x729   : > { %v2392_v30 = vmax.f32 %v2336_v2, %v2372_v56  ;;  %v2391_v28 = vmax.f32 %v2333_v22, %v2370_v16 }
 0x72b   : > { %v2409_v3 = vsel %vm2397_vm1, %v2392_v30, %v6507_v1  ;;  %v2408_v36 = vsel %vm2397_vm1, %v2391_v28, %v6513_v18  ;;  %2444 = vst [vmem:[%s3301_s14 + $0x50] sm:$0xff] (!%p2736_p3), %v2391_v28  ;;  %2445 = vst [vmem:[%s3301_s14 + $0x58] sm:$0xff] (!%p2736_p3), %v2392_v30 }
 0x72c   : > { %2425 = vst [vmem:[#allocation2 + $0x58] sm:$0xff] %v2409_v3  ;;  %2424 = vst [vmem:[#allocation2 + $0x50] sm:$0xff] %v2408_v36  ;;  %v2342_v13 = vpop.xlane.xlu1 %2341  ;;  %v2339_v26 = vpop.xlane.xlu0 %2338 }
 0x72d   : > { %v2394_v23 = vmax.f32 %v2342_v13, %v2376_v51  ;;  %v2393_v44 = vmax.f32 %v2339_v26, %v2374_v59 }
 0x72f   : > { %v2411_v47 = vsel %vm2397_vm1, %v2394_v23, %v6519_v20  ;;  %v2410_v60 = vsel %vm2397_vm1, %v2393_v44, %v6548_v9  ;;  %2446 = vst [vmem:[%s3301_s14 + $0x60] sm:$0xff] (!%p2736_p3), %v2393_v44  ;;  %2447 = vst [vmem:[%s3301_s14 + $0x68] sm:$0xff] (!%p2736_p3), %v2394_v23 }
 0x730   : > { %2427 = vst [vmem:[#allocation2 + $0x68] sm:$0xff] %v2411_v47  ;;  %2426 = vst [vmem:[#allocation2 + $0x60] sm:$0xff] %v2410_v60  ;;  %v2348_v1 = vpop.xlane.xlu1 %2347  ;;  %v2345_v40 = vpop.xlane.xlu0 %2344 }
 0x732   : > { %2433 = sbr.rel (%p2736_p3) target bundleno = 1849 (0x739), region = 52 }
 0x734   : > { %v2380_v55 = vpop.xlane.xlu1 %2379  ;;  %v2378_v18 = vpop.xlane.xlu0 %2377 }
 0x735   : > { %v2396_v54 = vmax.f32 %v2348_v1, %v2380_v55  ;;  %v2395_v58 = vmax.f32 %v2345_v40, %v2378_v18 }
 0x737   : > { %v2413_v41 = vsel %vm2397_vm1, %v2396_v54, %v6554_v15  ;;  %v2412_v20 = vsel %vm2397_vm1, %v2395_v58, %v6561_v61  ;;  %2448 = vst [vmem:[%s3301_s14 + $0x70] sm:$0xff] (!%p2736_p3), %v2395_v58  ;;  %2449 = vst [vmem:[%s3301_s14 + $0x78] sm:$0xff] (!%p2736_p3), %v2396_v54 }
 0x738   : > { %2429 = vst [vmem:[#allocation2 + $0x78] sm:$0xff] %v2413_v41  ;;  %2428 = vst [vmem:[#allocation2 + $0x70] sm:$0xff] %v2412_v20 }
 0x739 PF: > { %p7383_p5 = scmp.ne.s32.totalorder %s7083_s9, 0 }
 0x73a   : > { %s2746_s23 = sshll.u32 (%p7383_p5), %s3061_s24, 7  ;;  %v2480_v8 = vld [vmem:[%s3447_s18] sm:$0xff] (%p7383_p5)  ;;  %v2482_v9 = vld [vmem:[%s3447_s18 + $0x8] sm:$0xff] (%p7383_p5)  ;;  %v2484_v15 = vld [vmem:[%s3447_s18 + $0x10] sm:$0xff] (%p7383_p5)  ;;  %s7384_s10 = sld [smem:[#allocation39_spill]] (%p7383_p5) }
 0x73b   : > { %2461 = sbr.rel (!%p7383_p5) target bundleno = 1873 (0x751), region = 56  ;;  %s2465_s9 = sadd.s32 (%p7383_p5), %s2746_s23, %s3419_s29  ;;  %v2486_v61 = vld [vmem:[%s3447_s18 + $0x18] sm:$0xff] (%p7383_p5)  ;;  %v2488_v21 = vld [vmem:[%s3447_s18 + $0x20] sm:$0xff] (%p7383_p5)  ;;  %v2490_v50 = vld [vmem:[%s3447_s18 + $0x28] sm:$0xff] (%p7383_p5) }
 0x73c   : > { %s2741_s4 = sshll.u32 (%p7383_p5), %s2465_s9, 3  ;;  %v2492_v29 = vld [vmem:[%s3447_s18 + $0x30] sm:$0xff] (%p7383_p5)  ;;  %v2494_v45 = vld [vmem:[%s3447_s18 + $0x38] sm:$0xff] (%p7383_p5)  ;;  %v2496_v12 = vld [vmem:[%s3447_s18 + $0x40] sm:$0xff] (%p7383_p5) }
 0x73d   : > { %v2498_v46 = vld [vmem:[%s3447_s18 + $0x48] sm:$0xff] (%p7383_p5)  ;;  %v2500_v56 = vld [vmem:[%s3447_s18 + $0x50] sm:$0xff] (%p7383_p5)  ;;  %v2502_v16 = vld [vmem:[%s3447_s18 + $0x58] sm:$0xff] (%p7383_p5) }
 0x73e   : > { %v2504_v51 = vld [vmem:[%s3447_s18 + $0x60] sm:$0xff] (%p7383_p5)  ;;  %v2506_v59 = vld [vmem:[%s3447_s18 + $0x68] sm:$0xff] (%p7383_p5)  ;;  %v2508_v24 = vld [vmem:[%s3447_s18 + $0x70] sm:$0xff] (%p7383_p5) }
 0x73f   : > { %v2510_v7 = vld [vmem:[%s3447_s18 + $0x78] sm:$0xff] (%p7383_p5)  ;;  %v2512_v0 = vld [vmem:[%s3447_s18 + $0x80] sm:$0xff] (%p7383_p5)  ;;  %v2514_v63 = vld [vmem:[%s3447_s18 + $0x88] sm:$0xff] (%p7383_p5) }
 0x740   : > { %s6710_s14 = scalar_lea.vmem (%p7383_p5), %s7384_s10, %s2741_s4  ;;  %v2516_v4 = vld [vmem:[%s3447_s18 + $0x90] sm:$0xff] (%p7383_p5)  ;;  %v2518_v57 = vld [vmem:[%s3447_s18 + $0x98] sm:$0xff] (%p7383_p5)  ;;  %v2520_v17 = vld [vmem:[%s3447_s18 + $0xa0] sm:$0xff] (%p7383_p5) }
 0x741   : > { %2481 = vst [vmem:[%s6710_s14] sm:$0xff] (%p7383_p5), %v2480_v8  ;;  %2483 = vst [vmem:[%s6710_s14 + $0x8] sm:$0xff] (%p7383_p5), %v2482_v9  ;;  %v2522_v38 = vld [vmem:[%s3447_s18 + $0xa8] sm:$0xff] (%p7383_p5)  ;;  %v2524_v10 = vld [vmem:[%s3447_s18 + $0xb0] sm:$0xff] (%p7383_p5) }
 0x742   : > { %2485 = vst [vmem:[%s6710_s14 + $0x40] sm:$0xff] %v2484_v15  ;;  %2487 = vst [vmem:[%s6710_s14 + $0x48] sm:$0xff] %v2486_v61  ;;  %v2526_v33 = vld [vmem:[%s3447_s18 + $0xb8] sm:$0xff]  ;;  %v2528_v34 = vld [vmem:[%s3447_s18 + $0xc0] sm:$0xff] }
 0x743   : > { %2489 = vst [vmem:[%s6710_s14 + $0x80] sm:$0xff] %v2488_v21  ;;  %2491 = vst [vmem:[%s6710_s14 + $0x88] sm:$0xff] %v2490_v50  ;;  %v2530_v39 = vld [vmem:[%s3447_s18 + $0xc8] sm:$0xff]  ;;  %v2532_v5 = vld [vmem:[%s3447_s18 + $0xd0] sm:$0xff] }
 0x744   : > { %2493 = vst [vmem:[%s6710_s14 + $0xc0] sm:$0xff] %v2492_v29  ;;  %2495 = vst [vmem:[%s6710_s14 + $0xc8] sm:$0xff] %v2494_v45  ;;  %v2534_v25 = vld [vmem:[%s3447_s18 + $0xd8] sm:$0xff]  ;;  %v2536_v52 = vld [vmem:[%s3447_s18 + $0xe0] sm:$0xff] }
 0x745   : > { %2497 = vst [vmem:[%s6710_s14 + $0x100] sm:$0xff] %v2496_v12  ;;  %2499 = vst [vmem:[%s6710_s14 + $0x108] sm:$0xff] %v2498_v46  ;;  %v2538_v48 = vld [vmem:[%s3447_s18 + $0xe8] sm:$0xff]  ;;  %v2540_v53 = vld [vmem:[%s3447_s18 + $0xf0] sm:$0xff] }
 0x746   : > { %2501 = vst [vmem:[%s6710_s14 + $0x140] sm:$0xff] %v2500_v56  ;;  %2503 = vst [vmem:[%s6710_s14 + $0x148] sm:$0xff] %v2502_v16  ;;  %v2542_v42 = vld [vmem:[%s3447_s18 + $0xf8] sm:$0xff] }
 0x747   : > { %2505 = vst [vmem:[%s6710_s14 + $0x180] sm:$0xff] %v2504_v51  ;;  %2507 = vst [vmem:[%s6710_s14 + $0x188] sm:$0xff] %v2506_v59 }
 0x748   : > { %2509 = vst [vmem:[%s6710_s14 + $0x1c0] sm:$0xff] %v2508_v24  ;;  %2511 = vst [vmem:[%s6710_s14 + $0x1c8] sm:$0xff] %v2510_v7 }
 0x749   : > { %2513 = vst [vmem:[%s6710_s14 + $0x200] sm:$0xff] %v2512_v0  ;;  %2515 = vst [vmem:[%s6710_s14 + $0x208] sm:$0xff] %v2514_v63 }
 0x74a   : > { %2517 = vst [vmem:[%s6710_s14 + $0x240] sm:$0xff] %v2516_v4  ;;  %2519 = vst [vmem:[%s6710_s14 + $0x248] sm:$0xff] %v2518_v57 }
 0x74b   : > { %2521 = vst [vmem:[%s6710_s14 + $0x280] sm:$0xff] %v2520_v17  ;;  %2523 = vst [vmem:[%s6710_s14 + $0x288] sm:$0xff] %v2522_v38 }
 0x74c   : > { %2525 = vst [vmem:[%s6710_s14 + $0x2c0] sm:$0xff] %v2524_v10  ;;  %2527 = vst [vmem:[%s6710_s14 + $0x2c8] sm:$0xff] %v2526_v33 }
 0x74d   : > { %2529 = vst [vmem:[%s6710_s14 + $0x300] sm:$0xff] %v2528_v34  ;;  %2531 = vst [vmem:[%s6710_s14 + $0x308] sm:$0xff] %v2530_v39 }
 0x74e   : > { %2533 = vst [vmem:[%s6710_s14 + $0x340] sm:$0xff] %v2532_v5  ;;  %2535 = vst [vmem:[%s6710_s14 + $0x348] sm:$0xff] %v2534_v25 }
 0x74f   : > { %2537 = vst [vmem:[%s6710_s14 + $0x380] sm:$0xff] %v2536_v52  ;;  %2539 = vst [vmem:[%s6710_s14 + $0x388] sm:$0xff] %v2538_v48 }
 0x750   : > { %2541 = vst [vmem:[%s6710_s14 + $0x3c0] sm:$0xff] %v2540_v53  ;;  %2543 = vst [vmem:[%s6710_s14 + $0x3c8] sm:$0xff] %v2542_v42 }
 0x751 PF: > { %s7385_s24 = sld [smem:[#allocation11_spill]]  ;;  %s7386_s23 = sld [smem:[#allocation10_spill]] }
 0x752   : > { %s7387_s25 = sld [smem:[#allocation12_spill]]  ;;  %s7388_s18 = smov %s3041_s19 }
 0x753   : > { %s7389_s19 = smov %s3251_s6  ;;  %s7390_s20 = smov %s3049_s21 }
 0x754   : > { %s7391_s21 = smov %s3053_s22  ;;  %s7392_s22 = smov %s3237_s15 }
 0x757   : > { %s20_s27 = sadd.s32 1, %s7385_s24   ;;  %s7393_s24 = smov %s3069_s26 }
 0x758   : > { %p17_p10 = scmp.ge.s32.totalorder %s20_s27, 10   ;;  %s7394_s26 = smov %s7400_s17 }
 0x75a   :  { %19 = sbr.rel (!%p17_p10) target bundleno = 10 (0xa), region = 130 }
 0x761   :  { %2571 = vsyncpa [#allocation4], 1 }
 0x762   :  { %2573 = vsyncpa [#allocation4 + $0x1], 1 }
 0x763   :  { %2574 = vsyncpa [#allocation6], 1 }
 0x764   :  { %2576 = vsyncpa [#allocation6 + $0x1], 1 }

</bundles_post_ra>
